<compile_context>
chip_gen: v5e
topology: v5e:2x2
jax: 0.10.0
libtpu: 0.0.40
codegen_flags: <defaults>
</compile_context>

<pallas_src>
import math

import jax
import jax.numpy as jnp
import numpy as np
from jax.experimental import pallas as pl
from jax.experimental.pallas import tpu as pltpu

INPUT_SIZE = 1
SEQ_LEN = 26


# -----------------------------------------------------------------------------
# Pallas kernel: batched precompute + serial recurrence + head + BCE loss
# -----------------------------------------------------------------------------
def gru_d_kernel(x_ref, m_ref, d_ref, f_ref,
                 labels_ref, istrain_ref,
                 wdh_ref, bdh_ref, wdx_ref, bdx_ref,
                 wih_x_ref, wih_m_ref, whh_ref, b_lstm_ref,
                 wout_ref, bout_ref,
                 imp_ref, pred_ref, loss_ref,
                 pregates_scr, gammah_scr):
    B = pred_ref.shape[0]
    H = wdh_ref.shape[1]

    # Time-major stacked inputs: row t*B + b corresponds to (timestep t, batch b).
    x = x_ref[...]        # [SEQ_LEN*B, 1]
    m = m_ref[...]
    d = d_ref[...]
    f = f_ref[...]

    wdh = wdh_ref[...]    # [1, H]
    bdh = bdh_ref[...]
    wdx = wdx_ref[...]
    bdx = bdx_ref[...]

    # ---- Batched (time-hoisted) precompute over all SEQ_LEN*B rows ----------
    # TemporalDecay (diag=False, input_size=1): outer product d * W^T + b
    gamma_h_all = jnp.exp(-jnp.maximum(d * wdh + bdh, 0.0))   # [SB, H]
    gamma_x_all = jnp.exp(-jnp.maximum(d * wdx + bdx, 0.0))   # [SB, H]

    # x_h = m*x + (1-m)*(1-gamma_x)*f   (broadcast [SB,1] against [SB,H])
    x_h_all = m * x + (1.0 - m) * (1.0 - gamma_x_all) * f     # [SB, H]

    # Imputations: single bulk store (wrapper reshapes to [B, SEQ_LEN, H]).
    imp_ref[...] = x_h_all

    # Input half of the LSTM gates for every timestep in one MXU matmul:
    #   gates_in = x_h @ Wih[:H] + m * Wih[H] + (bias_ih + bias_hh)
    pre_gates = (jnp.dot(x_h_all, wih_x_ref[...],
                         preferred_element_type=jnp.float32)
                 + m * wih_m_ref[...]
                 + b_lstm_ref[...])                           # [SB, 4H]

    pregates_scr[...] = pre_gates
    gammah_scr[...] = gamma_h_all

    whh = whh_ref[...]    # [H, 4H]

    # ---- Serial recurrence: only the true h/c dependency chain remains ------
    h = jnp.zeros((B, H), jnp.float32)
    c = jnp.zeros((B, H), jnp.float32)

    for t in range(SEQ_LEN):                       # static unroll
        gh = gammah_scr[t * B:(t + 1) * B, :]      # [B, H]
        pg = pregates_scr[t * B:(t + 1) * B, :]    # [B, 4H]

        h = h * gh
        gates = pg + jnp.dot(h, whh, preferred_element_type=jnp.float32)

        sig = jax.nn.sigmoid(gates)                # one full-width [B, 4H] pass
        i_g = sig[:, 0 * H:1 * H]
        f_g = sig[:, 1 * H:2 * H]
        o_g = sig[:, 3 * H:4 * H]
        g_g = jnp.tanh(gates[:, 2 * H:3 * H])

        c = f_g * c + i_g * g_g
        h = o_g * jnp.tanh(c)

    # ---- Output head (dropout == identity): VPU mul + lane reduction --------
    y = jnp.sum(h * wout_ref[...], axis=-1, keepdims=True) + bout_ref[...]  # [B,1]

    labels = labels_ref[...]        # [B, 1]
    is_train = istrain_ref[...]     # [B, 1]

    # binary_cross_entropy_with_logits (reduce=False), then masked mean.
    max_val = jnp.maximum(-y, 0.0)
    loss_elem = (y - y * labels + max_val
                 + jnp.log(jnp.exp(-max_val) + jnp.exp(-y - max_val)))
    num = jnp.sum(loss_elem * is_train)
    den = jnp.sum(is_train) + 1e-5
    loss_ref[...] = jnp.broadcast_to(num / den, (1, 1)).astype(jnp.float32)

    pred_ref[...] = jax.nn.sigmoid(y)


# -----------------------------------------------------------------------------
# JAX wrapper (glue only: layout to time-major rows, reshape imputations back)
# -----------------------------------------------------------------------------
def gru_d_forward(params, data):
    fwd = data['forward']
    values = fwd['values']      # [B, SEQ_LEN, 1]
    masks = fwd['masks']
    deltas = fwd['deltas']
    forwards = fwd['forwards']
    evals = fwd['evals']
    eval_masks = fwd['eval_masks']
    labels = data['labels'].reshape(-1, 1).astype(jnp.float32)
    is_train = data['is_train'].reshape(-1, 1).astype(jnp.float32)

    B = values.shape[0]
    H = params['whh'].shape[0]
    SB = SEQ_LEN * B

    # Time-major stacked rows: row t*B + b  <-  (batch b, timestep t, feature 0)
    to_tm = lambda a: jnp.transpose(a[:, :, 0]).reshape(SB, 1)
    x_tm = to_tm(values)
    m_tm = to_tm(masks)
    d_tm = to_tm(deltas)
    f_tm = to_tm(forwards)

    vspec = pl.BlockSpec(memory_space=pltpu.MemorySpace.VMEM)
    out_shapes = (
        jax.ShapeDtypeStruct((SB, H), jnp.float32),   # imputations (time-major rows)
        jax.ShapeDtypeStruct((B, 1), jnp.float32),    # predictions
        jax.ShapeDtypeStruct((1, 1), jnp.float32),    # loss
    )

    imp_tm, pred, loss = pl.pallas_call(
        gru_d_kernel,
        out_shape=out_shapes,
        in_specs=[vspec] * 16,
        out_specs=(vspec, vspec, vspec),
        scratch_shapes=[pltpu.VMEM((SB, 4 * H), jnp.float32),   # pre_gates
                        pltpu.VMEM((SB, H), jnp.float32)],      # gamma_h
    )(x_tm, m_tm, d_tm, f_tm, labels, is_train,
      params['wdh'], params['bdh'], params['wdx'], params['bdx'],
      params['wih_x'], params['wih_m'], params['whh'], params['b_lstm'],
      params['wout'].T, params['bout'])

    imputations = jnp.transpose(imp_tm.reshape(SEQ_LEN, B, H), (1, 0, 2))

    return {'loss': loss[0, 0],
            'predictions': pred,
            'imputations': imputations,
            'labels': labels,
            'is_train': is_train,
            'evals': evals,
            'eval_masks': eval_masks}


# -----------------------------------------------------------------------------
# Pure-JAX reference (mirrors the PyTorch math) for correctness check
# -----------------------------------------------------------------------------
def ref_forward(params, data):
    values = data['forward']['values']
    masks = data['forward']['masks']
    deltas = data['forward']['deltas']
    forwards = data['forward']['forwards']
    labels = data['labels'].reshape(-1, 1).astype(jnp.float32)
    is_train = data['is_train'].reshape(-1, 1).astype(jnp.float32)

    B = values.shape[0]
    H = params['whh'].shape[0]
    w_ih = jnp.concatenate([params['wih_x'], params['wih_m']], axis=0)  # [H+1, 4H]

    h = jnp.zeros((B, H), jnp.float32)
    c = jnp.zeros((B, H), jnp.float32)
    imps = []
    for t in range(SEQ_LEN):
        x = values[:, t, :]
        m = masks[:, t, :]
        d = deltas[:, t, :]
        f = forwards[:, t, :]
        gamma_h = jnp.exp(-jnp.maximum(d * params['wdh'] + params['bdh'], 0.0))
        gamma_x = jnp.exp(-jnp.maximum(d * params['wdx'] + params['bdx'], 0.0))
        h = h * gamma_h
        x_h = m * x + (1.0 - m) * (1.0 - gamma_x) * f
        inputs = jnp.concatenate([x_h, m], axis=1)
        gates = inputs @ w_ih + h @ params['whh'] + params['b_lstm']
        i_g = jax.nn.sigmoid(gates[:, :H])
        f_g = jax.nn.sigmoid(gates[:, H:2 * H])
        g_g = jnp.tanh(gates[:, 2 * H:3 * H])
        o_g = jax.nn.sigmoid(gates[:, 3 * H:4 * H])
        c = f_g * c + i_g * g_g
        h = o_g * jnp.tanh(c)
        imps.append(x_h[:, None, :])
    imputations = jnp.concatenate(imps, axis=1)
    y = h @ params['wout'] + params['bout']
    max_val = jnp.maximum(-y, 0.0)
    loss_elem = (y - y * labels + max_val
                 + jnp.log(jnp.exp(-max_val) + jnp.exp(-y - max_val)))
    loss = jnp.sum(loss_elem * is_train) / (jnp.sum(is_train) + 1e-5)
    return loss, jax.nn.sigmoid(y), imputations


# -----------------------------------------------------------------------------
def init_params(key, H):
    ks = jax.random.split(key, 10)
    stdv = 1.0 / math.sqrt(H)
    u = lambda k, shape: jax.random.uniform(k, shape, jnp.float32, -stdv, stdv)
    wih_full = u(ks[4], (H + INPUT_SIZE, 4 * H))   # transposed LSTM W_ih
    return {
        'wdh': u(ks[0], (1, H)), 'bdh': u(ks[1], (1, H)),      # temp_decay_h
        'wdx': u(ks[2], (1, H)), 'bdx': u(ks[3], (1, H)),      # temp_decay_x
        'wih_x': wih_full[:H, :], 'wih_m': wih_full[H:H + 1, :],
        'whh': u(ks[5], (H, 4 * H)),
        'b_lstm': u(ks[6], (1, 4 * H)) + u(ks[7], (1, 4 * H)),  # bias_ih + bias_hh
        'wout': u(ks[8], (H, 1)), 'bout': u(ks[9], (1, 1)),
    }


if __name__ == "__main__":
    B, H = 8, 32
    key = jax.random.PRNGKey(0)
    kp, kv, km, kd, kf, kl, kt, ke = jax.random.split(key, 8)

    params = init_params(kp, H)

    values = jax.random.normal(kv, (B, SEQ_LEN, INPUT_SIZE), jnp.float32)
    masks = (jax.random.uniform(km, (B, SEQ_LEN, INPUT_SIZE)) < 0.7).astype(jnp.float32)
    deltas = jax.random.uniform(kd, (B, SEQ_LEN, INPUT_SIZE), jnp.float32, 0.0, 3.0)
    forwards = jax.random.normal(kf, (B, SEQ_LEN, INPUT_SIZE), jnp.float32)
    labels = (jax.random.uniform(kl, (B,)) < 0.5).astype(jnp.float32)
    is_train = (jax.random.uniform(kt, (B,)) < 0.8).astype(jnp.float32)
    evals = jax.random.normal(ke, (B, SEQ_LEN, INPUT_SIZE), jnp.float32)
    eval_masks = jnp.zeros((B, SEQ_LEN, INPUT_SIZE), jnp.float32)

    data = {'forward': {'values': values, 'masks': masks, 'deltas': deltas,
                        'forwards': forwards, 'evals': evals,
                        'eval_masks': eval_masks},
            'labels': labels, 'is_train': is_train}

    out = gru_d_forward(params, data)
    jax.block_until_ready(out)

    # correctness check against pure-JAX reference
    loss_r, pred_r, imp_r = ref_forward(params, data)
    np.testing.assert_allclose(np.asarray(out['loss']), np.asarray(loss_r),
                               rtol=2e-4, atol=2e-4)
    np.testing.assert_allclose(np.asarray(out['predictions']), np.asarray(pred_r),
                               rtol=2e-4, atol=2e-4)
    np.testing.assert_allclose(np.asarray(out['imputations']), np.asarray(imp_r),
                               rtol=2e-4, atol=2e-4)

    print("KERNEL_OK")
</pallas_src>

<mosaic_0001>
module attributes {stable_mosaic.version = 11 : i64} {
  func.func @gru_d_kernel(%arg0: memref<208x1xf32, #tpu.memory_space<vmem>>, %arg1: memref<208x1xf32, #tpu.memory_space<vmem>>, %arg2: memref<208x1xf32, #tpu.memory_space<vmem>>, %arg3: memref<208x1xf32, #tpu.memory_space<vmem>>, %arg4: memref<8x1xf32, #tpu.memory_space<vmem>>, %arg5: memref<8x1xf32, #tpu.memory_space<vmem>>, %arg6: memref<1x32xf32, #tpu.memory_space<vmem>>, %arg7: memref<1x32xf32, #tpu.memory_space<vmem>>, %arg8: memref<1x32xf32, #tpu.memory_space<vmem>>, %arg9: memref<1x32xf32, #tpu.memory_space<vmem>>, %arg10: memref<32x128xf32, #tpu.memory_space<vmem>>, %arg11: memref<1x128xf32, #tpu.memory_space<vmem>>, %arg12: memref<32x128xf32, #tpu.memory_space<vmem>>, %arg13: memref<1x128xf32, #tpu.memory_space<vmem>>, %arg14: memref<1x32xf32, #tpu.memory_space<vmem>>, %arg15: memref<1x1xf32, #tpu.memory_space<vmem>>, %arg16: memref<208x32xf32, #tpu.memory_space<vmem>>, %arg17: memref<8x1xf32, #tpu.memory_space<vmem>>, %arg18: memref<1x1xf32, #tpu.memory_space<vmem>>, %arg19: memref<208x128xf32, #tpu.memory_space<vmem>>, %arg20: memref<208x32xf32, #tpu.memory_space<vmem>>) attributes {dimension_semantics = [], scalar_prefetch = 0 : i64, scratch_operands = 2 : i64, tpu.core_type = #tpu.core_type<tc>} {
    %c0 = arith.constant 0 : index
    %c0_0 = arith.constant 0 : index
    %0 = vector.load %arg0[%c0, %c0_0] : memref<208x1xf32, #tpu.memory_space<vmem>>, vector<208x1xf32>
    %c0_1 = arith.constant 0 : index
    %c0_2 = arith.constant 0 : index
    %1 = vector.load %arg1[%c0_1, %c0_2] : memref<208x1xf32, #tpu.memory_space<vmem>>, vector<208x1xf32>
    %c0_3 = arith.constant 0 : index
    %c0_4 = arith.constant 0 : index
    %2 = vector.load %arg2[%c0_3, %c0_4] : memref<208x1xf32, #tpu.memory_space<vmem>>, vector<208x1xf32>
    %c0_5 = arith.constant 0 : index
    %c0_6 = arith.constant 0 : index
    %3 = vector.load %arg3[%c0_5, %c0_6] : memref<208x1xf32, #tpu.memory_space<vmem>>, vector<208x1xf32>
    %c0_7 = arith.constant 0 : index
    %c0_8 = arith.constant 0 : index
    %4 = vector.load %arg6[%c0_7, %c0_8] : memref<1x32xf32, #tpu.memory_space<vmem>>, vector<1x32xf32>
    %c0_9 = arith.constant 0 : index
    %c0_10 = arith.constant 0 : index
    %5 = vector.load %arg7[%c0_9, %c0_10] : memref<1x32xf32, #tpu.memory_space<vmem>>, vector<1x32xf32>
    %c0_11 = arith.constant 0 : index
    %c0_12 = arith.constant 0 : index
    %6 = vector.load %arg8[%c0_11, %c0_12] : memref<1x32xf32, #tpu.memory_space<vmem>>, vector<1x32xf32>
    %c0_13 = arith.constant 0 : index
    %c0_14 = arith.constant 0 : index
    %7 = vector.load %arg9[%c0_13, %c0_14] : memref<1x32xf32, #tpu.memory_space<vmem>>, vector<1x32xf32>
    %8 = vector.broadcast %2 : vector<208x1xf32> to vector<208x32xf32>
    %9 = vector.broadcast %4 : vector<1x32xf32> to vector<208x32xf32>
    %10 = arith.mulf %8, %9 : vector<208x32xf32>
    %11 = vector.broadcast %5 : vector<1x32xf32> to vector<208x32xf32>
    %12 = arith.addf %10, %11 : vector<208x32xf32>
    %cst = arith.constant 0.000000e+00 : f32
    %13 = vector.broadcast %cst : f32 to vector<208x32xf32>
    %14 = arith.maximumf %12, %13 : vector<208x32xf32>
    %cst_15 = arith.constant 0.000000e+00 : f32
    %15 = vector.broadcast %cst_15 : f32 to vector<208x32xf32>
    %16 = arith.subf %15, %14 : vector<208x32xf32>
    %17 = math.exp %16 : vector<208x32xf32>
    %18 = vector.broadcast %2 : vector<208x1xf32> to vector<208x32xf32>
    %19 = vector.broadcast %6 : vector<1x32xf32> to vector<208x32xf32>
    %20 = arith.mulf %18, %19 : vector<208x32xf32>
    %21 = vector.broadcast %7 : vector<1x32xf32> to vector<208x32xf32>
    %22 = arith.addf %20, %21 : vector<208x32xf32>
    %cst_16 = arith.constant 0.000000e+00 : f32
    %23 = vector.broadcast %cst_16 : f32 to vector<208x32xf32>
    %24 = arith.maximumf %22, %23 : vector<208x32xf32>
    %cst_17 = arith.constant 0.000000e+00 : f32
    %25 = vector.broadcast %cst_17 : f32 to vector<208x32xf32>
    %26 = arith.subf %25, %24 : vector<208x32xf32>
    %27 = math.exp %26 : vector<208x32xf32>
    %28 = arith.mulf %1, %0 : vector<208x1xf32>
    %cst_18 = arith.constant 1.000000e+00 : f32
    %29 = vector.broadcast %cst_18 : f32 to vector<208x1xf32>
    %30 = arith.subf %29, %1 : vector<208x1xf32>
    %cst_19 = arith.constant 1.000000e+00 : f32
    %31 = vector.broadcast %cst_19 : f32 to vector<208x32xf32>
    %32 = arith.subf %31, %27 : vector<208x32xf32>
    %33 = vector.broadcast %30 : vector<208x1xf32> to vector<208x32xf32>
    %34 = arith.mulf %33, %32 : vector<208x32xf32>
    %35 = vector.broadcast %3 : vector<208x1xf32> to vector<208x32xf32>
    %36 = arith.mulf %34, %35 : vector<208x32xf32>
    %37 = vector.broadcast %28 : vector<208x1xf32> to vector<208x32xf32>
    %38 = arith.addf %37, %36 : vector<208x32xf32>
    %c0_20 = arith.constant 0 : index
    %c0_21 = arith.constant 0 : index
    %39 = vector.load %arg16[%c0_20, %c0_21] : memref<208x32xf32, #tpu.memory_space<vmem>>, vector<208x32xf32>
    tpu.vector_store %arg16[%c0_20, %c0_21], %38 {strides = array<i32>} : memref<208x32xf32, #tpu.memory_space<vmem>>, vector<208x32xf32>,
    %c0_22 = arith.constant 0 : index
    %c0_23 = arith.constant 0 : index
    %40 = vector.load %arg10[%c0_22, %c0_23] : memref<32x128xf32, #tpu.memory_space<vmem>>, vector<32x128xf32>
    %cst_24 = arith.constant dense<0.000000e+00> : vector<208x128xf32>
    %41 = tpu.matmul %38, %40, %cst_24 {dimension_numbers = #tpu.dot_dimension_numbers<[1], [0], [0], [1], [0, 0, 1, 1], [], []>} : vector<208x32xf32>, vector<32x128xf32>, vector<208x128xf32> -> vector<208x128xf32>
    %c0_25 = arith.constant 0 : index
    %c0_26 = arith.constant 0 : index
    %42 = vector.load %arg11[%c0_25, %c0_26] : memref<1x128xf32, #tpu.memory_space<vmem>>, vector<1x128xf32>
    %43 = vector.broadcast %1 : vector<208x1xf32> to vector<208x128xf32>
    %44 = vector.broadcast %42 : vector<1x128xf32> to vector<208x128xf32>
    %45 = arith.mulf %43, %44 : vector<208x128xf32>
    %46 = arith.addf %41, %45 : vector<208x128xf32>
    %c0_27 = arith.constant 0 : index
    %c0_28 = arith.constant 0 : index
    %47 = vector.load %arg13[%c0_27, %c0_28] : memref<1x128xf32, #tpu.memory_space<vmem>>, vector<1x128xf32>
    %48 = vector.broadcast %47 : vector<1x128xf32> to vector<208x128xf32>
    %49 = arith.addf %46, %48 : vector<208x128xf32>
    %c0_29 = arith.constant 0 : index
    %c0_30 = arith.constant 0 : index
    %50 = vector.load %arg19[%c0_29, %c0_30] : memref<208x128xf32, #tpu.memory_space<vmem>>, vector<208x128xf32>
    tpu.vector_store %arg19[%c0_29, %c0_30], %49 {strides = array<i32>} : memref<208x128xf32, #tpu.memory_space<vmem>>, vector<208x128xf32>,
    %c0_31 = arith.constant 0 : index
    %c0_32 = arith.constant 0 : index
    %51 = vector.load %arg20[%c0_31, %c0_32] : memref<208x32xf32, #tpu.memory_space<vmem>>, vector<208x32xf32>
    tpu.vector_store %arg20[%c0_31, %c0_32], %17 {strides = array<i32>} : memref<208x32xf32, #tpu.memory_space<vmem>>, vector<208x32xf32>,
    %c0_33 = arith.constant 0 : index
    %c0_34 = arith.constant 0 : index
    %52 = vector.load %arg12[%c0_33, %c0_34] : memref<32x128xf32, #tpu.memory_space<vmem>>, vector<32x128xf32>
    %cst_35 = arith.constant 0.000000e+00 : f32
    %53 = vector.broadcast %cst_35 : f32 to vector<8x32xf32>
    %cst_36 = arith.constant 0.000000e+00 : f32
    %54 = vector.broadcast %cst_36 : f32 to vector<8x32xf32>
    %c0_37 = arith.constant 0 : index
    %c0_38 = arith.constant 0 : index
    %55 = vector.load %arg20[%c0_37, %c0_38] : memref<208x32xf32, #tpu.memory_space<vmem>>, vector<8x32xf32>
    %c0_39 = arith.constant 0 : index
    %c0_40 = arith.constant 0 : index
    %56 = vector.load %arg19[%c0_39, %c0_40] : memref<208x128xf32, #tpu.memory_space<vmem>>, vector<8x128xf32>
    %57 = arith.mulf %53, %55 : vector<8x32xf32>
    %cst_41 = arith.constant dense<0.000000e+00> : vector<8x128xf32>
    %58 = tpu.matmul %57, %52, %cst_41 {dimension_numbers = #tpu.dot_dimension_numbers<[1], [0], [0], [1], [0, 0, 1, 1], [], []>} : vector<8x32xf32>, vector<32x128xf32>, vector<8x128xf32> -> vector<8x128xf32>
    %59 = arith.addf %56, %58 : vector<8x128xf32>
    %60 = arith.negf %59 : vector<8x128xf32>
    %61 = math.exp %60 : vector<8x128xf32>
    %cst_42 = arith.constant 1.000000e+00 : f32
    %62 = vector.broadcast %cst_42 : f32 to vector<8x128xf32>
    %63 = arith.addf %62, %61 : vector<8x128xf32>
    %64 = arith.divf %62, %63 : vector<8x128xf32>
    %65 = vector.extract_strided_slice %64 {offsets = [0, 0], sizes = [8, 32], strides = [1, 1]} : vector<8x128xf32> to vector<8x32xf32>
    %66 = vector.extract_strided_slice %64 {offsets = [0, 32], sizes = [8, 32], strides = [1, 1]} : vector<8x128xf32> to vector<8x32xf32>
    %67 = vector.extract_strided_slice %64 {offsets = [0, 96], sizes = [8, 32], strides = [1, 1]} : vector<8x128xf32> to vector<8x32xf32>
    %68 = vector.extract_strided_slice %59 {offsets = [0, 64], sizes = [8, 32], strides = [1, 1]} : vector<8x128xf32> to vector<8x32xf32>
    %69 = math.tanh %68 : vector<8x32xf32>
    %70 = arith.mulf %66, %54 : vector<8x32xf32>
    %71 = arith.mulf %65, %69 : vector<8x32xf32>
    %72 = arith.addf %70, %71 : vector<8x32xf32>
    %73 = math.tanh %72 : vector<8x32xf32>
    %74 = arith.mulf %67, %73 : vector<8x32xf32>
    %c8 = arith.constant 8 : index
    %c0_43 = arith.constant 0 : index
    %75 = vector.load %arg20[%c8, %c0_43] : memref<208x32xf32, #tpu.memory_space<vmem>>, vector<8x32xf32>
    %c8_44 = arith.constant 8 : index
    %c0_45 = arith.constant 0 : index
    %76 = vector.load %arg19[%c8_44, %c0_45] : memref<208x128xf32, #tpu.memory_space<vmem>>, vector<8x128xf32>
    %77 = arith.mulf %74, %75 : vector<8x32xf32>
    %cst_46 = arith.constant dense<0.000000e+00> : vector<8x128xf32>
    %78 = tpu.matmul %77, %52, %cst_46 {dimension_numbers = #tpu.dot_dimension_numbers<[1], [0], [0], [1], [0, 0, 1, 1], [], []>} : vector<8x32xf32>, vector<32x128xf32>, vector<8x128xf32> -> vector<8x128xf32>
    %79 = arith.addf %76, %78 : vector<8x128xf32>
    %80 = arith.negf %79 : vector<8x128xf32>
    %81 = math.exp %80 : vector<8x128xf32>
    %cst_47 = arith.constant 1.000000e+00 : f32
    %82 = vector.broadcast %cst_47 : f32 to vector<8x128xf32>
    %83 = arith.addf %82, %81 : vector<8x128xf32>
    %84 = arith.divf %82, %83 : vector<8x128xf32>
    %85 = vector.extract_strided_slice %84 {offsets = [0, 0], sizes = [8, 32], strides = [1, 1]} : vector<8x128xf32> to vector<8x32xf32>
    %86 = vector.extract_strided_slice %84 {offsets = [0, 32], sizes = [8, 32], strides = [1, 1]} : vector<8x128xf32> to vector<8x32xf32>
    %87 = vector.extract_strided_slice %84 {offsets = [0, 96], sizes = [8, 32], strides = [1, 1]} : vector<8x128xf32> to vector<8x32xf32>
    %88 = vector.extract_strided_slice %79 {offsets = [0, 64], sizes = [8, 32], strides = [1, 1]} : vector<8x128xf32> to vector<8x32xf32>
    %89 = math.tanh %88 : vector<8x32xf32>
    %90 = arith.mulf %86, %72 : vector<8x32xf32>
    %91 = arith.mulf %85, %89 : vector<8x32xf32>
    %92 = arith.addf %90, %91 : vector<8x32xf32>
    %93 = math.tanh %92 : vector<8x32xf32>
    %94 = arith.mulf %87, %93 : vector<8x32xf32>
    %c16 = arith.constant 16 : index
    %c0_48 = arith.constant 0 : index
    %95 = vector.load %arg20[%c16, %c0_48] : memref<208x32xf32, #tpu.memory_space<vmem>>, vector<8x32xf32>
    %c16_49 = arith.constant 16 : index
    %c0_50 = arith.constant 0 : index
    %96 = vector.load %arg19[%c16_49, %c0_50] : memref<208x128xf32, #tpu.memory_space<vmem>>, vector<8x128xf32>
    %97 = arith.mulf %94, %95 : vector<8x32xf32>
    %cst_51 = arith.constant dense<0.000000e+00> : vector<8x128xf32>
    %98 = tpu.matmul %97, %52, %cst_51 {dimension_numbers = #tpu.dot_dimension_numbers<[1], [0], [0], [1], [0, 0, 1, 1], [], []>} : vector<8x32xf32>, vector<32x128xf32>, vector<8x128xf32> -> vector<8x128xf32>
    %99 = arith.addf %96, %98 : vector<8x128xf32>
    %100 = arith.negf %99 : vector<8x128xf32>
    %101 = math.exp %100 : vector<8x128xf32>
    %cst_52 = arith.constant 1.000000e+00 : f32
    %102 = vector.broadcast %cst_52 : f32 to vector<8x128xf32>
    %103 = arith.addf %102, %101 : vector<8x128xf32>
    %104 = arith.divf %102, %103 : vector<8x128xf32>
    %105 = vector.extract_strided_slice %104 {offsets = [0, 0], sizes = [8, 32], strides = [1, 1]} : vector<8x128xf32> to vector<8x32xf32>
    %106 = vector.extract_strided_slice %104 {offsets = [0, 32], sizes = [8, 32], strides = [1, 1]} : vector<8x128xf32> to vector<8x32xf32>
    %107 = vector.extract_strided_slice %104 {offsets = [0, 96], sizes = [8, 32], strides = [1, 1]} : vector<8x128xf32> to vector<8x32xf32>
    %108 = vector.extract_strided_slice %99 {offsets = [0, 64], sizes = [8, 32], strides = [1, 1]} : vector<8x128xf32> to vector<8x32xf32>
    %109 = math.tanh %108 : vector<8x32xf32>
    %110 = arith.mulf %106, %92 : vector<8x32xf32>
    %111 = arith.mulf %105, %109 : vector<8x32xf32>
    %112 = arith.addf %110, %111 : vector<8x32xf32>
    %113 = math.tanh %112 : vector<8x32xf32>
    %114 = arith.mulf %107, %113 : vector<8x32xf32>
    %c24 = arith.constant 24 : index
    %c0_53 = arith.constant 0 : index
    %115 = vector.load %arg20[%c24, %c0_53] : memref<208x32xf32, #tpu.memory_space<vmem>>, vector<8x32xf32>
    %c24_54 = arith.constant 24 : index
    %c0_55 = arith.constant 0 : index
    %116 = vector.load %arg19[%c24_54, %c0_55] : memref<208x128xf32, #tpu.memory_space<vmem>>, vector<8x128xf32>
    %117 = arith.mulf %114, %115 : vector<8x32xf32>
    %cst_56 = arith.constant dense<0.000000e+00> : vector<8x128xf32>
    %118 = tpu.matmul %117, %52, %cst_56 {dimension_numbers = #tpu.dot_dimension_numbers<[1], [0], [0], [1], [0, 0, 1, 1], [], []>} : vector<8x32xf32>, vector<32x128xf32>, vector<8x128xf32> -> vector<8x128xf32>
    %119 = arith.addf %116, %118 : vector<8x128xf32>
    %120 = arith.negf %119 : vector<8x128xf32>
    %121 = math.exp %120 : vector<8x128xf32>
    %cst_57 = arith.constant 1.000000e+00 : f32
    %122 = vector.broadcast %cst_57 : f32 to vector<8x128xf32>
    %123 = arith.addf %122, %121 : vector<8x128xf32>
    %124 = arith.divf %122, %123 : vector<8x128xf32>
    %125 = vector.extract_strided_slice %124 {offsets = [0, 0], sizes = [8, 32], strides = [1, 1]} : vector<8x128xf32> to vector<8x32xf32>
    %126 = vector.extract_strided_slice %124 {offsets = [0, 32], sizes = [8, 32], strides = [1, 1]} : vector<8x128xf32> to vector<8x32xf32>
    %127 = vector.extract_strided_slice %124 {offsets = [0, 96], sizes = [8, 32], strides = [1, 1]} : vector<8x128xf32> to vector<8x32xf32>
    %128 = vector.extract_strided_slice %119 {offsets = [0, 64], sizes = [8, 32], strides = [1, 1]} : vector<8x128xf32> to vector<8x32xf32>
    %129 = math.tanh %128 : vector<8x32xf32>
    %130 = arith.mulf %126, %112 : vector<8x32xf32>
    %131 = arith.mulf %125, %129 : vector<8x32xf32>
    %132 = arith.addf %130, %131 : vector<8x32xf32>
    %133 = math.tanh %132 : vector<8x32xf32>
    %134 = arith.mulf %127, %133 : vector<8x32xf32>
    %c32 = arith.constant 32 : index
    %c0_58 = arith.constant 0 : index
    %135 = vector.load %arg20[%c32, %c0_58] : memref<208x32xf32, #tpu.memory_space<vmem>>, vector<8x32xf32>
    %c32_59 = arith.constant 32 : index
    %c0_60 = arith.constant 0 : index
    %136 = vector.load %arg19[%c32_59, %c0_60] : memref<208x128xf32, #tpu.memory_space<vmem>>, vector<8x128xf32>
    %137 = arith.mulf %134, %135 : vector<8x32xf32>
    %cst_61 = arith.constant dense<0.000000e+00> : vector<8x128xf32>
    %138 = tpu.matmul %137, %52, %cst_61 {dimension_numbers = #tpu.dot_dimension_numbers<[1], [0], [0], [1], [0, 0, 1, 1], [], []>} : vector<8x32xf32>, vector<32x128xf32>, vector<8x128xf32> -> vector<8x128xf32>
    %139 = arith.addf %136, %138 : vector<8x128xf32>
    %140 = arith.negf %139 : vector<8x128xf32>
    %141 = math.exp %140 : vector<8x128xf32>
    %cst_62 = arith.constant 1.000000e+00 : f32
    %142 = vector.broadcast %cst_62 : f32 to vector<8x128xf32>
    %143 = arith.addf %142, %141 : vector<8x128xf32>
    %144 = arith.divf %142, %143 : vector<8x128xf32>
    %145 = vector.extract_strided_slice %144 {offsets = [0, 0], sizes = [8, 32], strides = [1, 1]} : vector<8x128xf32> to vector<8x32xf32>
    %146 = vector.extract_strided_slice %144 {offsets = [0, 32], sizes = [8, 32], strides = [1, 1]} : vector<8x128xf32> to vector<8x32xf32>
    %147 = vector.extract_strided_slice %144 {offsets = [0, 96], sizes = [8, 32], strides = [1, 1]} : vector<8x128xf32> to vector<8x32xf32>
    %148 = vector.extract_strided_slice %139 {offsets = [0, 64], sizes = [8, 32], strides = [1, 1]} : vector<8x128xf32> to vector<8x32xf32>
    %149 = math.tanh %148 : vector<8x32xf32>
    %150 = arith.mulf %146, %132 : vector<8x32xf32>
    %151 = arith.mulf %145, %149 : vector<8x32xf32>
    %152 = arith.addf %150, %151 : vector<8x32xf32>
    %153 = math.tanh %152 : vector<8x32xf32>
    %154 = arith.mulf %147, %153 : vector<8x32xf32>
    %c40 = arith.constant 40 : index
    %c0_63 = arith.constant 0 : index
    %155 = vector.load %arg20[%c40, %c0_63] : memref<208x32xf32, #tpu.memory_space<vmem>>, vector<8x32xf32>
    %c40_64 = arith.constant 40 : index
    %c0_65 = arith.constant 0 : index
    %156 = vector.load %arg19[%c40_64, %c0_65] : memref<208x128xf32, #tpu.memory_space<vmem>>, vector<8x128xf32>
    %157 = arith.mulf %154, %155 : vector<8x32xf32>
    %cst_66 = arith.constant dense<0.000000e+00> : vector<8x128xf32>
    %158 = tpu.matmul %157, %52, %cst_66 {dimension_numbers = #tpu.dot_dimension_numbers<[1], [0], [0], [1], [0, 0, 1, 1], [], []>} : vector<8x32xf32>, vector<32x128xf32>, vector<8x128xf32> -> vector<8x128xf32>
    %159 = arith.addf %156, %158 : vector<8x128xf32>
    %160 = arith.negf %159 : vector<8x128xf32>
    %161 = math.exp %160 : vector<8x128xf32>
    %cst_67 = arith.constant 1.000000e+00 : f32
    %162 = vector.broadcast %cst_67 : f32 to vector<8x128xf32>
    %163 = arith.addf %162, %161 : vector<8x128xf32>
    %164 = arith.divf %162, %163 : vector<8x128xf32>
    %165 = vector.extract_strided_slice %164 {offsets = [0, 0], sizes = [8, 32], strides = [1, 1]} : vector<8x128xf32> to vector<8x32xf32>
    %166 = vector.extract_strided_slice %164 {offsets = [0, 32], sizes = [8, 32], strides = [1, 1]} : vector<8x128xf32> to vector<8x32xf32>
    %167 = vector.extract_strided_slice %164 {offsets = [0, 96], sizes = [8, 32], strides = [1, 1]} : vector<8x128xf32> to vector<8x32xf32>
    %168 = vector.extract_strided_slice %159 {offsets = [0, 64], sizes = [8, 32], strides = [1, 1]} : vector<8x128xf32> to vector<8x32xf32>
    %169 = math.tanh %168 : vector<8x32xf32>
    %170 = arith.mulf %166, %152 : vector<8x32xf32>
    %171 = arith.mulf %165, %169 : vector<8x32xf32>
    %172 = arith.addf %170, %171 : vector<8x32xf32>
    %173 = math.tanh %172 : vector<8x32xf32>
    %174 = arith.mulf %167, %173 : vector<8x32xf32>
    %c48 = arith.constant 48 : index
    %c0_68 = arith.constant 0 : index
    %175 = vector.load %arg20[%c48, %c0_68] : memref<208x32xf32, #tpu.memory_space<vmem>>, vector<8x32xf32>
    %c48_69 = arith.constant 48 : index
    %c0_70 = arith.constant 0 : index
    %176 = vector.load %arg19[%c48_69, %c0_70] : memref<208x128xf32, #tpu.memory_space<vmem>>, vector<8x128xf32>
    %177 = arith.mulf %174, %175 : vector<8x32xf32>
    %cst_71 = arith.constant dense<0.000000e+00> : vector<8x128xf32>
    %178 = tpu.matmul %177, %52, %cst_71 {dimension_numbers = #tpu.dot_dimension_numbers<[1], [0], [0], [1], [0, 0, 1, 1], [], []>} : vector<8x32xf32>, vector<32x128xf32>, vector<8x128xf32> -> vector<8x128xf32>
    %179 = arith.addf %176, %178 : vector<8x128xf32>
    %180 = arith.negf %179 : vector<8x128xf32>
    %181 = math.exp %180 : vector<8x128xf32>
    %cst_72 = arith.constant 1.000000e+00 : f32
    %182 = vector.broadcast %cst_72 : f32 to vector<8x128xf32>
    %183 = arith.addf %182, %181 : vector<8x128xf32>
    %184 = arith.divf %182, %183 : vector<8x128xf32>
    %185 = vector.extract_strided_slice %184 {offsets = [0, 0], sizes = [8, 32], strides = [1, 1]} : vector<8x128xf32> to vector<8x32xf32>
    %186 = vector.extract_strided_slice %184 {offsets = [0, 32], sizes = [8, 32], strides = [1, 1]} : vector<8x128xf32> to vector<8x32xf32>
    %187 = vector.extract_strided_slice %184 {offsets = [0, 96], sizes = [8, 32], strides = [1, 1]} : vector<8x128xf32> to vector<8x32xf32>
    %188 = vector.extract_strided_slice %179 {offsets = [0, 64], sizes = [8, 32], strides = [1, 1]} : vector<8x128xf32> to vector<8x32xf32>
    %189 = math.tanh %188 : vector<8x32xf32>
    %190 = arith.mulf %186, %172 : vector<8x32xf32>
    %191 = arith.mulf %185, %189 : vector<8x32xf32>
    %192 = arith.addf %190, %191 : vector<8x32xf32>
    %193 = math.tanh %192 : vector<8x32xf32>
    %194 = arith.mulf %187, %193 : vector<8x32xf32>
    %c56 = arith.constant 56 : index
    %c0_73 = arith.constant 0 : index
    %195 = vector.load %arg20[%c56, %c0_73] : memref<208x32xf32, #tpu.memory_space<vmem>>, vector<8x32xf32>
    %c56_74 = arith.constant 56 : index
    %c0_75 = arith.constant 0 : index
    %196 = vector.load %arg19[%c56_74, %c0_75] : memref<208x128xf32, #tpu.memory_space<vmem>>, vector<8x128xf32>
    %197 = arith.mulf %194, %195 : vector<8x32xf32>
    %cst_76 = arith.constant dense<0.000000e+00> : vector<8x128xf32>
    %198 = tpu.matmul %197, %52, %cst_76 {dimension_numbers = #tpu.dot_dimension_numbers<[1], [0], [0], [1], [0, 0, 1, 1], [], []>} : vector<8x32xf32>, vector<32x128xf32>, vector<8x128xf32> -> vector<8x128xf32>
    %199 = arith.addf %196, %198 : vector<8x128xf32>
    %200 = arith.negf %199 : vector<8x128xf32>
    %201 = math.exp %200 : vector<8x128xf32>
    %cst_77 = arith.constant 1.000000e+00 : f32
    %202 = vector.broadcast %cst_77 : f32 to vector<8x128xf32>
    %203 = arith.addf %202, %201 : vector<8x128xf32>
    %204 = arith.divf %202, %203 : vector<8x128xf32>
    %205 = vector.extract_strided_slice %204 {offsets = [0, 0], sizes = [8, 32], strides = [1, 1]} : vector<8x128xf32> to vector<8x32xf32>
    %206 = vector.extract_strided_slice %204 {offsets = [0, 32], sizes = [8, 32], strides = [1, 1]} : vector<8x128xf32> to vector<8x32xf32>
    %207 = vector.extract_strided_slice %204 {offsets = [0, 96], sizes = [8, 32], strides = [1, 1]} : vector<8x128xf32> to vector<8x32xf32>
    %208 = vector.extract_strided_slice %199 {offsets = [0, 64], sizes = [8, 32], strides = [1, 1]} : vector<8x128xf32> to vector<8x32xf32>
    %209 = math.tanh %208 : vector<8x32xf32>
    %210 = arith.mulf %206, %192 : vector<8x32xf32>
    %211 = arith.mulf %205, %209 : vector<8x32xf32>
    %212 = arith.addf %210, %211 : vector<8x32xf32>
    %213 = math.tanh %212 : vector<8x32xf32>
    %214 = arith.mulf %207, %213 : vector<8x32xf32>
    %c64 = arith.constant 64 : index
    %c0_78 = arith.constant 0 : index
    %215 = vector.load %arg20[%c64, %c0_78] : memref<208x32xf32, #tpu.memory_space<vmem>>, vector<8x32xf32>
    %c64_79 = arith.constant 64 : index
    %c0_80 = arith.constant 0 : index
    %216 = vector.load %arg19[%c64_79, %c0_80] : memref<208x128xf32, #tpu.memory_space<vmem>>, vector<8x128xf32>
    %217 = arith.mulf %214, %215 : vector<8x32xf32>
    %cst_81 = arith.constant dense<0.000000e+00> : vector<8x128xf32>
    %218 = tpu.matmul %217, %52, %cst_81 {dimension_numbers = #tpu.dot_dimension_numbers<[1], [0], [0], [1], [0, 0, 1, 1], [], []>} : vector<8x32xf32>, vector<32x128xf32>, vector<8x128xf32> -> vector<8x128xf32>
    %219 = arith.addf %216, %218 : vector<8x128xf32>
    %220 = arith.negf %219 : vector<8x128xf32>
    %221 = math.exp %220 : vector<8x128xf32>
    %cst_82 = arith.constant 1.000000e+00 : f32
    %222 = vector.broadcast %cst_82 : f32 to vector<8x128xf32>
    %223 = arith.addf %222, %221 : vector<8x128xf32>
    %224 = arith.divf %222, %223 : vector<8x128xf32>
    %225 = vector.extract_strided_slice %224 {offsets = [0, 0], sizes = [8, 32], strides = [1, 1]} : vector<8x128xf32> to vector<8x32xf32>
    %226 = vector.extract_strided_slice %224 {offsets = [0, 32], sizes = [8, 32], strides = [1, 1]} : vector<8x128xf32> to vector<8x32xf32>
    %227 = vector.extract_strided_slice %224 {offsets = [0, 96], sizes = [8, 32], strides = [1, 1]} : vector<8x128xf32> to vector<8x32xf32>
    %228 = vector.extract_strided_slice %219 {offsets = [0, 64], sizes = [8, 32], strides = [1, 1]} : vector<8x128xf32> to vector<8x32xf32>
    %229 = math.tanh %228 : vector<8x32xf32>
    %230 = arith.mulf %226, %212 : vector<8x32xf32>
    %231 = arith.mulf %225, %229 : vector<8x32xf32>
    %232 = arith.addf %230, %231 : vector<8x32xf32>
    %233 = math.tanh %232 : vector<8x32xf32>
    %234 = arith.mulf %227, %233 : vector<8x32xf32>
    %c72 = arith.constant 72 : index
    %c0_83 = arith.constant 0 : index
    %235 = vector.load %arg20[%c72, %c0_83] : memref<208x32xf32, #tpu.memory_space<vmem>>, vector<8x32xf32>
    %c72_84 = arith.constant 72 : index
    %c0_85 = arith.constant 0 : index
    %236 = vector.load %arg19[%c72_84, %c0_85] : memref<208x128xf32, #tpu.memory_space<vmem>>, vector<8x128xf32>
    %237 = arith.mulf %234, %235 : vector<8x32xf32>
    %cst_86 = arith.constant dense<0.000000e+00> : vector<8x128xf32>
    %238 = tpu.matmul %237, %52, %cst_86 {dimension_numbers = #tpu.dot_dimension_numbers<[1], [0], [0], [1], [0, 0, 1, 1], [], []>} : vector<8x32xf32>, vector<32x128xf32>, vector<8x128xf32> -> vector<8x128xf32>
    %239 = arith.addf %236, %238 : vector<8x128xf32>
    %240 = arith.negf %239 : vector<8x128xf32>
    %241 = math.exp %240 : vector<8x128xf32>
    %cst_87 = arith.constant 1.000000e+00 : f32
    %242 = vector.broadcast %cst_87 : f32 to vector<8x128xf32>
    %243 = arith.addf %242, %241 : vector<8x128xf32>
    %244 = arith.divf %242, %243 : vector<8x128xf32>
    %245 = vector.extract_strided_slice %244 {offsets = [0, 0], sizes = [8, 32], strides = [1, 1]} : vector<8x128xf32> to vector<8x32xf32>
    %246 = vector.extract_strided_slice %244 {offsets = [0, 32], sizes = [8, 32], strides = [1, 1]} : vector<8x128xf32> to vector<8x32xf32>
    %247 = vector.extract_strided_slice %244 {offsets = [0, 96], sizes = [8, 32], strides = [1, 1]} : vector<8x128xf32> to vector<8x32xf32>
    %248 = vector.extract_strided_slice %239 {offsets = [0, 64], sizes = [8, 32], strides = [1, 1]} : vector<8x128xf32> to vector<8x32xf32>
    %249 = math.tanh %248 : vector<8x32xf32>
    %250 = arith.mulf %246, %232 : vector<8x32xf32>
    %251 = arith.mulf %245, %249 : vector<8x32xf32>
    %252 = arith.addf %250, %251 : vector<8x32xf32>
    %253 = math.tanh %252 : vector<8x32xf32>
    %254 = arith.mulf %247, %253 : vector<8x32xf32>
    %c80 = arith.constant 80 : index
    %c0_88 = arith.constant 0 : index
    %255 = vector.load %arg20[%c80, %c0_88] : memref<208x32xf32, #tpu.memory_space<vmem>>, vector<8x32xf32>
    %c80_89 = arith.constant 80 : index
    %c0_90 = arith.constant 0 : index
    %256 = vector.load %arg19[%c80_89, %c0_90] : memref<208x128xf32, #tpu.memory_space<vmem>>, vector<8x128xf32>
    %257 = arith.mulf %254, %255 : vector<8x32xf32>
    %cst_91 = arith.constant dense<0.000000e+00> : vector<8x128xf32>
    %258 = tpu.matmul %257, %52, %cst_91 {dimension_numbers = #tpu.dot_dimension_numbers<[1], [0], [0], [1], [0, 0, 1, 1], [], []>} : vector<8x32xf32>, vector<32x128xf32>, vector<8x128xf32> -> vector<8x128xf32>
    %259 = arith.addf %256, %258 : vector<8x128xf32>
    %260 = arith.negf %259 : vector<8x128xf32>
    %261 = math.exp %260 : vector<8x128xf32>
    %cst_92 = arith.constant 1.000000e+00 : f32
    %262 = vector.broadcast %cst_92 : f32 to vector<8x128xf32>
    %263 = arith.addf %262, %261 : vector<8x128xf32>
    %264 = arith.divf %262, %263 : vector<8x128xf32>
    %265 = vector.extract_strided_slice %264 {offsets = [0, 0], sizes = [8, 32], strides = [1, 1]} : vector<8x128xf32> to vector<8x32xf32>
    %266 = vector.extract_strided_slice %264 {offsets = [0, 32], sizes = [8, 32], strides = [1, 1]} : vector<8x128xf32> to vector<8x32xf32>
    %267 = vector.extract_strided_slice %264 {offsets = [0, 96], sizes = [8, 32], strides = [1, 1]} : vector<8x128xf32> to vector<8x32xf32>
    %268 = vector.extract_strided_slice %259 {offsets = [0, 64], sizes = [8, 32], strides = [1, 1]} : vector<8x128xf32> to vector<8x32xf32>
    %269 = math.tanh %268 : vector<8x32xf32>
    %270 = arith.mulf %266, %252 : vector<8x32xf32>
    %271 = arith.mulf %265, %269 : vector<8x32xf32>
    %272 = arith.addf %270, %271 : vector<8x32xf32>
    %273 = math.tanh %272 : vector<8x32xf32>
    %274 = arith.mulf %267, %273 : vector<8x32xf32>
    %c88 = arith.constant 88 : index
    %c0_93 = arith.constant 0 : index
    %275 = vector.load %arg20[%c88, %c0_93] : memref<208x32xf32, #tpu.memory_space<vmem>>, vector<8x32xf32>
    %c88_94 = arith.constant 88 : index
    %c0_95 = arith.constant 0 : index
    %276 = vector.load %arg19[%c88_94, %c0_95] : memref<208x128xf32, #tpu.memory_space<vmem>>, vector<8x128xf32>
    %277 = arith.mulf %274, %275 : vector<8x32xf32>
    %cst_96 = arith.constant dense<0.000000e+00> : vector<8x128xf32>
    %278 = tpu.matmul %277, %52, %cst_96 {dimension_numbers = #tpu.dot_dimension_numbers<[1], [0], [0], [1], [0, 0, 1, 1], [], []>} : vector<8x32xf32>, vector<32x128xf32>, vector<8x128xf32> -> vector<8x128xf32>
    %279 = arith.addf %276, %278 : vector<8x128xf32>
    %280 = arith.negf %279 : vector<8x128xf32>
    %281 = math.exp %280 : vector<8x128xf32>
    %cst_97 = arith.constant 1.000000e+00 : f32
    %282 = vector.broadcast %cst_97 : f32 to vector<8x128xf32>
    %283 = arith.addf %282, %281 : vector<8x128xf32>
    %284 = arith.divf %282, %283 : vector<8x128xf32>
    %285 = vector.extract_strided_slice %284 {offsets = [0, 0], sizes = [8, 32], strides = [1, 1]} : vector<8x128xf32> to vector<8x32xf32>
    %286 = vector.extract_strided_slice %284 {offsets = [0, 32], sizes = [8, 32], strides = [1, 1]} : vector<8x128xf32> to vector<8x32xf32>
    %287 = vector.extract_strided_slice %284 {offsets = [0, 96], sizes = [8, 32], strides = [1, 1]} : vector<8x128xf32> to vector<8x32xf32>
    %288 = vector.extract_strided_slice %279 {offsets = [0, 64], sizes = [8, 32], strides = [1, 1]} : vector<8x128xf32> to vector<8x32xf32>
    %289 = math.tanh %288 : vector<8x32xf32>
    %290 = arith.mulf %286, %272 : vector<8x32xf32>
    %291 = arith.mulf %285, %289 : vector<8x32xf32>
    %292 = arith.addf %290, %291 : vector<8x32xf32>
    %293 = math.tanh %292 : vector<8x32xf32>
    %294 = arith.mulf %287, %293 : vector<8x32xf32>
    %c96 = arith.constant 96 : index
    %c0_98 = arith.constant 0 : index
    %295 = vector.load %arg20[%c96, %c0_98] : memref<208x32xf32, #tpu.memory_space<vmem>>, vector<8x32xf32>
    %c96_99 = arith.constant 96 : index
    %c0_100 = arith.constant 0 : index
    %296 = vector.load %arg19[%c96_99, %c0_100] : memref<208x128xf32, #tpu.memory_space<vmem>>, vector<8x128xf32>
    %297 = arith.mulf %294, %295 : vector<8x32xf32>
    %cst_101 = arith.constant dense<0.000000e+00> : vector<8x128xf32>
    %298 = tpu.matmul %297, %52, %cst_101 {dimension_numbers = #tpu.dot_dimension_numbers<[1], [0], [0], [1], [0, 0, 1, 1], [], []>} : vector<8x32xf32>, vector<32x128xf32>, vector<8x128xf32> -> vector<8x128xf32>
    %299 = arith.addf %296, %298 : vector<8x128xf32>
    %300 = arith.negf %299 : vector<8x128xf32>
    %301 = math.exp %300 : vector<8x128xf32>
    %cst_102 = arith.constant 1.000000e+00 : f32
    %302 = vector.broadcast %cst_102 : f32 to vector<8x128xf32>
    %303 = arith.addf %302, %301 : vector<8x128xf32>
    %304 = arith.divf %302, %303 : vector<8x128xf32>
    %305 = vector.extract_strided_slice %304 {offsets = [0, 0], sizes = [8, 32], strides = [1, 1]} : vector<8x128xf32> to vector<8x32xf32>
    %306 = vector.extract_strided_slice %304 {offsets = [0, 32], sizes = [8, 32], strides = [1, 1]} : vector<8x128xf32> to vector<8x32xf32>
    %307 = vector.extract_strided_slice %304 {offsets = [0, 96], sizes = [8, 32], strides = [1, 1]} : vector<8x128xf32> to vector<8x32xf32>
    %308 = vector.extract_strided_slice %299 {offsets = [0, 64], sizes = [8, 32], strides = [1, 1]} : vector<8x128xf32> to vector<8x32xf32>
    %309 = math.tanh %308 : vector<8x32xf32>
    %310 = arith.mulf %306, %292 : vector<8x32xf32>
    %311 = arith.mulf %305, %309 : vector<8x32xf32>
    %312 = arith.addf %310, %311 : vector<8x32xf32>
    %313 = math.tanh %312 : vector<8x32xf32>
    %314 = arith.mulf %307, %313 : vector<8x32xf32>
    %c104 = arith.constant 104 : index
    %c0_103 = arith.constant 0 : index
    %315 = vector.load %arg20[%c104, %c0_103] : memref<208x32xf32, #tpu.memory_space<vmem>>, vector<8x32xf32>
    %c104_104 = arith.constant 104 : index
    %c0_105 = arith.constant 0 : index
    %316 = vector.load %arg19[%c104_104, %c0_105] : memref<208x128xf32, #tpu.memory_space<vmem>>, vector<8x128xf32>
    %317 = arith.mulf %314, %315 : vector<8x32xf32>
    %cst_106 = arith.constant dense<0.000000e+00> : vector<8x128xf32>
    %318 = tpu.matmul %317, %52, %cst_106 {dimension_numbers = #tpu.dot_dimension_numbers<[1], [0], [0], [1], [0, 0, 1, 1], [], []>} : vector<8x32xf32>, vector<32x128xf32>, vector<8x128xf32> -> vector<8x128xf32>
    %319 = arith.addf %316, %318 : vector<8x128xf32>
    %320 = arith.negf %319 : vector<8x128xf32>
    %321 = math.exp %320 : vector<8x128xf32>
    %cst_107 = arith.constant 1.000000e+00 : f32
    %322 = vector.broadcast %cst_107 : f32 to vector<8x128xf32>
    %323 = arith.addf %322, %321 : vector<8x128xf32>
    %324 = arith.divf %322, %323 : vector<8x128xf32>
    %325 = vector.extract_strided_slice %324 {offsets = [0, 0], sizes = [8, 32], strides = [1, 1]} : vector<8x128xf32> to vector<8x32xf32>
    %326 = vector.extract_strided_slice %324 {offsets = [0, 32], sizes = [8, 32], strides = [1, 1]} : vector<8x128xf32> to vector<8x32xf32>
    %327 = vector.extract_strided_slice %324 {offsets = [0, 96], sizes = [8, 32], strides = [1, 1]} : vector<8x128xf32> to vector<8x32xf32>
    %328 = vector.extract_strided_slice %319 {offsets = [0, 64], sizes = [8, 32], strides = [1, 1]} : vector<8x128xf32> to vector<8x32xf32>
    %329 = math.tanh %328 : vector<8x32xf32>
    %330 = arith.mulf %326, %312 : vector<8x32xf32>
    %331 = arith.mulf %325, %329 : vector<8x32xf32>
    %332 = arith.addf %330, %331 : vector<8x32xf32>
    %333 = math.tanh %332 : vector<8x32xf32>
    %334 = arith.mulf %327, %333 : vector<8x32xf32>
    %c112 = arith.constant 112 : index
    %c0_108 = arith.constant 0 : index
    %335 = vector.load %arg20[%c112, %c0_108] : memref<208x32xf32, #tpu.memory_space<vmem>>, vector<8x32xf32>
    %c112_109 = arith.constant 112 : index
    %c0_110 = arith.constant 0 : index
    %336 = vector.load %arg19[%c112_109, %c0_110] : memref<208x128xf32, #tpu.memory_space<vmem>>, vector<8x128xf32>
    %337 = arith.mulf %334, %335 : vector<8x32xf32>
    %cst_111 = arith.constant dense<0.000000e+00> : vector<8x128xf32>
    %338 = tpu.matmul %337, %52, %cst_111 {dimension_numbers = #tpu.dot_dimension_numbers<[1], [0], [0], [1], [0, 0, 1, 1], [], []>} : vector<8x32xf32>, vector<32x128xf32>, vector<8x128xf32> -> vector<8x128xf32>
    %339 = arith.addf %336, %338 : vector<8x128xf32>
    %340 = arith.negf %339 : vector<8x128xf32>
    %341 = math.exp %340 : vector<8x128xf32>
    %cst_112 = arith.constant 1.000000e+00 : f32
    %342 = vector.broadcast %cst_112 : f32 to vector<8x128xf32>
    %343 = arith.addf %342, %341 : vector<8x128xf32>
    %344 = arith.divf %342, %343 : vector<8x128xf32>
    %345 = vector.extract_strided_slice %344 {offsets = [0, 0], sizes = [8, 32], strides = [1, 1]} : vector<8x128xf32> to vector<8x32xf32>
    %346 = vector.extract_strided_slice %344 {offsets = [0, 32], sizes = [8, 32], strides = [1, 1]} : vector<8x128xf32> to vector<8x32xf32>
    %347 = vector.extract_strided_slice %344 {offsets = [0, 96], sizes = [8, 32], strides = [1, 1]} : vector<8x128xf32> to vector<8x32xf32>
    %348 = vector.extract_strided_slice %339 {offsets = [0, 64], sizes = [8, 32], strides = [1, 1]} : vector<8x128xf32> to vector<8x32xf32>
    %349 = math.tanh %348 : vector<8x32xf32>
    %350 = arith.mulf %346, %332 : vector<8x32xf32>
    %351 = arith.mulf %345, %349 : vector<8x32xf32>
    %352 = arith.addf %350, %351 : vector<8x32xf32>
    %353 = math.tanh %352 : vector<8x32xf32>
    %354 = arith.mulf %347, %353 : vector<8x32xf32>
    %c120 = arith.constant 120 : index
    %c0_113 = arith.constant 0 : index
    %355 = vector.load %arg20[%c120, %c0_113] : memref<208x32xf32, #tpu.memory_space<vmem>>, vector<8x32xf32>
    %c120_114 = arith.constant 120 : index
    %c0_115 = arith.constant 0 : index
    %356 = vector.load %arg19[%c120_114, %c0_115] : memref<208x128xf32, #tpu.memory_space<vmem>>, vector<8x128xf32>
    %357 = arith.mulf %354, %355 : vector<8x32xf32>
    %cst_116 = arith.constant dense<0.000000e+00> : vector<8x128xf32>
    %358 = tpu.matmul %357, %52, %cst_116 {dimension_numbers = #tpu.dot_dimension_numbers<[1], [0], [0], [1], [0, 0, 1, 1], [], []>} : vector<8x32xf32>, vector<32x128xf32>, vector<8x128xf32> -> vector<8x128xf32>
    %359 = arith.addf %356, %358 : vector<8x128xf32>
    %360 = arith.negf %359 : vector<8x128xf32>
    %361 = math.exp %360 : vector<8x128xf32>
    %cst_117 = arith.constant 1.000000e+00 : f32
    %362 = vector.broadcast %cst_117 : f32 to vector<8x128xf32>
    %363 = arith.addf %362, %361 : vector<8x128xf32>
    %364 = arith.divf %362, %363 : vector<8x128xf32>
    %365 = vector.extract_strided_slice %364 {offsets = [0, 0], sizes = [8, 32], strides = [1, 1]} : vector<8x128xf32> to vector<8x32xf32>
    %366 = vector.extract_strided_slice %364 {offsets = [0, 32], sizes = [8, 32], strides = [1, 1]} : vector<8x128xf32> to vector<8x32xf32>
    %367 = vector.extract_strided_slice %364 {offsets = [0, 96], sizes = [8, 32], strides = [1, 1]} : vector<8x128xf32> to vector<8x32xf32>
    %368 = vector.extract_strided_slice %359 {offsets = [0, 64], sizes = [8, 32], strides = [1, 1]} : vector<8x128xf32> to vector<8x32xf32>
    %369 = math.tanh %368 : vector<8x32xf32>
    %370 = arith.mulf %366, %352 : vector<8x32xf32>
    %371 = arith.mulf %365, %369 : vector<8x32xf32>
    %372 = arith.addf %370, %371 : vector<8x32xf32>
    %373 = math.tanh %372 : vector<8x32xf32>
    %374 = arith.mulf %367, %373 : vector<8x32xf32>
    %c128 = arith.constant 128 : index
    %c0_118 = arith.constant 0 : index
    %375 = vector.load %arg20[%c128, %c0_118] : memref<208x32xf32, #tpu.memory_space<vmem>>, vector<8x32xf32>
    %c128_119 = arith.constant 128 : index
    %c0_120 = arith.constant 0 : index
    %376 = vector.load %arg19[%c128_119, %c0_120] : memref<208x128xf32, #tpu.memory_space<vmem>>, vector<8x128xf32>
    %377 = arith.mulf %374, %375 : vector<8x32xf32>
    %cst_121 = arith.constant dense<0.000000e+00> : vector<8x128xf32>
    %378 = tpu.matmul %377, %52, %cst_121 {dimension_numbers = #tpu.dot_dimension_numbers<[1], [0], [0], [1], [0, 0, 1, 1], [], []>} : vector<8x32xf32>, vector<32x128xf32>, vector<8x128xf32> -> vector<8x128xf32>
    %379 = arith.addf %376, %378 : vector<8x128xf32>
    %380 = arith.negf %379 : vector<8x128xf32>
    %381 = math.exp %380 : vector<8x128xf32>
    %cst_122 = arith.constant 1.000000e+00 : f32
    %382 = vector.broadcast %cst_122 : f32 to vector<8x128xf32>
    %383 = arith.addf %382, %381 : vector<8x128xf32>
    %384 = arith.divf %382, %383 : vector<8x128xf32>
    %385 = vector.extract_strided_slice %384 {offsets = [0, 0], sizes = [8, 32], strides = [1, 1]} : vector<8x128xf32> to vector<8x32xf32>
    %386 = vector.extract_strided_slice %384 {offsets = [0, 32], sizes = [8, 32], strides = [1, 1]} : vector<8x128xf32> to vector<8x32xf32>
    %387 = vector.extract_strided_slice %384 {offsets = [0, 96], sizes = [8, 32], strides = [1, 1]} : vector<8x128xf32> to vector<8x32xf32>
    %388 = vector.extract_strided_slice %379 {offsets = [0, 64], sizes = [8, 32], strides = [1, 1]} : vector<8x128xf32> to vector<8x32xf32>
    %389 = math.tanh %388 : vector<8x32xf32>
    %390 = arith.mulf %386, %372 : vector<8x32xf32>
    %391 = arith.mulf %385, %389 : vector<8x32xf32>
    %392 = arith.addf %390, %391 : vector<8x32xf32>
    %393 = math.tanh %392 : vector<8x32xf32>
    %394 = arith.mulf %387, %393 : vector<8x32xf32>
    %c136 = arith.constant 136 : index
    %c0_123 = arith.constant 0 : index
    %395 = vector.load %arg20[%c136, %c0_123] : memref<208x32xf32, #tpu.memory_space<vmem>>, vector<8x32xf32>
    %c136_124 = arith.constant 136 : index
    %c0_125 = arith.constant 0 : index
    %396 = vector.load %arg19[%c136_124, %c0_125] : memref<208x128xf32, #tpu.memory_space<vmem>>, vector<8x128xf32>
    %397 = arith.mulf %394, %395 : vector<8x32xf32>
    %cst_126 = arith.constant dense<0.000000e+00> : vector<8x128xf32>
    %398 = tpu.matmul %397, %52, %cst_126 {dimension_numbers = #tpu.dot_dimension_numbers<[1], [0], [0], [1], [0, 0, 1, 1], [], []>} : vector<8x32xf32>, vector<32x128xf32>, vector<8x128xf32> -> vector<8x128xf32>
    %399 = arith.addf %396, %398 : vector<8x128xf32>
    %400 = arith.negf %399 : vector<8x128xf32>
    %401 = math.exp %400 : vector<8x128xf32>
    %cst_127 = arith.constant 1.000000e+00 : f32
    %402 = vector.broadcast %cst_127 : f32 to vector<8x128xf32>
    %403 = arith.addf %402, %401 : vector<8x128xf32>
    %404 = arith.divf %402, %403 : vector<8x128xf32>
    %405 = vector.extract_strided_slice %404 {offsets = [0, 0], sizes = [8, 32], strides = [1, 1]} : vector<8x128xf32> to vector<8x32xf32>
    %406 = vector.extract_strided_slice %404 {offsets = [0, 32], sizes = [8, 32], strides = [1, 1]} : vector<8x128xf32> to vector<8x32xf32>
    %407 = vector.extract_strided_slice %404 {offsets = [0, 96], sizes = [8, 32], strides = [1, 1]} : vector<8x128xf32> to vector<8x32xf32>
    %408 = vector.extract_strided_slice %399 {offsets = [0, 64], sizes = [8, 32], strides = [1, 1]} : vector<8x128xf32> to vector<8x32xf32>
    %409 = math.tanh %408 : vector<8x32xf32>
    %410 = arith.mulf %406, %392 : vector<8x32xf32>
    %411 = arith.mulf %405, %409 : vector<8x32xf32>
    %412 = arith.addf %410, %411 : vector<8x32xf32>
    %413 = math.tanh %412 : vector<8x32xf32>
    %414 = arith.mulf %407, %413 : vector<8x32xf32>
    %c144 = arith.constant 144 : index
    %c0_128 = arith.constant 0 : index
    %415 = vector.load %arg20[%c144, %c0_128] : memref<208x32xf32, #tpu.memory_space<vmem>>, vector<8x32xf32>
    %c144_129 = arith.constant 144 : index
    %c0_130 = arith.constant 0 : index
    %416 = vector.load %arg19[%c144_129, %c0_130] : memref<208x128xf32, #tpu.memory_space<vmem>>, vector<8x128xf32>
    %417 = arith.mulf %414, %415 : vector<8x32xf32>
    %cst_131 = arith.constant dense<0.000000e+00> : vector<8x128xf32>
    %418 = tpu.matmul %417, %52, %cst_131 {dimension_numbers = #tpu.dot_dimension_numbers<[1], [0], [0], [1], [0, 0, 1, 1], [], []>} : vector<8x32xf32>, vector<32x128xf32>, vector<8x128xf32> -> vector<8x128xf32>
    %419 = arith.addf %416, %418 : vector<8x128xf32>
    %420 = arith.negf %419 : vector<8x128xf32>
    %421 = math.exp %420 : vector<8x128xf32>
    %cst_132 = arith.constant 1.000000e+00 : f32
    %422 = vector.broadcast %cst_132 : f32 to vector<8x128xf32>
    %423 = arith.addf %422, %421 : vector<8x128xf32>
    %424 = arith.divf %422, %423 : vector<8x128xf32>
    %425 = vector.extract_strided_slice %424 {offsets = [0, 0], sizes = [8, 32], strides = [1, 1]} : vector<8x128xf32> to vector<8x32xf32>
    %426 = vector.extract_strided_slice %424 {offsets = [0, 32], sizes = [8, 32], strides = [1, 1]} : vector<8x128xf32> to vector<8x32xf32>
    %427 = vector.extract_strided_slice %424 {offsets = [0, 96], sizes = [8, 32], strides = [1, 1]} : vector<8x128xf32> to vector<8x32xf32>
    %428 = vector.extract_strided_slice %419 {offsets = [0, 64], sizes = [8, 32], strides = [1, 1]} : vector<8x128xf32> to vector<8x32xf32>
    %429 = math.tanh %428 : vector<8x32xf32>
    %430 = arith.mulf %426, %412 : vector<8x32xf32>
    %431 = arith.mulf %425, %429 : vector<8x32xf32>
    %432 = arith.addf %430, %431 : vector<8x32xf32>
    %433 = math.tanh %432 : vector<8x32xf32>
    %434 = arith.mulf %427, %433 : vector<8x32xf32>
    %c152 = arith.constant 152 : index
    %c0_133 = arith.constant 0 : index
    %435 = vector.load %arg20[%c152, %c0_133] : memref<208x32xf32, #tpu.memory_space<vmem>>, vector<8x32xf32>
    %c152_134 = arith.constant 152 : index
    %c0_135 = arith.constant 0 : index
    %436 = vector.load %arg19[%c152_134, %c0_135] : memref<208x128xf32, #tpu.memory_space<vmem>>, vector<8x128xf32>
    %437 = arith.mulf %434, %435 : vector<8x32xf32>
    %cst_136 = arith.constant dense<0.000000e+00> : vector<8x128xf32>
    %438 = tpu.matmul %437, %52, %cst_136 {dimension_numbers = #tpu.dot_dimension_numbers<[1], [0], [0], [1], [0, 0, 1, 1], [], []>} : vector<8x32xf32>, vector<32x128xf32>, vector<8x128xf32> -> vector<8x128xf32>
    %439 = arith.addf %436, %438 : vector<8x128xf32>
    %440 = arith.negf %439 : vector<8x128xf32>
    %441 = math.exp %440 : vector<8x128xf32>
    %cst_137 = arith.constant 1.000000e+00 : f32
    %442 = vector.broadcast %cst_137 : f32 to vector<8x128xf32>
    %443 = arith.addf %442, %441 : vector<8x128xf32>
    %444 = arith.divf %442, %443 : vector<8x128xf32>
    %445 = vector.extract_strided_slice %444 {offsets = [0, 0], sizes = [8, 32], strides = [1, 1]} : vector<8x128xf32> to vector<8x32xf32>
    %446 = vector.extract_strided_slice %444 {offsets = [0, 32], sizes = [8, 32], strides = [1, 1]} : vector<8x128xf32> to vector<8x32xf32>
    %447 = vector.extract_strided_slice %444 {offsets = [0, 96], sizes = [8, 32], strides = [1, 1]} : vector<8x128xf32> to vector<8x32xf32>
    %448 = vector.extract_strided_slice %439 {offsets = [0, 64], sizes = [8, 32], strides = [1, 1]} : vector<8x128xf32> to vector<8x32xf32>
    %449 = math.tanh %448 : vector<8x32xf32>
    %450 = arith.mulf %446, %432 : vector<8x32xf32>
    %451 = arith.mulf %445, %449 : vector<8x32xf32>
    %452 = arith.addf %450, %451 : vector<8x32xf32>
    %453 = math.tanh %452 : vector<8x32xf32>
    %454 = arith.mulf %447, %453 : vector<8x32xf32>
    %c160 = arith.constant 160 : index
    %c0_138 = arith.constant 0 : index
    %455 = vector.load %arg20[%c160, %c0_138] : memref<208x32xf32, #tpu.memory_space<vmem>>, vector<8x32xf32>
    %c160_139 = arith.constant 160 : index
    %c0_140 = arith.constant 0 : index
    %456 = vector.load %arg19[%c160_139, %c0_140] : memref<208x128xf32, #tpu.memory_space<vmem>>, vector<8x128xf32>
    %457 = arith.mulf %454, %455 : vector<8x32xf32>
    %cst_141 = arith.constant dense<0.000000e+00> : vector<8x128xf32>
    %458 = tpu.matmul %457, %52, %cst_141 {dimension_numbers = #tpu.dot_dimension_numbers<[1], [0], [0], [1], [0, 0, 1, 1], [], []>} : vector<8x32xf32>, vector<32x128xf32>, vector<8x128xf32> -> vector<8x128xf32>
    %459 = arith.addf %456, %458 : vector<8x128xf32>
    %460 = arith.negf %459 : vector<8x128xf32>
    %461 = math.exp %460 : vector<8x128xf32>
    %cst_142 = arith.constant 1.000000e+00 : f32
    %462 = vector.broadcast %cst_142 : f32 to vector<8x128xf32>
    %463 = arith.addf %462, %461 : vector<8x128xf32>
    %464 = arith.divf %462, %463 : vector<8x128xf32>
    %465 = vector.extract_strided_slice %464 {offsets = [0, 0], sizes = [8, 32], strides = [1, 1]} : vector<8x128xf32> to vector<8x32xf32>
    %466 = vector.extract_strided_slice %464 {offsets = [0, 32], sizes = [8, 32], strides = [1, 1]} : vector<8x128xf32> to vector<8x32xf32>
    %467 = vector.extract_strided_slice %464 {offsets = [0, 96], sizes = [8, 32], strides = [1, 1]} : vector<8x128xf32> to vector<8x32xf32>
    %468 = vector.extract_strided_slice %459 {offsets = [0, 64], sizes = [8, 32], strides = [1, 1]} : vector<8x128xf32> to vector<8x32xf32>
    %469 = math.tanh %468 : vector<8x32xf32>
    %470 = arith.mulf %466, %452 : vector<8x32xf32>
    %471 = arith.mulf %465, %469 : vector<8x32xf32>
    %472 = arith.addf %470, %471 : vector<8x32xf32>
    %473 = math.tanh %472 : vector<8x32xf32>
    %474 = arith.mulf %467, %473 : vector<8x32xf32>
    %c168 = arith.constant 168 : index
    %c0_143 = arith.constant 0 : index
    %475 = vector.load %arg20[%c168, %c0_143] : memref<208x32xf32, #tpu.memory_space<vmem>>, vector<8x32xf32>
    %c168_144 = arith.constant 168 : index
    %c0_145 = arith.constant 0 : index
    %476 = vector.load %arg19[%c168_144, %c0_145] : memref<208x128xf32, #tpu.memory_space<vmem>>, vector<8x128xf32>
    %477 = arith.mulf %474, %475 : vector<8x32xf32>
    %cst_146 = arith.constant dense<0.000000e+00> : vector<8x128xf32>
    %478 = tpu.matmul %477, %52, %cst_146 {dimension_numbers = #tpu.dot_dimension_numbers<[1], [0], [0], [1], [0, 0, 1, 1], [], []>} : vector<8x32xf32>, vector<32x128xf32>, vector<8x128xf32> -> vector<8x128xf32>
    %479 = arith.addf %476, %478 : vector<8x128xf32>
    %480 = arith.negf %479 : vector<8x128xf32>
    %481 = math.exp %480 : vector<8x128xf32>
    %cst_147 = arith.constant 1.000000e+00 : f32
    %482 = vector.broadcast %cst_147 : f32 to vector<8x128xf32>
    %483 = arith.addf %482, %481 : vector<8x128xf32>
    %484 = arith.divf %482, %483 : vector<8x128xf32>
    %485 = vector.extract_strided_slice %484 {offsets = [0, 0], sizes = [8, 32], strides = [1, 1]} : vector<8x128xf32> to vector<8x32xf32>
    %486 = vector.extract_strided_slice %484 {offsets = [0, 32], sizes = [8, 32], strides = [1, 1]} : vector<8x128xf32> to vector<8x32xf32>
    %487 = vector.extract_strided_slice %484 {offsets = [0, 96], sizes = [8, 32], strides = [1, 1]} : vector<8x128xf32> to vector<8x32xf32>
    %488 = vector.extract_strided_slice %479 {offsets = [0, 64], sizes = [8, 32], strides = [1, 1]} : vector<8x128xf32> to vector<8x32xf32>
    %489 = math.tanh %488 : vector<8x32xf32>
    %490 = arith.mulf %486, %472 : vector<8x32xf32>
    %491 = arith.mulf %485, %489 : vector<8x32xf32>
    %492 = arith.addf %490, %491 : vector<8x32xf32>
    %493 = math.tanh %492 : vector<8x32xf32>
    %494 = arith.mulf %487, %493 : vector<8x32xf32>
    %c176 = arith.constant 176 : index
    %c0_148 = arith.constant 0 : index
    %495 = vector.load %arg20[%c176, %c0_148] : memref<208x32xf32, #tpu.memory_space<vmem>>, vector<8x32xf32>
    %c176_149 = arith.constant 176 : index
    %c0_150 = arith.constant 0 : index
    %496 = vector.load %arg19[%c176_149, %c0_150] : memref<208x128xf32, #tpu.memory_space<vmem>>, vector<8x128xf32>
    %497 = arith.mulf %494, %495 : vector<8x32xf32>
    %cst_151 = arith.constant dense<0.000000e+00> : vector<8x128xf32>
    %498 = tpu.matmul %497, %52, %cst_151 {dimension_numbers = #tpu.dot_dimension_numbers<[1], [0], [0], [1], [0, 0, 1, 1], [], []>} : vector<8x32xf32>, vector<32x128xf32>, vector<8x128xf32> -> vector<8x128xf32>
    %499 = arith.addf %496, %498 : vector<8x128xf32>
    %500 = arith.negf %499 : vector<8x128xf32>
    %501 = math.exp %500 : vector<8x128xf32>
    %cst_152 = arith.constant 1.000000e+00 : f32
    %502 = vector.broadcast %cst_152 : f32 to vector<8x128xf32>
    %503 = arith.addf %502, %501 : vector<8x128xf32>
    %504 = arith.divf %502, %503 : vector<8x128xf32>
    %505 = vector.extract_strided_slice %504 {offsets = [0, 0], sizes = [8, 32], strides = [1, 1]} : vector<8x128xf32> to vector<8x32xf32>
    %506 = vector.extract_strided_slice %504 {offsets = [0, 32], sizes = [8, 32], strides = [1, 1]} : vector<8x128xf32> to vector<8x32xf32>
    %507 = vector.extract_strided_slice %504 {offsets = [0, 96], sizes = [8, 32], strides = [1, 1]} : vector<8x128xf32> to vector<8x32xf32>
    %508 = vector.extract_strided_slice %499 {offsets = [0, 64], sizes = [8, 32], strides = [1, 1]} : vector<8x128xf32> to vector<8x32xf32>
    %509 = math.tanh %508 : vector<8x32xf32>
    %510 = arith.mulf %506, %492 : vector<8x32xf32>
    %511 = arith.mulf %505, %509 : vector<8x32xf32>
    %512 = arith.addf %510, %511 : vector<8x32xf32>
    %513 = math.tanh %512 : vector<8x32xf32>
    %514 = arith.mulf %507, %513 : vector<8x32xf32>
    %c184 = arith.constant 184 : index
    %c0_153 = arith.constant 0 : index
    %515 = vector.load %arg20[%c184, %c0_153] : memref<208x32xf32, #tpu.memory_space<vmem>>, vector<8x32xf32>
    %c184_154 = arith.constant 184 : index
    %c0_155 = arith.constant 0 : index
    %516 = vector.load %arg19[%c184_154, %c0_155] : memref<208x128xf32, #tpu.memory_space<vmem>>, vector<8x128xf32>
    %517 = arith.mulf %514, %515 : vector<8x32xf32>
    %cst_156 = arith.constant dense<0.000000e+00> : vector<8x128xf32>
    %518 = tpu.matmul %517, %52, %cst_156 {dimension_numbers = #tpu.dot_dimension_numbers<[1], [0], [0], [1], [0, 0, 1, 1], [], []>} : vector<8x32xf32>, vector<32x128xf32>, vector<8x128xf32> -> vector<8x128xf32>
    %519 = arith.addf %516, %518 : vector<8x128xf32>
    %520 = arith.negf %519 : vector<8x128xf32>
    %521 = math.exp %520 : vector<8x128xf32>
    %cst_157 = arith.constant 1.000000e+00 : f32
    %522 = vector.broadcast %cst_157 : f32 to vector<8x128xf32>
    %523 = arith.addf %522, %521 : vector<8x128xf32>
    %524 = arith.divf %522, %523 : vector<8x128xf32>
    %525 = vector.extract_strided_slice %524 {offsets = [0, 0], sizes = [8, 32], strides = [1, 1]} : vector<8x128xf32> to vector<8x32xf32>
    %526 = vector.extract_strided_slice %524 {offsets = [0, 32], sizes = [8, 32], strides = [1, 1]} : vector<8x128xf32> to vector<8x32xf32>
    %527 = vector.extract_strided_slice %524 {offsets = [0, 96], sizes = [8, 32], strides = [1, 1]} : vector<8x128xf32> to vector<8x32xf32>
    %528 = vector.extract_strided_slice %519 {offsets = [0, 64], sizes = [8, 32], strides = [1, 1]} : vector<8x128xf32> to vector<8x32xf32>
    %529 = math.tanh %528 : vector<8x32xf32>
    %530 = arith.mulf %526, %512 : vector<8x32xf32>
    %531 = arith.mulf %525, %529 : vector<8x32xf32>
    %532 = arith.addf %530, %531 : vector<8x32xf32>
    %533 = math.tanh %532 : vector<8x32xf32>
    %534 = arith.mulf %527, %533 : vector<8x32xf32>
    %c192 = arith.constant 192 : index
    %c0_158 = arith.constant 0 : index
    %535 = vector.load %arg20[%c192, %c0_158] : memref<208x32xf32, #tpu.memory_space<vmem>>, vector<8x32xf32>
    %c192_159 = arith.constant 192 : index
    %c0_160 = arith.constant 0 : index
    %536 = vector.load %arg19[%c192_159, %c0_160] : memref<208x128xf32, #tpu.memory_space<vmem>>, vector<8x128xf32>
    %537 = arith.mulf %534, %535 : vector<8x32xf32>
    %cst_161 = arith.constant dense<0.000000e+00> : vector<8x128xf32>
    %538 = tpu.matmul %537, %52, %cst_161 {dimension_numbers = #tpu.dot_dimension_numbers<[1], [0], [0], [1], [0, 0, 1, 1], [], []>} : vector<8x32xf32>, vector<32x128xf32>, vector<8x128xf32> -> vector<8x128xf32>
    %539 = arith.addf %536, %538 : vector<8x128xf32>
    %540 = arith.negf %539 : vector<8x128xf32>
    %541 = math.exp %540 : vector<8x128xf32>
    %cst_162 = arith.constant 1.000000e+00 : f32
    %542 = vector.broadcast %cst_162 : f32 to vector<8x128xf32>
    %543 = arith.addf %542, %541 : vector<8x128xf32>
    %544 = arith.divf %542, %543 : vector<8x128xf32>
    %545 = vector.extract_strided_slice %544 {offsets = [0, 0], sizes = [8, 32], strides = [1, 1]} : vector<8x128xf32> to vector<8x32xf32>
    %546 = vector.extract_strided_slice %544 {offsets = [0, 32], sizes = [8, 32], strides = [1, 1]} : vector<8x128xf32> to vector<8x32xf32>
    %547 = vector.extract_strided_slice %544 {offsets = [0, 96], sizes = [8, 32], strides = [1, 1]} : vector<8x128xf32> to vector<8x32xf32>
    %548 = vector.extract_strided_slice %539 {offsets = [0, 64], sizes = [8, 32], strides = [1, 1]} : vector<8x128xf32> to vector<8x32xf32>
    %549 = math.tanh %548 : vector<8x32xf32>
    %550 = arith.mulf %546, %532 : vector<8x32xf32>
    %551 = arith.mulf %545, %549 : vector<8x32xf32>
    %552 = arith.addf %550, %551 : vector<8x32xf32>
    %553 = math.tanh %552 : vector<8x32xf32>
    %554 = arith.mulf %547, %553 : vector<8x32xf32>
    %c200 = arith.constant 200 : index
    %c0_163 = arith.constant 0 : index
    %555 = vector.load %arg20[%c200, %c0_163] : memref<208x32xf32, #tpu.memory_space<vmem>>, vector<8x32xf32>
    %c200_164 = arith.constant 200 : index
    %c0_165 = arith.constant 0 : index
    %556 = vector.load %arg19[%c200_164, %c0_165] : memref<208x128xf32, #tpu.memory_space<vmem>>, vector<8x128xf32>
    %557 = arith.mulf %554, %555 : vector<8x32xf32>
    %cst_166 = arith.constant dense<0.000000e+00> : vector<8x128xf32>
    %558 = tpu.matmul %557, %52, %cst_166 {dimension_numbers = #tpu.dot_dimension_numbers<[1], [0], [0], [1], [0, 0, 1, 1], [], []>} : vector<8x32xf32>, vector<32x128xf32>, vector<8x128xf32> -> vector<8x128xf32>
    %559 = arith.addf %556, %558 : vector<8x128xf32>
    %560 = arith.negf %559 : vector<8x128xf32>
    %561 = math.exp %560 : vector<8x128xf32>
    %cst_167 = arith.constant 1.000000e+00 : f32
    %562 = vector.broadcast %cst_167 : f32 to vector<8x128xf32>
    %563 = arith.addf %562, %561 : vector<8x128xf32>
    %564 = arith.divf %562, %563 : vector<8x128xf32>
    %565 = vector.extract_strided_slice %564 {offsets = [0, 0], sizes = [8, 32], strides = [1, 1]} : vector<8x128xf32> to vector<8x32xf32>
    %566 = vector.extract_strided_slice %564 {offsets = [0, 32], sizes = [8, 32], strides = [1, 1]} : vector<8x128xf32> to vector<8x32xf32>
    %567 = vector.extract_strided_slice %564 {offsets = [0, 96], sizes = [8, 32], strides = [1, 1]} : vector<8x128xf32> to vector<8x32xf32>
    %568 = vector.extract_strided_slice %559 {offsets = [0, 64], sizes = [8, 32], strides = [1, 1]} : vector<8x128xf32> to vector<8x32xf32>
    %569 = math.tanh %568 : vector<8x32xf32>
    %570 = arith.mulf %566, %552 : vector<8x32xf32>
    %571 = arith.mulf %565, %569 : vector<8x32xf32>
    %572 = arith.addf %570, %571 : vector<8x32xf32>
    %573 = math.tanh %572 : vector<8x32xf32>
    %574 = arith.mulf %567, %573 : vector<8x32xf32>
    %c0_168 = arith.constant 0 : index
    %c0_169 = arith.constant 0 : index
    %575 = vector.load %arg14[%c0_168, %c0_169] : memref<1x32xf32, #tpu.memory_space<vmem>>, vector<1x32xf32>
    %576 = vector.broadcast %575 : vector<1x32xf32> to vector<8x32xf32>
    %577 = arith.mulf %574, %576 : vector<8x32xf32>
    %cst_170 = arith.constant dense<0.000000e+00> : vector<8xf32>
    %578 = vector.multi_reduction <add>, %577, %cst_170 [1] : vector<8x32xf32> to vector<8xf32>
    %579 = vector.shape_cast %578 : vector<8xf32> to vector<8x1xf32>
    %c0_171 = arith.constant 0 : index
    %c0_172 = arith.constant 0 : index
    %580 = vector.load %arg15[%c0_171, %c0_172] : memref<1x1xf32, #tpu.memory_space<vmem>>, vector<1x1xf32>
    %581 = vector.broadcast %580 : vector<1x1xf32> to vector<8x1xf32>
    %582 = arith.addf %579, %581 : vector<8x1xf32>
    %c0_173 = arith.constant 0 : index
    %c0_174 = arith.constant 0 : index
    %583 = vector.load %arg4[%c0_173, %c0_174] : memref<8x1xf32, #tpu.memory_space<vmem>>, vector<8x1xf32>
    %c0_175 = arith.constant 0 : index
    %c0_176 = arith.constant 0 : index
    %584 = vector.load %arg5[%c0_175, %c0_176] : memref<8x1xf32, #tpu.memory_space<vmem>>, vector<8x1xf32>
    %cst_177 = arith.constant 0.000000e+00 : f32
    %585 = vector.broadcast %cst_177 : f32 to vector<8x1xf32>
    %586 = arith.subf %585, %582 : vector<8x1xf32>
    %cst_178 = arith.constant 0.000000e+00 : f32
    %587 = vector.broadcast %cst_178 : f32 to vector<8x1xf32>
    %588 = arith.maximumf %586, %587 : vector<8x1xf32>
    %589 = arith.mulf %582, %583 : vector<8x1xf32>
    %590 = arith.subf %582, %589 : vector<8x1xf32>
    %591 = arith.addf %590, %588 : vector<8x1xf32>
    %cst_179 = arith.constant 0.000000e+00 : f32
    %592 = vector.broadcast %cst_179 : f32 to vector<8x1xf32>
    %593 = arith.subf %592, %588 : vector<8x1xf32>
    %594 = math.exp %593 : vector<8x1xf32>
    %cst_180 = arith.constant 0.000000e+00 : f32
    %595 = vector.broadcast %cst_180 : f32 to vector<8x1xf32>
    %596 = arith.subf %595, %582 : vector<8x1xf32>
    %597 = arith.subf %596, %588 : vector<8x1xf32>
    %598 = math.exp %597 : vector<8x1xf32>
    %599 = arith.addf %594, %598 : vector<8x1xf32>
    %600 = math.log %599 : vector<8x1xf32>
    %601 = arith.addf %591, %600 : vector<8x1xf32>
    %602 = arith.mulf %601, %584 : vector<8x1xf32>
    %603 = vector.shape_cast %602 : vector<8x1xf32> to vector<1x8x1xf32>
    %cst_181 = arith.constant dense<0.000000e+00> : vector<1xf32>
    %604 = vector.multi_reduction <add>, %603, %cst_181 [1, 2] : vector<1x8x1xf32> to vector<1xf32>
    %605 = vector.shape_cast %604 : vector<1xf32> to vector<1x1x1xf32>
    %606 = vector.extract %605[0, 0, 0] : f32 from vector<1x1x1xf32>
    %607 = vector.shape_cast %584 : vector<8x1xf32> to vector<1x8x1xf32>
    %cst_182 = arith.constant dense<0.000000e+00> : vector<1xf32>
    %608 = vector.multi_reduction <add>, %607, %cst_182 [1, 2] : vector<1x8x1xf32> to vector<1xf32>
    %609 = vector.shape_cast %608 : vector<1xf32> to vector<1x1x1xf32>
    %610 = vector.extract %609[0, 0, 0] : f32 from vector<1x1x1xf32>
    %cst_183 = arith.constant 9.99999974E-6 : f32
    %611 = arith.addf %610, %cst_183 : f32
    %612 = arith.divf %606, %611 : f32
    %613 = vector.broadcast %612 : f32 to vector<1x1xf32>
    %c0_184 = arith.constant 0 : index
    %c0_185 = arith.constant 0 : index
    %614 = vector.load %arg18[%c0_184, %c0_185] : memref<1x1xf32, #tpu.memory_space<vmem>>, vector<1x1xf32>
    tpu.vector_store %arg18[%c0_184, %c0_185], %613 {strides = array<i32>} : memref<1x1xf32, #tpu.memory_space<vmem>>, vector<1x1xf32>,
    %615 = arith.negf %582 : vector<8x1xf32>
    %616 = math.exp %615 : vector<8x1xf32>
    %cst_186 = arith.constant 1.000000e+00 : f32
    %617 = vector.broadcast %cst_186 : f32 to vector<8x1xf32>
    %618 = arith.addf %617, %616 : vector<8x1xf32>
    %619 = arith.divf %617, %618 : vector<8x1xf32>
    %c0_187 = arith.constant 0 : index
    %c0_188 = arith.constant 0 : index
    %620 = vector.load %arg17[%c0_187, %c0_188] : memref<8x1xf32, #tpu.memory_space<vmem>>, vector<8x1xf32>
    tpu.vector_store %arg17[%c0_187, %c0_188], %619 {strides = array<i32>} : memref<8x1xf32, #tpu.memory_space<vmem>>, vector<8x1xf32>,
    return
  }
}

</mosaic_0001>

<bundles_post_ra>
// kernel: tpu_custom_call.1
= control target key start
LH: loop header
LB: loop body
LE: loop exit
PB: predicated region body
PF: predicated region fallthrough
CT: control target
= control target key end

     0   :  { %s5467_s0 = inlined_call_operand.vmem [shape: f32[208,1], index: 0, kind: input, shape index: {}]   ;;  %s5468_s1 = inlined_call_operand.vmem [shape: f32[208,1], index: 1, kind: input, shape index: {}]   ;;  %s5469_s2 = inlined_call_operand.vmem [shape: f32[208,1], index: 2, kind: input, shape index: {}]   ;;  %s5470_s3 = inlined_call_operand.vmem [shape: f32[208,1], index: 3, kind: input, shape index: {}]   ;;  %s5471_s4 = inlined_call_operand.vmem [shape: f32[8,1], index: 4, kind: input, shape index: {}]   ;;  %s5472_s5 = inlined_call_operand.vmem [shape: f32[8,1], index: 5, kind: input, shape index: {}]   ;;  %s5473_s6 = inlined_call_operand.vmem [shape: f32[1,32], index: 6, kind: input, shape index: {}]   ;;  %s5474_s7 = inlined_call_operand.vmem [shape: f32[1,32], index: 7, kind: input, shape index: {}]   ;;  %s5475_s8 = inlined_call_operand.vmem [shape: f32[1,32], index: 8, kind: input, shape index: {}]   ;;  %s5476_s9 = inlined_call_operand.vmem [shape: f32[1,32], index: 9, kind: input, shape index: {}]   ;;  %s5477_s10 = inlined_call_operand.vmem [shape: f32[32,128], index: 10, kind: input, shape index: {}]   ;;  %s5478_s11 = inlined_call_operand.vmem [shape: f32[1,128], index: 11, kind: input, shape index: {}]   ;;  %s5479_s12 = inlined_call_operand.vmem [shape: f32[32,128], index: 12, kind: input, shape index: {}]   ;;  %s5480_s13 = inlined_call_operand.vmem [shape: f32[1,128], index: 13, kind: input, shape index: {}]   ;;  %s5481_s14 = inlined_call_operand.vmem [shape: f32[1,32], index: 14, kind: input, shape index: {}]   ;;  %s5482_s15 = inlined_call_operand.<no memory space> [shape: f32[1,1], index: 15, kind: input, shape index: {}]   ;;  %s5483_s16 = inlined_call_operand.vmem [shape: f32[208,32], index: 16, kind: output, shape index: {0}]   ;;  %s5484_s17 = inlined_call_operand.vmem [shape: f32[8,1], index: 17, kind: output, shape index: {1}]   ;;  %s5485_s18 = inlined_call_operand.hbm [shape: f32[1,1], index: 18, kind: output, shape index: {2}]  }
   0x1   :  { %5489 = sst [smem:[#allocation8_spill]] %s5467_s0  ;;  %v24_v0 = vstv %s5482_s15 }
   0x2   :  { %5490 = sst [smem:[#allocation9_spill]] %s5468_s1  ;;  %25 = vst [vmem:[#allocation4] sm:$0x1] %v24_v0 }
   0x3   :  { %5491 = sst [smem:[#allocation10_spill]] %s5469_s2 }
   0x4   :  { %v150_v1 = vld [vmem:[%s5470_s3 + $0x68] sm:$0xff]  ;;  %s5492_s1 = sld [smem:[#allocation10_spill]]  ;;  %v4056_v4 = vmov 0  }
   0x5   :  { %3658 = vset.pattern.permute.xlu2 %v4056_v4  ;;  %3657 = vset.pattern.permute.xlu1 %v4056_v4  ;;  %s5493_s2 = sld [smem:[#allocation9_spill]] }
   0x6   :  { %3656 = vset.pattern.permute.xlu0 %v4056_v4  ;;  %922 = vperm.xlu2 %3658, %v150_v1   ;;  %s5494_s25 = sld [smem:[#allocation8_spill]] }
   0xa   :  { %v126_v2 = vld [vmem:[%s5492_s1 + $0x78] sm:$0xff]  ;;  %v124_v3 = vld [vmem:[%s5492_s1 + $0x68] sm:$0xff]  ;;  %v125_v9 = vld [vmem:[%s5492_s1 + $0x70] sm:$0xff] }
   0xb   :  { %v98_v5 = vld [vmem:[%s5493_s2 + $0x68] sm:$0xff]  ;;  %244 = vperm.xlu1 %3657, %v126_v2   ;;  %234 = vperm.xlu0 %3656, %v124_v3  }
   0xc   :  { %v72_v6 = vld [vmem:[%s5494_s25 + $0x68] sm:$0xff]  ;;  %v660_v7 = vsub.f32 1.0, %v98_v5 }
   0xd   :  { %v634_v8 = vmul.f32 %v98_v5, %v72_v6 }
   0xe   :  { %26 = vsyncpa [#allocation6], 0  ;;  %v99_v10 = vld [vmem:[%s5493_s2 + $0x70] sm:$0xff]  ;;  %v111_v12 = vld [vmem:[%s5492_s1] sm:$0xff]  ;;  %vm1167_vm0 = vcmask 261120   ;;  %s4057_s27 = smov 96  }
   0xf   :  { %1078 = vperm.xlu2 %3658, %v634_v8   ;;  %v661_v11 = vsub.f32 1.0, %v99_v10  ;;  %v127_v13 = vld [vmem:[%s5492_s1 + $0x80] sm:$0xff]  ;;  %v100_v14 = vld [vmem:[%s5493_s2 + $0x78] sm:$0xff]  ;;  %v73_v15 = vld [vmem:[%s5494_s25 + $0x70] sm:$0xff]  ;;  %s4058_s20 = smov 64   ;;  %s4059_s21 = smov 32  }
  0x10   :  { %v662_v16 = vsub.f32 1.0, %v100_v14  ;;  %v635_v17 = vmul.f32 %v99_v10, %v73_v15  ;;  %v151_v18 = vld [vmem:[%s5470_s3 + $0x70] sm:$0xff]  ;;  %v101_v19 = vld [vmem:[%s5493_s2 + $0x80] sm:$0xff]  ;;  %v74_v20 = vld [vmem:[%s5494_s25 + $0x78] sm:$0xff]  ;;  %s4060_s22 = smov [#allocation5]  }
  0x11   :  { %v663_v21 = vsub.f32 1.0, %v101_v19  ;;  %v636_v22 = vmul.f32 %v100_v14, %v74_v20  ;;  %v152_v23 = vld [vmem:[%s5470_s3 + $0x78] sm:$0xff]  ;;  %v75_v24 = vld [vmem:[%s5494_s25 + $0x80] sm:$0xff]  ;;  %v112_v32 = vld [vmem:[%s5492_s1 + $0x8] sm:$0xff] }
  0x12   :  { %v85_v25 = vld [vmem:[%s5493_s2] sm:$0xff]  ;;  %v637_v26 = vmul.f32 %v101_v19, %v75_v24  ;;  %v129_v33 = vld [vmem:[%s5492_s1 + $0x90] sm:$0xff]  ;;  %v1197_v36 = vld [vmem:[%s5477_s10 + $0x18] sm:$0xff] }
  0x13   :  { %239 = vperm.xlu0 %3656, %v125_v9   ;;  %766 = vperm.xlu1 %3657, %v660_v7   ;;  %v647_v27 = vsub.f32 1.0, %v85_v25  ;;  %v153_v28 = vld [vmem:[%s5470_s3 + $0x80] sm:$0xff]  ;;  %v1196_v39 = vld [vmem:[%s5477_s10 + $0x10] sm:$0xff]  ;;  %v1195_v42 = vld [vmem:[%s5477_s10 + $0x8] sm:$0xff] }
  0x14   :  { %v59_v29 = vld [vmem:[%s5494_s25] sm:$0xff]  ;;  %3633 = vmatpush.msra.mxu1 %v1197_v36  ;;  %1448 = vmatpush.msra.mxu0 %v1197_v36  ;;  %v4277_v60 = vld [vmem:[%s5479_s12 + $0x18] sm:$0xff]  ;;  %v4284_v0 = vld [vmem:[%s5479_s12 + $0x10] sm:$0xff] }
  0x15   :  { %v621_v30 = vmul.f32 %v85_v25, %v59_v29  ;;  %v137_v31 = vld [vmem:[%s5470_s3] sm:$0xff]  ;;  %3634 = vmatpush.msra.mxu2 %v1197_v36  ;;  %3635 = vmatpush.msra.mxu3 %v1197_v36 }
  0x16   :  { %v4235_v37 = vld [vmem:[%s5473_s6] ss:$0 sm:$0xff]  ;;  %3636 = vmatpush.msra.mxu1 %v1196_v39  ;;  %1449 = vmatpush.msra.mxu0 %v1196_v39 }
  0x17   :  { %169 = vperm.xlu2 %3658, %v111_v12   ;;  %v4245_v40 = vld [vmem:[%s5474_s7] ss:$0 sm:$0xff]  ;;  %3637 = vmatpush.msra.mxu2 %v1196_v39 }
  0x18   :  { %3638 = vmatpush.msra.mxu3 %v1196_v39  ;;  %3639 = vmatpush.msra.mxu1 %v1195_v42  ;;  %v1194_v44 = vld [vmem:[%s5477_s10] sm:$0xff] }
  0x19   :  { %1450 = vmatpush.msra.mxu0 %v1195_v42  ;;  %3640 = vmatpush.msra.mxu2 %v1195_v42  ;;  %v4259_v46 = vld [vmem:[%s5475_s8] ss:$0 sm:$0xff] }
  0x1a   :  { %3641 = vmatpush.msra.mxu3 %v1195_v42  ;;  %3642 = vmatpush.msra.mxu1 %v1194_v44  ;;  %v4264_v48 = vld [vmem:[%s5476_s9] ss:$0 sm:$0xff] }
  0x1b   :  { %249 = vperm.xlu0 %3656, %v127_v13   ;;  %771 = vperm.xlu1 %3657, %v661_v11  }
  0x1c   :  { %1451 = vmatpush.msra.mxu0 %v1194_v44  ;;  %3643 = vmatpush.msra.mxu2 %v1194_v44 }
  0x1d   :  { %3644 = vmatpush.msra.mxu3 %v1194_v44  ;;  %1635 = vmatpush.msrb.mxu1 %v4277_v60 }
  0x1e   :  { %1705 = vmatpush.msrb.mxu2 %v4277_v60 }
  0x1f   :  { %776 = vperm.xlu2 %3658, %v662_v16   ;;  %1775 = vmatpush.msrb.mxu3 %v4277_v60 }
  0x20   :  { %1636 = vmatpush.msrb.mxu1 %v4284_v0  ;;  %1706 = vmatpush.msrb.mxu2 %v4284_v0 }
  0x21   :  { %1776 = vmatpush.msrb.mxu3 %v4284_v0 }
  0x23   :  { %927 = vperm.xlu0 %3656, %v151_v18   ;;  %1083 = vperm.xlu1 %3657, %v635_v17   ;;  %v4298_v18 = vld [vmem:[%s5479_s12 + $0x8] sm:$0xff] }
  0x24   :  { %1637 = vmatpush.msrb.mxu1 %v4298_v18  ;;  %1707 = vmatpush.msrb.mxu2 %v4298_v18 }
  0x25   :  { %1777 = vmatpush.msrb.mxu3 %v4298_v18 }
  0x27   :  { %781 = vperm.xlu2 %3658, %v663_v21  }
  0x2b   :  { %932 = vperm.xlu0 %3656, %v152_v23   ;;  %1088 = vperm.xlu1 %3657, %v636_v22  }
  0x2f   :  { %1093 = vperm.xlu2 %3658, %v637_v26  }
  0x33   :  { %937 = vperm.xlu0 %3656, %v153_v28   ;;  %701 = vperm.xlu1 %3657, %v647_v27  }
  0x37   :  { %1201 = vperm.xlu2 %3658, %v85_v25  }
  0x3b   :  { %857 = vperm.xlu0 %3656, %v137_v31   ;;  %1013 = vperm.xlu1 %3657, %v621_v30  }
  0x43   :  { %174 = vperm.xlu1 %3657, %v112_v32  }
  0x4b   :  { %259 = vperm.xlu1 %3657, %v129_v33  }
  0x60   :  { %v4225_v34 = vpop.permute.xlu2 %922 }
  0x69   :  { %v4227_v35 = vpop.permute.xlu2 %1078 }
  0x71   :  { %v4237_v38 = vpop.permute.xlu2 %169 }
  0x72   :  { %v300_v41 = vmul.f32 %v4235_v37, %v4237_v38  ;;  %v462_v22 = vmul.f32 %v4259_v46, %v4237_v38 }
  0x74   :  { %v329_v43 = vadd.f32 %v4245_v40, %v300_v41  ;;  %v491_v36 = vadd.f32 %v4264_v48, %v462_v22 }
  0x76   :  { %v355_v45 = vmax.f32 %v329_v43, 0.0  ;;  %v4315_v43 = vld [vmem:[%s5479_s12] sm:$0xff] }
  0x77   :  { %1638 = vmatpush.msrb.mxu1 %v4315_v43  ;;  %1708 = vmatpush.msrb.mxu2 %v4315_v43 }
  0x78   :  { %v381_v47 = vsub.f32 0.0, %v355_v45  ;;  %1778 = vmatpush.msrb.mxu3 %v4315_v43 }
  0x79   :  { %v777_v38 = vpop.permute.xlu2 %776 }
  0x7a   :  { %v407_v49 = vmul.f32 1.442695, %v381_v47 }
  0x7c   :  { %3667 = vpow2.f32 %v407_v49 }
  0x7d   :  { %v245_v50 = vpop.permute.xlu1 %244  ;;  %v235_v51 = vpop.permute.xlu0 %234 }
  0x7e   :  { %v315_v52 = vmul.f32 %v4235_v37, %v245_v50  ;;  %v477_v53 = vmul.f32 %v4259_v46, %v245_v50  ;;  %v313_v54 = vmul.f32 %v4235_v37, %v235_v51  ;;  %v475_v55 = vmul.f32 %v4259_v46, %v235_v51 }
  0x7f   :  { %v517_v50 = vmax.f32 %v491_v36, 0.0 }
  0x80   :  { %v344_v56 = vadd.f32 %v4245_v40, %v315_v52  ;;  %v506_v57 = vadd.f32 %v4264_v48, %v477_v53  ;;  %v342_v58 = vadd.f32 %v4245_v40, %v313_v54  ;;  %v504_v59 = vadd.f32 %v4264_v48, %v475_v55 }
  0x82   :  { %v370_v61 = vmax.f32 %v344_v56, 0.0  ;;  %v368_v62 = vmax.f32 %v342_v58, 0.0  ;;  %v530_v63 = vmax.f32 %v504_v59, 0.0  ;;  %v532_v1 = vmax.f32 %v506_v57, 0.0  ;;  %v3668_v5 = vpop.eup %3667 }
  0x83   :  { %1587 = vst.msk [vmem:[#allocation3] sm:$0xff] %vm1167_vm0, %v3668_v5 }
  0x84   :  { %v396_v2 = vsub.f32 0.0, %v370_v61  ;;  %v394_v3 = vsub.f32 0.0, %v368_v62  ;;  %v556_v4 = vsub.f32 0.0, %v530_v63  ;;  %v558_v12 = vsub.f32 0.0, %v532_v1  ;;  %v782_v1 = vpop.permute.xlu2 %781 }
  0x85   :  { %v240_v6 = vpop.permute.xlu0 %239  ;;  %v767_v7 = vpop.permute.xlu1 %766  ;;  %v543_v62 = vsub.f32 0.0, %v517_v50  ;;  %v4377_v50 = vld [vmem:[%s5493_s2 + $0x88] sm:$0xff] }
  0x86   :  { %v437_v8 = vmul.f32 1.442695, %v396_v2  ;;  %v433_v9 = vmul.f32 1.442695, %v394_v3  ;;  %v314_v10 = vmul.f32 %v4235_v37, %v240_v6  ;;  %v476_v11 = vmul.f32 %v4259_v46, %v240_v6 }
  0x87   :  { %v595_v13 = vmul.f32 1.442695, %v556_v4  ;;  %v599_v19 = vmul.f32 1.442695, %v558_v12  ;;  %v569_v5 = vmul.f32 1.442695, %v543_v62 }
  0x88   :  { %3669 = vpow2.f32 %v437_v8  ;;  %v343_v14 = vadd.f32 %v4245_v40, %v314_v10  ;;  %v505_v15 = vadd.f32 %v4264_v48, %v476_v11 }
  0x89   :  { %3671 = vpow2.f32 %v433_v9 }
  0x8a   :  { %v369_v16 = vmax.f32 %v343_v14, 0.0  ;;  %v531_v17 = vmax.f32 %v505_v15, 0.0  ;;  %3673 = vpow2.f32 %v595_v13 }
  0x8b   :  { %3675 = vpow2.f32 %v599_v19 }
  0x8c   :  { %v395_v20 = vsub.f32 0.0, %v369_v16  ;;  %v557_v21 = vsub.f32 0.0, %v531_v17  ;;  %v1094_v16 = vpop.permute.xlu2 %1093 }
  0x8d   :  { %v250_v23 = vpop.permute.xlu0 %249  ;;  %v772_v24 = vpop.permute.xlu1 %771 }
  0x8e   :  { %v3670_v25 = vpop.eup %3669  ;;  %v435_v26 = vmul.f32 1.442695, %v395_v20  ;;  %v316_v27 = vmul.f32 %v4235_v37, %v250_v23  ;;  %v478_v28 = vmul.f32 %v4259_v46, %v250_v23  ;;  %v597_v29 = vmul.f32 1.442695, %v557_v21 }
  0x8f   :  { %v3672_v30 = vpop.eup %3671  ;;  %1602 = vst.msk [vmem:[#allocation3 + $0x78] sm:$0xff] %vm1167_vm0, %v3670_v25 }
  0x90   :  { %1600 = vst.msk [vmem:[#allocation3 + $0x68] sm:$0xff] %vm1167_vm0, %v3672_v30  ;;  %3677 = vpow2.f32 %v435_v26  ;;  %v345_v31 = vadd.f32 %v4245_v40, %v316_v27  ;;  %v507_v32 = vadd.f32 %v4264_v48, %v478_v28  ;;  %v3674_v33 = vpop.eup %3673  ;;  %v1617_v26 = vld [vmem:[#allocation3] sm:$0xff] }
  0x91   :  { %3679 = vpow2.f32 %v597_v29  ;;  %v686_v39 = vsub.f32 1.0, %v3674_v33  ;;  %v3676_v49 = vpop.eup %3675  ;;  %v1619_v29 = vmul.f32 0.0, %v1617_v26 }
  0x92   :  { %v371_v41 = vmax.f32 %v345_v31, 0.0  ;;  %v533_v42 = vmax.f32 %v507_v32, 0.0  ;;  %v688_v58 = vsub.f32 1.0, %v3676_v49  ;;  %v76_v49 = vld [vmem:[%s5494_s25 + $0x88] sm:$0xff] }
  0x93   :  { %v842_v44 = vmul.f32 %v767_v7, %v686_v39 }
  0x94   :  { %v397_v45 = vsub.f32 0.0, %v371_v41  ;;  %v559_v47 = vsub.f32 0.0, %v533_v42  ;;  %v1202_v62 = vpop.permute.xlu2 %1201 }
  0x95   :  { %v928_v51 = vpop.permute.xlu0 %927  ;;  %v1084_v52 = vpop.permute.xlu1 %1083  ;;  %v998_v54 = vmul.f32 %v4225_v34, %v842_v44  ;;  %v844_v34 = vmul.f32 %v777_v38, %v688_v58 }
  0x96   :  { %v3678_v53 = vpop.eup %3677  ;;  %v439_v55 = vmul.f32 1.442695, %v397_v45  ;;  %v601_v56 = vmul.f32 1.442695, %v559_v47 }
  0x97   :  { %v3680_v57 = vpop.eup %3679  ;;  %1601 = vst.msk [vmem:[#allocation3 + $0x70] sm:$0xff] %vm1167_vm0, %v3678_v53  ;;  %v1154_v61 = vadd.f32 %v4227_v35, %v998_v54  ;;  %v156_v53 = vld [vmem:[%s5470_s3 + $0x98] sm:$0xff]  ;;  %v157_v54 = vld [vmem:[%s5470_s3 + $0xa0] sm:$0xff] }
  0x98   :  { %3681 = vpow2.f32 %v439_v55  ;;  %v687_v59 = vsub.f32 1.0, %v3680_v57  ;;  %v138_v55 = vld [vmem:[%s5470_s3 + $0x8] sm:$0xff] }
  0x99   :  { %3683 = vpow2.f32 %v601_v56  ;;  %1181 = vst.msk [vmem:[%s5483_s16 + $0x68] sm:$0xff] %vm1167_vm0, %v1154_v61  ;;  %3567 = vmatmul.msk.f32.vlgmr.msra.gmra.mxu1 %vm1167_vm0, %v1154_v61  ;;  %v4395_v56 = vld [vmem:[%s5493_s2 + $0x8] sm:$0xff]  ;;  %v4407_v61 = vld [vmem:[%s5478_s11] ss:$0 sm:$0xff] }
  0x9a   :  { %v843_v63 = vmul.f32 %v772_v24, %v687_v59  ;;  %1845 = vmatpush.msra.mxu1 %v4277_v60  ;;  %3685 = vpow2.f32 %v569_v5 }
  0x9c   :  { %v999_v2 = vmul.f32 %v928_v51, %v843_v63  ;;  %1846 = vmatpush.msra.mxu1 %v4284_v0  ;;  %v638_v51 = vmul.f32 %v4377_v50, %v76_v49  ;;  %v1332_v63 = vmul.f32 %v4407_v61, %v1202_v62 }
  0x9d   :  { %v933_v3 = vpop.permute.xlu0 %932  ;;  %v1089_v4 = vpop.permute.xlu1 %1088 }
  0x9e   :  { %v3682_v35 = vpop.eup %3681  ;;  %v1155_v6 = vadd.f32 %v1084_v52, %v999_v2  ;;  %v1000_v7 = vmul.f32 %v933_v3, %v844_v34  ;;  %1847 = vmatpush.msra.mxu1 %v4298_v18  ;;  %v155_v52 = vld [vmem:[%s5470_s3 + $0x90] sm:$0xff]  ;;  %v4415_v3 = vld [vmem:[%s5480_s13] ss:$0 sm:$0xff] }
  0x9f   :  { %v3684_v8 = vpop.eup %3683  ;;  %1603 = vst.msk [vmem:[#allocation3 + $0x80] sm:$0xff] %vm1167_vm0, %v3682_v35 }
  0xa0   :  { %1182 = vst.msk [vmem:[%s5483_s16 + $0x70] sm:$0xff] %vm1167_vm0, %v1155_v6  ;;  %v1156_v9 = vadd.f32 %v1089_v4, %v1000_v7  ;;  %v689_v10 = vsub.f32 1.0, %v3684_v8  ;;  %1848 = vmatpush.msra.mxu1 %v4315_v43  ;;  %v3686_v15 = vpop.eup %3685  ;;  %v128_v7 = vld [vmem:[%s5492_s1 + $0x88] sm:$0xff]  ;;  %v130_v8 = vld [vmem:[%s5492_s1 + $0x98] sm:$0xff] }
  0xa1   :  { %3568 = vmatmul.msk.f32.gmra.mxu1 %vm1167_vm0, %v1155_v6  ;;  %v673_v19 = vsub.f32 1.0, %v3686_v15 }
  0xa2   :  { %1183 = vst.msk [vmem:[%s5483_s16 + $0x78] sm:$0xff] %vm1167_vm0, %v1156_v9  ;;  %v845_v11 = vmul.f32 %v782_v1, %v689_v10  ;;  %v4431_v10 = vld [vmem:[%s5493_s2 + $0x90] sm:$0xff] }
  0xa5   :  { %v938_v12 = vpop.permute.xlu0 %937  ;;  %v702_v13 = vpop.permute.xlu1 %701 }
  0xa6   :  { %v1001_v14 = vmul.f32 %v938_v12, %v845_v11  ;;  %v829_v20 = vmul.f32 %v702_v13, %v673_v19  ;;  %v665_v11 = vsub.f32 1.0, %v4431_v10  ;;  %v4437_v12 = vld [vmem:[%s5493_s2 + $0x98] sm:$0xff] }
  0xa7   :  { %v666_v13 = vsub.f32 1.0, %v4437_v12 }
  0xa8   :  { %v1157_v17 = vadd.f32 %v1094_v16, %v1001_v14  ;;  %v4443_v14 = vld [vmem:[%s5493_s2 + $0xa0] sm:$0xff]  ;;  %v648_v16 = vsub.f32 1.0, %v4395_v56 }
  0xa9   :  { %3569 = vmatmul.msk.f32.gmra.mxu1 %vm1167_vm0, %v1156_v9  ;;  %v154_v9 = vld [vmem:[%s5470_s3 + $0x88] sm:$0xff]  ;;  %v667_v15 = vsub.f32 1.0, %v4443_v14 }
  0xaa   :  { %1184 = vst.msk [vmem:[%s5483_s16 + $0x80] sm:$0xff] %vm1167_vm0, %v1157_v17 }
  0xad   :  { %v858_v21 = vpop.permute.xlu0 %857  ;;  %v1014_v22 = vpop.permute.xlu1 %1013 }
  0xae   :  { %v985_v23 = vmul.f32 %v858_v21, %v829_v20 }
  0xb0   :  { %v1141_v24 = vadd.f32 %v1014_v22, %v985_v23 }
  0xb1   :  { %3570 = vmatmul.msk.f32.gmra.mxu1 %vm1167_vm0, %v1157_v17 }
  0xb2   :  { %1168 = vst.msk [vmem:[%s5483_s16] sm:$0xff] %vm1167_vm0, %v1141_v24  ;;  %3554 = vmatmul.msk.f32.vlgmr.msra.gmra.mxu0 %vm1167_vm0, %v1141_v24 }
  0xb5   :  { %v4353_v25 = vpop.permute.xlu1 %174 }
  0xb6   :  { %v301_v27 = vmul.f32 %v4235_v37, %v4353_v25 }
  0xb8   :  { %v330_v28 = vadd.f32 %v4245_v40, %v301_v27 }
  0xb9   :  { %3580 = vmatmul.msk.f32.vlgmr.msrb.gmra.mxu1 %vm1167_vm0, %v1619_v29 }
  0xba   :  { %v356_v30 = vmax.f32 %v330_v28, 0.0  ;;  %2055 = vmatpush.msrb.mxu1 %v4277_v60 }
  0xbc   :  { %v382_v31 = vsub.f32 0.0, %v356_v30  ;;  %2056 = vmatpush.msrb.mxu1 %v4284_v0 }
  0xbd   :  { %v4360_v32 = vpop.permute.xlu1 %259 }
  0xbe   :  { %v409_v33 = vmul.f32 1.442695, %v382_v31  ;;  %v318_v36 = vmul.f32 %v4235_v37, %v4360_v32  ;;  %2057 = vmatpush.msrb.mxu1 %v4298_v18 }
  0xc0   :  { %3687 = vpow2.f32 %v409_v33  ;;  %v347_v38 = vadd.f32 %v4245_v40, %v318_v36  ;;  %2058 = vmatpush.msrb.mxu1 %v4315_v43 }
  0xc2   :  { %v373_v39 = vmax.f32 %v347_v38, 0.0 }
  0xc4   :  { %v399_v41 = vsub.f32 0.0, %v373_v39 }
  0xc6   :  { %v3688_v42 = vpop.eup %3687  ;;  %v443_v44 = vmul.f32 1.442695, %v399_v41 }
  0xc7   :  { %1588 = vst.msk [vmem:[#allocation3 + $0x8] sm:$0xff] %vm1167_vm0, %v3688_v42 }
  0xc8   :  { %3689 = vpow2.f32 %v443_v44 }
  0xce   :  { %v3690_v45 = vpop.eup %3689  ;;  %v1681_v47 = vld [vmem:[#allocation3 + $0x8] sm:$0xff] }
  0xcf   :  { %1605 = vst.msk [vmem:[#allocation3 + $0x90] sm:$0xff] %vm1167_vm0, %v3690_v45  ;;  %1684 = vrot.lane.b32.xlu1 %v1681_v47, %s4057_s27 }
  0xd7   :  { %1098 = vperm.xlu1 %3657, %v638_v51  }
  0xdf   :  { %947 = vperm.xlu1 %3657, %v155_v52  }
  0xe7   :  { %952 = vperm.xlu1 %3657, %v156_v53  }
  0xef   :  { %957 = vperm.xlu1 %3657, %v157_v54  }
  0xf7   :  { %862 = vperm.xlu1 %3657, %v138_v55  }
  0xff   :  { %1206 = vperm.xlu1 %3657, %v4395_v56  }
 0x116   :  { %v4398_v57 = vpop.f32.mrf.mxu1 }
 0x11e   :  { %v4400_v58 = vpop.f32.mrf.mxu1 }
 0x126   :  { %v4402_v59 = vpop.f32.mrf.mxu1 }
 0x12e   :  { %v4410_v34 = vpop.f32.mrf.mxu1 }
 0x12f   :  { %v1453_v1 = vpop.f32.mrf.mxu0 }
 0x130   :  { %v1454_v2 = vadd.f32 %v1453_v1, %v1332_v63 }
 0x132   :  { %v1535_v4 = vadd.f32 %v4415_v3, %v1454_v2 }
 0x136   :  { %v1640_v5 = vpop.f32.mrf.mxu1 }
 0x137   :  { %v1643_v35 = vadd.f32 %v1640_v5, %v1535_v4  ;;  %v664_v5 = vsub.f32 1.0, %v4377_v50  ;;  %v79_v50 = vld [vmem:[%s5494_s25 + $0xa0] sm:$0xff] }
 0x139   :  { %3691 = vtanh.f32 %v1643_v35  ;;  %v3581_v17 = vmul.f32 -1.442695, %v1643_v35  ;;  %v131_v35 = vld [vmem:[%s5492_s1 + $0xa0] sm:$0xff] }
 0x13b   :  { %3693 = vpow2.f32 %v3581_v17  ;;  %v480_v17 = vmul.f32 %v4259_v46, %v4360_v32 }
 0x13f   :  { %v3692_v6 = vpop.eup %3691 }
 0x140   :  { %1666 = vrot.lane.b32.xlu0 %v3692_v6, %s4058_s20  ;;  %v77_v6 = vld [vmem:[%s5494_s25 + $0x90] sm:$0xff] }
 0x141   :  { %v3694_v19 = vpop.eup %3693 }
 0x142   :  { %v1647_v20 = vadd.f32 1.0, %v3694_v19 }
 0x144   :  { %3695 = vrcp.f32 %v1647_v20  ;;  %v1659_v27 = vand.u32 2147483648, %v1647_v20  ;;  %vm1653_vm2 = vweird.f32 %v1647_v20  ;;  %v1657_v28 = vand.u32 2147483647, %v1647_v20 }
 0x146   :  { %v1660_v30 = vor.u32 1.1754944e-38, %v1659_v27  ;;  %vm1658_vm4 = vcmp.eq.f32.partialorder %v1657_v28, 8.507059e+37 }
 0x148   :  { %254 = vperm.xlu0 %3656, %v128_v7   ;;  %v639_v7 = vmul.f32 %v4431_v10, %v77_v6 }
 0x14a   :  { %v3696_v21 = vpop.eup %3695 }
 0x14b   :  { %v1649_v22 = vmul.f32 %v3696_v21, %v1647_v20  ;;  %vm1654_vm1 = vweird.f32 %v3696_v21  ;;  %v509_v20 = vadd.f32 %v4264_v48, %v480_v17 }
 0x14c   :  { %vm1655_vm3 = vmor %vm1653_vm2, %vm1654_vm1 }
 0x14d   :  { %v1650_v23 = vsub.f32 1.0, %v1649_v22  ;;  %v1685_v22 = vpop.permute.xlu1 %1684 }
 0x14f   :  { %v1651_v24 = vmul.f32 %v3696_v21, %v1650_v23 }
 0x150   :  { %264 = vperm.xlu0 %3656, %v130_v8   ;;  %v78_v8 = vld [vmem:[%s5494_s25 + $0x98] sm:$0xff] }
 0x151   :  { %v1652_v26 = vadd.f32 %v3696_v21, %v1651_v24 }
 0x153   :  { %v1656_v29 = vsel %vm1655_vm3, %v3696_v21, %v1652_v26  ;;  %v535_v21 = vmax.f32 %v509_v20, 0.0 }
 0x154   :  { %v1661_v33 = vsel %vm1658_vm4, %v1660_v30, %v1656_v29 }
 0x155   :  { %v1664_v63 = vmul.f32 0.0, %v1661_v33  ;;  %v561_v26 = vsub.f32 0.0, %v535_v21  ;;  %v1099_v32 = vpop.permute.xlu1 %1098  ;;  %v158_v21 = vld [vmem:[%s5470_s3 + $0xa8] sm:$0xff] }
 0x158   :  { %942 = vperm.xlu0 %3656, %v154_v9   ;;  %v640_v9 = vmul.f32 %v4437_v12, %v78_v8 }
 0x160   :  { %791 = vperm.xlu0 %3656, %v665_v11   ;;  %v641_v11 = vmul.f32 %v4443_v14, %v79_v50 }
 0x168   :  { %796 = vperm.xlu0 %3656, %v666_v13   ;;  %v60_v13 = vld [vmem:[%s5494_s25 + $0x8] sm:$0xff] }
 0x169   :  { %v622_v10 = vmul.f32 %v4395_v56, %v60_v13 }
 0x170   :  { %801 = vperm.xlu0 %3656, %v667_v15  }
 0x178   :  { %706 = vperm.xlu0 %3656, %v648_v16  }
 0x1b2   :  { %v1667_v31 = vpop.permute.xlu0 %1666 }
 0x1b3   :  { %v1669_v36 = vmul.f32 %v1667_v31, %v1661_v33 }
 0x1b5   :  { %1671 = vrot.lane.b32.xlu2 %v1669_v36, %s4059_s21  ;;  %v605_v36 = vmul.f32 1.442695, %v561_v26 }
 0x1ba   :  { %v255_v38 = vpop.permute.xlu0 %254 }
 0x1bb   :  { %v317_v39 = vmul.f32 %v4235_v37, %v255_v38  ;;  %v479_v15 = vmul.f32 %v4259_v46, %v255_v38 }
 0x1bd   :  { %v346_v41 = vadd.f32 %v4245_v40, %v317_v39  ;;  %v508_v16 = vadd.f32 %v4264_v48, %v479_v15 }
 0x1bf   :  { %v372_v42 = vmax.f32 %v346_v41, 0.0  ;;  %v534_v12 = vmax.f32 %v508_v16, 0.0 }
 0x1c1   :  { %v398_v44 = vsub.f32 0.0, %v372_v42  ;;  %v560_v19 = vsub.f32 0.0, %v534_v12 }
 0x1c2   :  { %v265_v45 = vpop.permute.xlu0 %264 }
 0x1c3   :  { %v441_v47 = vmul.f32 1.442695, %v398_v44  ;;  %v319_v49 = vmul.f32 %v4235_v37, %v265_v45  ;;  %v603_v14 = vmul.f32 1.442695, %v560_v19  ;;  %v481_v23 = vmul.f32 %v4259_v46, %v265_v45  ;;  %v113_v45 = vld [vmem:[%s5492_s1 + $0x10] sm:$0xff] }
 0x1c5   :  { %3697 = vpow2.f32 %v441_v47  ;;  %v348_v51 = vadd.f32 %v4245_v40, %v319_v49  ;;  %v510_v56 = vadd.f32 %v4264_v48, %v481_v23 }
 0x1c7   :  { %v374_v52 = vmax.f32 %v348_v51, 0.0  ;;  %v536_v31 = vmax.f32 %v510_v56, 0.0 }
 0x1c9   :  { %v400_v53 = vsub.f32 0.0, %v374_v52  ;;  %v562_v39 = vsub.f32 0.0, %v536_v31 }
 0x1ca   :  { %v943_v24 = vpop.permute.xlu0 %942 }
 0x1cb   :  { %v3698_v54 = vpop.eup %3697  ;;  %v445_v55 = vmul.f32 1.442695, %v400_v53  ;;  %v607_v49 = vmul.f32 1.442695, %v562_v39 }
 0x1cc   :  { %1604 = vst.msk [vmem:[#allocation3 + $0x88] sm:$0xff] %vm1167_vm0, %v3698_v54  ;;  %v948_v54 = vpop.permute.xlu1 %947 }
 0x1cd   :  { %3699 = vpow2.f32 %v445_v55 }
 0x1d2   :  { %v792_v44 = vpop.permute.xlu0 %791 }
 0x1d3   :  { %v3700_v62 = vpop.eup %3699 }
 0x1d4   :  { %1606 = vst.msk [vmem:[#allocation3 + $0x98] sm:$0xff] %vm1167_vm0, %v3700_v62 }
 0x20f   :  { %v1672_v1 = vpop.permute.xlu2 %1671 }
 0x210   :  { %v4454_v2 = vadd.f32 %v1672_v1, %v1664_v63  ;;  %v133_v1 = vld [vmem:[%s5492_s1 + $0xb0] sm:$0xff] }
 0x212   :  { %3701 = vtanh.f32 %v4454_v2 }
 0x213   :  { %3703 = vpow2.f32 %v603_v14  ;;  %v953_v14 = vpop.permute.xlu1 %952 }
 0x214   :  { %3705 = vpow2.f32 %v605_v36 }
 0x215   :  { %3707 = vpow2.f32 %v607_v49 }
 0x218   :  { %v3702_v4 = vpop.eup %3701 }
 0x219   :  { %1677 = vrot.lane.b32.xlu2 %v3702_v4, %s4058_s20  ;;  %v3704_v30 = vpop.eup %3703 }
 0x21a   :  { %v690_v38 = vsub.f32 1.0, %v3704_v30  ;;  %v3706_v52 = vpop.eup %3705  ;;  %v135_v30 = vld [vmem:[%s5492_s1 + $0xc0] sm:$0xff] }
 0x21b   :  { %v691_v62 = vsub.f32 1.0, %v3706_v52  ;;  %v3708_v50 = vpop.eup %3707  ;;  %v958_v36 = vpop.permute.xlu1 %957 }
 0x21c   :  { %v692_v12 = vsub.f32 1.0, %v3708_v50 }
 0x21d   :  { %v847_v4 = vmul.f32 %v792_v44, %v691_v62  ;;  %v4547_v62 = vld [vmem:[%s5493_s2 + $0xc0] sm:$0xff] }
 0x221   :  { %786 = vperm.xlu2 %3658, %v664_v5  }
 0x223   :  { %v863_v49 = vpop.permute.xlu1 %862 }
 0x229   :  { %269 = vperm.xlu2 %3658, %v131_v35  }
 0x231   :  { %1103 = vperm.xlu2 %3658, %v639_v7   ;;  %v797_v7 = vpop.permute.xlu0 %796 }
 0x239   :  { %1108 = vperm.xlu2 %3658, %v640_v9   ;;  %v802_v56 = vpop.permute.xlu0 %801 }
 0x241   :  { %1113 = vperm.xlu2 %3658, %v641_v11  }
 0x249   :  { %1018 = vperm.xlu2 %3658, %v622_v10   ;;  %v1003_v10 = vmul.f32 %v948_v54, %v847_v4  ;;  %v4559_v4 = vld [vmem:[%s5493_s2 + $0x10] sm:$0xff] }
 0x273   :  { %v1678_v27 = vpop.permute.xlu2 %1677 }
 0x274   :  { %v1680_v28 = vmul.f32 %v1678_v27, %v1661_v33  ;;  %v463_v33 = vmul.f32 %v4259_v46, %v4353_v25 }
 0x276   :  { %v1687_v29 = vmul.f32 %v1685_v22, %v1680_v28  ;;  %v492_v53 = vadd.f32 %v4264_v48, %v463_v33  ;;  %v848_v22 = vmul.f32 %v797_v7, %v692_v12 }
 0x278   :  { %1689 = vrot.lane.b32.xlu0 %v1687_v29, %s4059_s21  ;;  %v518_v6 = vmax.f32 %v492_v53, 0.0 }
 0x27a   :  { %v544_v15 = vsub.f32 0.0, %v518_v6 }
 0x27b   :  { %v787_v41 = vpop.permute.xlu2 %786 }
 0x27c   :  { %v846_v42 = vmul.f32 %v787_v41, %v690_v38  ;;  %v571_v23 = vmul.f32 1.442695, %v544_v15  ;;  %v707_v41 = vpop.permute.xlu0 %706 }
 0x27e   :  { %v1002_v47 = vmul.f32 %v943_v24, %v846_v42  ;;  %v1004_v24 = vmul.f32 %v953_v14, %v848_v22 }
 0x280   :  { %179 = vperm.xlu0 %3656, %v113_v45   ;;  %v1158_v51 = vadd.f32 %v1099_v32, %v1002_v47  ;;  %v159_v47 = vld [vmem:[%s5470_s3 + $0xb0] sm:$0xff] }
 0x282   :  { %1185 = vst.msk [vmem:[%s5483_s16 + $0x88] sm:$0xff] %vm1167_vm0, %v1158_v51  ;;  %3571 = vmatmul.msk.f32.vlgmr.msra.gmra.mxu2 %vm1167_vm0, %v1158_v51  ;;  %v4536_v51 = vld [vmem:[%s5493_s2 + $0xb8] sm:$0xff] }
 0x283   :  { %v270_v55 = vpop.permute.xlu2 %269  ;;  %1915 = vmatpush.msra.mxu2 %v4277_v60 }
 0x284   :  { %v320_v25 = vmul.f32 %v4235_v37, %v270_v55  ;;  %v482_v63 = vmul.f32 %v4259_v46, %v270_v55  ;;  %v670_v55 = vsub.f32 1.0, %v4536_v51 }
 0x285   :  { %1916 = vmatpush.msra.mxu2 %v4284_v0 }
 0x286   :  { %v349_v5 = vadd.f32 %v4245_v40, %v320_v25  ;;  %v511_v35 = vadd.f32 %v4264_v48, %v482_v63  ;;  %v671_v25 = vsub.f32 1.0, %v4547_v62  ;;  %v4553_v63 = vld [vmem:[%s5493_s2 + $0xc8] sm:$0xff] }
 0x287   :  { %1917 = vmatpush.msra.mxu2 %v4298_v18 }
 0x288   :  { %v375_v8 = vmax.f32 %v349_v5, 0.0  ;;  %v537_v9 = vmax.f32 %v511_v35, 0.0  ;;  %279 = vperm.xlu0 %3656, %v133_v1   ;;  %v672_v1 = vsub.f32 1.0, %v4553_v63  ;;  %v649_v5 = vsub.f32 1.0, %v4559_v4 }
 0x289   :  { %1918 = vmatpush.msra.mxu2 %v4315_v43 }
 0x28a   :  { %v401_v11 = vsub.f32 0.0, %v375_v8  ;;  %v563_v13 = vsub.f32 0.0, %v537_v9 }
 0x28b   :  { %v1104_v16 = vpop.permute.xlu2 %1103 }
 0x28c   :  { %v447_v17 = vmul.f32 1.442695, %v401_v11  ;;  %v609_v19 = vmul.f32 1.442695, %v563_v13  ;;  %v1159_v20 = vadd.f32 %v1104_v16, %v1003_v10 }
 0x28e   :  { %3709 = vpow2.f32 %v447_v17  ;;  %1186 = vst.msk [vmem:[%s5483_s16 + $0x90] sm:$0xff] %vm1167_vm0, %v1159_v20  ;;  %3572 = vmatmul.msk.f32.gmra.mxu2 %vm1167_vm0, %v1159_v20 }
 0x28f   :  { %3711 = vpow2.f32 %v609_v19 }
 0x290   :  { %962 = vperm.xlu0 %3656, %v158_v21   ;;  %3713 = vpow2.f32 %v571_v23 }
 0x293   :  { %v1109_v26 = vpop.permute.xlu2 %1108 }
 0x294   :  { %v3710_v27 = vpop.eup %3709  ;;  %v1160_v28 = vadd.f32 %v1109_v26, %v1004_v24 }
 0x295   :  { %v3712_v29 = vpop.eup %3711  ;;  %1607 = vst.msk [vmem:[#allocation3 + $0xa0] sm:$0xff] %vm1167_vm0, %v3710_v27 }
 0x296   :  { %1187 = vst.msk [vmem:[%s5483_s16 + $0x98] sm:$0xff] %vm1167_vm0, %v1160_v28  ;;  %3573 = vmatmul.msk.f32.gmra.mxu2 %vm1167_vm0, %v1160_v28  ;;  %v693_v31 = vsub.f32 1.0, %v3712_v29  ;;  %v3714_v38 = vpop.eup %3713 }
 0x297   :  { %v674_v44 = vsub.f32 1.0, %v3714_v38 }
 0x298   :  { %289 = vperm.xlu0 %3656, %v135_v30   ;;  %v849_v32 = vmul.f32 %v802_v56, %v693_v31  ;;  %v1207_v31 = vpop.permute.xlu1 %1206 }
 0x299   :  { %v830_v33 = vmul.f32 %v707_v41, %v674_v44  ;;  %v132_v44 = vld [vmem:[%s5492_s1 + $0xa8] sm:$0xff] }
 0x29a   :  { %v1005_v39 = vmul.f32 %v958_v36, %v849_v32  ;;  %v1333_v32 = vmul.f32 %v4407_v61, %v1207_v31 }
 0x29b   :  { %v1114_v42 = vpop.permute.xlu2 %1113  ;;  %v986_v52 = vmul.f32 %v863_v49, %v830_v33  ;;  %v80_v33 = vld [vmem:[%s5494_s25 + $0xa8] sm:$0xff] }
 0x29c   :  { %v1161_v45 = vadd.f32 %v1114_v42, %v1005_v39 }
 0x29e   :  { %1188 = vst.msk [vmem:[%s5483_s16 + $0xa0] sm:$0xff] %vm1167_vm0, %v1161_v45  ;;  %3574 = vmatmul.msk.f32.gmra.mxu2 %vm1167_vm0, %v1161_v45  ;;  %v106_v45 = vld [vmem:[%s5493_s2 + $0xa8] sm:$0xff] }
 0x29f   :  { %v642_v49 = vmul.f32 %v106_v45, %v80_v33 }
 0x2a0   :  { %967 = vperm.xlu0 %3656, %v159_v47   ;;  %v668_v47 = vsub.f32 1.0, %v106_v45 }
 0x2a3   :  { %v1019_v53 = vpop.permute.xlu2 %1018 }
 0x2a4   :  { %v1142_v54 = vadd.f32 %v1019_v53, %v986_v52  ;;  %v4610_v52 = vld [vmem:[%s5493_s2 + $0xb0] sm:$0xff] }
 0x2a5   :  { %v669_v53 = vsub.f32 1.0, %v4610_v52 }
 0x2a6   :  { %1169 = vst.msk [vmem:[%s5483_s16 + $0x8] sm:$0xff] %vm1167_vm0, %v1142_v54  ;;  %3555 = vmatmul.msk.f32.gmra.mxu0 %vm1167_vm0, %v1142_v54  ;;  %v136_v54 = vld [vmem:[%s5492_s1 + $0xc8] sm:$0xff] }
 0x2a8   :  { %816 = vperm.xlu0 %3656, %v670_v55   ;;  %v82_v55 = vld [vmem:[%s5494_s25 + $0xb8] sm:$0xff] }
 0x2b0   :  { %821 = vperm.xlu0 %3656, %v671_v25   ;;  %v644_v25 = vmul.f32 %v4536_v51, %v82_v55  ;;  %v61_v51 = vld [vmem:[%s5494_s25 + $0x10] sm:$0xff] }
 0x2b8   :  { %826 = vperm.xlu0 %3656, %v672_v1  }
 0x2c0   :  { %711 = vperm.xlu0 %3656, %v649_v5   ;;  %v83_v5 = vld [vmem:[%s5494_s25 + $0xc0] sm:$0xff] }
 0x2ea   :  { %v1690_v35 = vpop.permute.xlu0 %1689 }
 0x2eb   :  { %3582 = vmatmul.msk.f32.vlgmr.msrb.gmra.mxu2 %vm1167_vm0, %v1690_v35  ;;  %v645_v35 = vmul.f32 %v4547_v62, %v83_v5 }
 0x2ec   :  { %2125 = vmatpush.msrb.mxu2 %v4277_v60 }
 0x2ee   :  { %2126 = vmatpush.msrb.mxu2 %v4284_v0 }
 0x2f0   :  { %2127 = vmatpush.msrb.mxu2 %v4298_v18 }
 0x2f2   :  { %v4566_v6 = vpop.permute.xlu0 %179  ;;  %2128 = vmatpush.msrb.mxu2 %v4315_v43 }
 0x2f3   :  { %v302_v7 = vmul.f32 %v4235_v37, %v4566_v6 }
 0x2f5   :  { %v331_v8 = vadd.f32 %v4245_v40, %v302_v7 }
 0x2f7   :  { %v357_v9 = vmax.f32 %v331_v8, 0.0  ;;  %v84_v8 = vld [vmem:[%s5494_s25 + $0xc8] sm:$0xff] }
 0x2f9   :  { %v383_v50 = vsub.f32 0.0, %v357_v9 }
 0x2fa   :  { %v4572_v11 = vpop.permute.xlu0 %279 }
 0x2fb   :  { %v411_v13 = vmul.f32 1.442695, %v383_v50  ;;  %v322_v10 = vmul.f32 %v4235_v37, %v4572_v11  ;;  %v646_v50 = vmul.f32 %v4553_v63, %v84_v8 }
 0x2fd   :  { %3715 = vpow2.f32 %v411_v13  ;;  %v351_v15 = vadd.f32 %v4245_v40, %v322_v10  ;;  %v623_v10 = vmul.f32 %v4559_v4, %v61_v51 }
 0x2ff   :  { %v377_v16 = vmax.f32 %v351_v15, 0.0 }
 0x301   :  { %v403_v12 = vsub.f32 0.0, %v377_v16 }
 0x302   :  { %v4577_v17 = vpop.permute.xlu0 %962 }
 0x303   :  { %v3716_v19 = vpop.eup %3715  ;;  %v451_v20 = vmul.f32 1.442695, %v403_v12 }
 0x304   :  { %1589 = vst.msk [vmem:[#allocation3 + $0x10] sm:$0xff] %vm1167_vm0, %v3716_v19 }
 0x305   :  { %3717 = vpow2.f32 %v451_v20  ;;  %v4587_v28 = vpop.f32.mrf.mxu2 }
 0x30a   :  { %v4580_v14 = vpop.permute.xlu0 %289 }
 0x30b   :  { %v3718_v21 = vpop.eup %3717  ;;  %v324_v22 = vmul.f32 %v4235_v37, %v4580_v14 }
 0x30c   :  { %1609 = vst.msk [vmem:[#allocation3 + $0xb0] sm:$0xff] %vm1167_vm0, %v3718_v21 }
 0x30d   :  { %v353_v23 = vadd.f32 %v4245_v40, %v324_v22 }
 0x30f   :  { %v379_v56 = vmax.f32 %v353_v23, 0.0 }
 0x311   :  { %v405_v24 = vsub.f32 0.0, %v379_v56  ;;  %v4589_v29 = vpop.f32.mrf.mxu2 }
 0x313   :  { %v455_v26 = vmul.f32 1.442695, %v405_v24 }
 0x315   :  { %3719 = vpow2.f32 %v455_v26  ;;  %v134_v26 = vld [vmem:[%s5492_s1 + $0xb8] sm:$0xff] }
 0x319   :  { %v4591_v30 = vpop.f32.mrf.mxu2 }
 0x31b   :  { %v3720_v27 = vpop.eup %3719 }
 0x31c   :  { %1611 = vst.msk [vmem:[#allocation3 + $0xc0] sm:$0xff] %vm1167_vm0, %v3720_v27  ;;  %v4642_v27 = vld [vmem:[%s5473_s6] ss:$0 sm:$0xff] }
 0x321   :  { %v4593_v36 = vpop.f32.mrf.mxu2 }
 0x323   :  { %v1456_v37 = vpop.f32.mrf.mxu0 }
 0x324   :  { %v1457_v40 = vadd.f32 %v1456_v37, %v1333_v32  ;;  %v4649_v32 = vld [vmem:[%s5474_s7] ss:$0 sm:$0xff] }
 0x326   :  { %v1536_v38 = vadd.f32 %v4415_v3, %v1457_v40 }
 0x36e   :  { %v1710_v39 = vpop.f32.mrf.mxu2 }
 0x36f   :  { %v1713_v41 = vadd.f32 %v1710_v39, %v1536_v38 }
 0x371   :  { %3721 = vtanh.f32 %v1713_v41  ;;  %v3583_v1 = vmul.f32 -1.442695, %v1713_v41 }
 0x373   :  { %3723 = vpow2.f32 %v3583_v1 }
 0x377   :  { %v3722_v42 = vpop.eup %3721 }
 0x378   :  { %1736 = vrot.lane.b32.xlu2 %v3722_v42, %s4058_s20 }
 0x379   :  { %v3724_v7 = vpop.eup %3723 }
 0x37a   :  { %v1717_v9 = vadd.f32 1.0, %v3724_v7 }
 0x37c   :  { %3725 = vrcp.f32 %v1717_v9  ;;  %v1729_v19 = vand.u32 2147483648, %v1717_v9  ;;  %vm1723_vm6 = vweird.f32 %v1717_v9  ;;  %v1727_v20 = vand.u32 2147483647, %v1717_v9 }
 0x37e   :  { %v1730_v21 = vor.u32 1.1754944e-38, %v1729_v19  ;;  %vm1728_vm8 = vcmp.eq.f32.partialorder %v1727_v20, 8.507059e+37  ;;  %v160_v20 = vld [vmem:[%s5470_s3 + $0xb8] sm:$0xff] }
 0x380   :  { %274 = vperm.xlu2 %3658, %v132_v44  }
 0x382   :  { %v3726_v13 = vpop.eup %3725 }
 0x383   :  { %v1719_v15 = vmul.f32 %v3726_v13, %v1717_v9  ;;  %vm1724_vm5 = vweird.f32 %v3726_v13 }
 0x384   :  { %vm1725_vm7 = vmor %vm1723_vm6, %vm1724_vm5 }
 0x385   :  { %v1720_v62 = vsub.f32 1.0, %v1719_v15 }
 0x387   :  { %v1721_v16 = vmul.f32 %v3726_v13, %v1720_v62  ;;  %v81_v62 = vld [vmem:[%s5494_s25 + $0xb0] sm:$0xff] }
 0x388   :  { %806 = vperm.xlu2 %3658, %v668_v47  }
 0x389   :  { %v1722_v12 = vadd.f32 %v3726_v13, %v1721_v16 }
 0x38b   :  { %v1726_v63 = vsel %vm1725_vm7, %v3726_v13, %v1722_v12 }
 0x38c   :  { %v4632_v23 = vsel %vm1728_vm8, %v1730_v21, %v1726_v63  ;;  %v161_v21 = vld [vmem:[%s5470_s3 + $0xc0] sm:$0xff] }
 0x390   :  { %1118 = vperm.xlu2 %3658, %v642_v49   ;;  %v1751_v49 = vld [vmem:[#allocation3 + $0x10] sm:$0xff] }
 0x398   :  { %811 = vperm.xlu2 %3658, %v669_v53  }
 0x3a0   :  { %294 = vperm.xlu2 %3658, %v136_v54  }
 0x3a8   :  { %1128 = vperm.xlu2 %3658, %v644_v25  }
 0x3b0   :  { %1133 = vperm.xlu2 %3658, %v645_v35  }
 0x3b8   :  { %1138 = vperm.xlu2 %3658, %v646_v50  }
 0x3c0   :  { %1023 = vperm.xlu2 %3658, %v623_v10  }
 0x3d2   :  { %v1737_v22 = vpop.permute.xlu2 %1736 }
 0x3d3   :  { %v1739_v56 = vmul.f32 %v1737_v22, %v4632_v23  ;;  %v139_v22 = vld [vmem:[%s5470_s3 + $0x10] sm:$0xff] }
 0x3d5   :  { %1741 = vrot.lane.b32.xlu1 %v1739_v56, %s4059_s21  ;;  %v4699_v56 = vld [vmem:[%s5475_s8] ss:$0 sm:$0xff] }
 0x3da   :  { %v275_v24 = vpop.permute.xlu2 %274 }
 0x3db   :  { %v321_v31 = vmul.f32 %v4642_v27, %v275_v24  ;;  %v483_v37 = vmul.f32 %v4259_v46, %v275_v24  ;;  %v484_v24 = vmul.f32 %v4699_v56, %v4572_v11 }
 0x3dd   :  { %v350_v40 = vadd.f32 %v4649_v32, %v321_v31  ;;  %v512_v38 = vadd.f32 %v4264_v48, %v483_v37  ;;  %284 = vperm.xlu1 %3657, %v134_v26   ;;  %v4706_v26 = vld [vmem:[%s5476_s9] ss:$0 sm:$0xff] }
 0x3de   :  { %v513_v31 = vadd.f32 %v4706_v26, %v484_v24 }
 0x3df   :  { %v376_v39 = vmax.f32 %v350_v40, 0.0  ;;  %v538_v41 = vmax.f32 %v512_v38, 0.0 }
 0x3e0   :  { %v539_v37 = vmax.f32 %v513_v31, 0.0 }
 0x3e1   :  { %v402_v42 = vsub.f32 0.0, %v376_v39  ;;  %v564_v44 = vsub.f32 0.0, %v538_v41 }
 0x3e2   :  { %v807_v45 = vpop.permute.xlu2 %806  ;;  %v565_v38 = vsub.f32 0.0, %v539_v37 }
 0x3e3   :  { %v449_v47 = vmul.f32 1.442695, %v402_v42  ;;  %v611_v33 = vmul.f32 1.442695, %v564_v44  ;;  %v486_v42 = vmul.f32 %v4699_v56, %v4580_v14 }
 0x3e4   :  { %v613_v39 = vmul.f32 1.442695, %v565_v38 }
 0x3e5   :  { %3727 = vpow2.f32 %v449_v47  ;;  %1754 = vrot.lane.b32.xlu1 %v1751_v49, %s4057_s27  ;;  %v968_v47 = vpop.permute.xlu0 %967 }
 0x3e6   :  { %3729 = vpow2.f32 %v611_v33 }
 0x3ea   :  { %v1119_v46 = vpop.permute.xlu2 %1118 }
 0x3eb   :  { %v3728_v53 = vpop.eup %3727 }
 0x3ec   :  { %v3730_v54 = vpop.eup %3729  ;;  %1608 = vst.msk [vmem:[#allocation3 + $0xa8] sm:$0xff] %vm1167_vm0, %v3728_v53 }
 0x3ed   :  { %v694_v55 = vsub.f32 1.0, %v3730_v54 }
 0x3ef   :  { %v850_v48 = vmul.f32 %v807_v45, %v694_v55  ;;  %v515_v45 = vadd.f32 %v4706_v26, %v486_v42 }
 0x3f1   :  { %v1006_v25 = vmul.f32 %v4577_v17, %v850_v48  ;;  %v541_v53 = vmax.f32 %v515_v45, 0.0 }
 0x3f2   :  { %v4656_v1 = vpop.permute.xlu2 %811 }
 0x3f3   :  { %v1162_v5 = vadd.f32 %v1119_v46, %v1006_v25 }
 0x3f5   :  { %1189 = vst.msk [vmem:[%s5483_s16 + $0xa8] sm:$0xff] %vm1167_vm0, %v1162_v5  ;;  %3575 = vmatmul.msk.f32.vlgmr.msra.gmra.mxu3 %vm1167_vm0, %v1162_v5 }
 0x3f6   :  { %1985 = vmatpush.msra.mxu3 %v4277_v60  ;;  %v1734_v60 = vmul.f32 %v4632_v23, %v4454_v2  ;;  %v643_v2 = vmul.f32 %v4610_v52, %v81_v62  ;;  %v162_v52 = vld [vmem:[%s5470_s3 + $0xc8] sm:$0xff] }
 0x3f8   :  { %1986 = vmatpush.msra.mxu3 %v4284_v0 }
 0x3fa   :  { %v295_v35 = vpop.permute.xlu2 %294  ;;  %1987 = vmatpush.msra.mxu3 %v4298_v18 }
 0x3fb   :  { %v325_v7 = vmul.f32 %v4642_v27, %v295_v35  ;;  %v487_v49 = vmul.f32 %v4699_v56, %v295_v35  ;;  %v464_v35 = vmul.f32 %v4699_v56, %v4566_v6 }
 0x3fc   :  { %1988 = vmatpush.msra.mxu3 %v4315_v43 }
 0x3fd   :  { %v354_v17 = vadd.f32 %v4649_v32, %v325_v7  ;;  %v516_v25 = vadd.f32 %v4706_v26, %v487_v49  ;;  %v567_v7 = vsub.f32 0.0, %v541_v53 }
 0x3ff   :  { %v380_v8 = vmax.f32 %v354_v17, 0.0  ;;  %v817_v17 = vpop.permute.xlu0 %816 }
 0x401   :  { %v406_v9 = vsub.f32 0.0, %v380_v8  ;;  %v542_v8 = vmax.f32 %v516_v25, 0.0 }
 0x402   :  { %v1129_v6 = vpop.permute.xlu2 %1128 }
 0x403   :  { %v457_v50 = vmul.f32 1.442695, %v406_v9 }
 0x405   :  { %3731 = vpow2.f32 %v457_v50 }
 0x40b   :  { %v3732_v51 = vpop.eup %3731 }
 0x40c   :  { %1612 = vst.msk [vmem:[#allocation3 + $0xc8] sm:$0xff] %vm1167_vm0, %v3732_v51  ;;  %v617_v51 = vmul.f32 1.442695, %v567_v7  ;;  %v4766_v7 = vld [vmem:[%s5479_s12 + $0x8] sm:$0xff] }
 0x447   :  { %v1742_v0 = vpop.permute.xlu1 %1741 }
 0x448   :  { %v4672_v13 = vadd.f32 %v1742_v0, %v1734_v60 }
 0x44a   :  { %3733 = vtanh.f32 %v4672_v13 }
 0x44f   :  { %v285_v18 = vpop.permute.xlu1 %284 }
 0x450   :  { %v3734_v10 = vpop.eup %3733  ;;  %v323_v43 = vmul.f32 %v4642_v27, %v285_v18  ;;  %v485_v40 = vmul.f32 %v4699_v56, %v285_v18  ;;  %v114_v18 = vld [vmem:[%s5492_s1 + $0x18] sm:$0xff] }
 0x451   :  { %1747 = vrot.lane.b32.xlu1 %v3734_v10, %s4058_s20  ;;  %v493_v10 = vadd.f32 %v4706_v26, %v464_v35 }
 0x452   :  { %v352_v15 = vadd.f32 %v4649_v32, %v323_v43 }
 0x453   :  { %v519_v62 = vmax.f32 %v493_v10, 0.0 }
 0x454   :  { %v378_v16 = vmax.f32 %v352_v15, 0.0 }
 0x456   :  { %v404_v12 = vsub.f32 0.0, %v378_v16  ;;  %v822_v16 = vpop.permute.xlu0 %821 }
 0x457   :  { %v1755_v11 = vpop.permute.xlu1 %1754 }
 0x458   :  { %v453_v19 = vmul.f32 1.442695, %v404_v12 }
 0x459   :  { %1123 = vperm.xlu1 %3657, %v643_v2  }
 0x45a   :  { %3735 = vpow2.f32 %v453_v19 }
 0x45b   :  { %3737 = vpow2.f32 %v613_v39 }
 0x45e   :  { %v827_v38 = vpop.permute.xlu0 %826 }
 0x460   :  { %v3736_v63 = vpop.eup %3735 }
 0x461   :  { %1610 = vst.msk [vmem:[#allocation3 + $0xb8] sm:$0xff] %vm1167_vm0, %v3736_v63  ;;  %972 = vperm.xlu1 %3657, %v160_v20   ;;  %v3738_v33 = vpop.eup %3737  ;;  %v545_v63 = vsub.f32 0.0, %v519_v62 }
 0x462   :  { %v695_v55 = vsub.f32 1.0, %v3738_v33 }
 0x463   :  { %v573_v31 = vmul.f32 1.442695, %v545_v63 }
 0x464   :  { %v851_v14 = vmul.f32 %v4656_v1, %v695_v55 }
 0x466   :  { %v1007_v9 = vmul.f32 %v968_v47, %v851_v14  ;;  %v712_v33 = vpop.permute.xlu0 %711  ;;  %v4754_v14 = vld [vmem:[%s5479_s12 + $0x18] sm:$0xff] }
 0x469   :  { %977 = vperm.xlu1 %3657, %v161_v21  }
 0x471   :  { %982 = vperm.xlu1 %3657, %v162_v52   ;;  %v1134_v52 = vpop.permute.xlu2 %1133 }
 0x479   :  { %867 = vperm.xlu1 %3657, %v139_v22   ;;  %v1139_v42 = vpop.permute.xlu2 %1138 }
 0x481   :  { %1211 = vperm.xlu1 %3657, %v4559_v4   ;;  %v514_v4 = vadd.f32 %v4706_v26, %v485_v40  ;;  %v1024_v55 = vpop.permute.xlu2 %1023 }
 0x483   :  { %v540_v41 = vmax.f32 %v514_v4, 0.0 }
 0x485   :  { %v566_v44 = vsub.f32 0.0, %v540_v41 }
 0x487   :  { %v615_v46 = vmul.f32 1.442695, %v566_v44 }
 0x489   :  { %3739 = vpow2.f32 %v615_v46 }
 0x48a   :  { %3741 = vpow2.f32 %v617_v51 }
 0x48f   :  { %v3740_v50 = vpop.eup %3739 }
 0x490   :  { %v696_v1 = vsub.f32 1.0, %v3740_v50  ;;  %v3742_v19 = vpop.eup %3741 }
 0x491   :  { %v697_v21 = vsub.f32 1.0, %v3742_v19 }
 0x492   :  { %v852_v15 = vmul.f32 %v817_v17, %v696_v1  ;;  %v88_v1 = vld [vmem:[%s5493_s2 + $0x18] sm:$0xff] }
 0x493   :  { %v853_v22 = vmul.f32 %v822_v16, %v697_v21 }
 0x4c3   :  { %v1748_v54 = vpop.permute.xlu1 %1747 }
 0x4c4   :  { %v1750_v48 = vmul.f32 %v1748_v54, %v4632_v23  ;;  %v568_v23 = vsub.f32 0.0, %v542_v8  ;;  %v4774_v8 = vld [vmem:[%s5479_s12] sm:$0xff] }
 0x4c6   :  { %v1757_v5 = vmul.f32 %v1755_v11, %v1750_v48  ;;  %v619_v43 = vmul.f32 1.442695, %v568_v23 }
 0x4c8   :  { %1759 = vrot.lane.b32.xlu0 %v1757_v5, %s4059_s21  ;;  %3743 = vpow2.f32 %v619_v43  ;;  %v4760_v5 = vld [vmem:[%s5479_s12 + $0x10] sm:$0xff] }
 0x4c9   :  { %3745 = vpow2.f32 %v573_v31 }
 0x4cb   :  { %v1124_v60 = vpop.permute.xlu1 %1123 }
 0x4cc   :  { %v1163_v0 = vadd.f32 %v1124_v60, %v1007_v9 }
 0x4ce   :  { %1190 = vst.msk [vmem:[%s5483_s16 + $0xb0] sm:$0xff] %vm1167_vm0, %v1163_v0  ;;  %3576 = vmatmul.msk.f32.gmra.mxu3 %vm1167_vm0, %v1163_v0  ;;  %v3744_v24 = vpop.eup %3743 }
 0x4cf   :  { %v698_v39 = vsub.f32 1.0, %v3744_v24  ;;  %v3746_v45 = vpop.eup %3745 }
 0x4d0   :  { %184 = vperm.xlu0 %3656, %v114_v18   ;;  %v675_v49 = vsub.f32 1.0, %v3746_v45  ;;  %v62_v18 = vld [vmem:[%s5494_s25 + $0x18] sm:$0xff] }
 0x4d1   :  { %v854_v41 = vmul.f32 %v827_v38, %v698_v39  ;;  %v624_v10 = vmul.f32 %v88_v1, %v62_v18 }
 0x4d2   :  { %v831_v46 = vmul.f32 %v712_v33, %v675_v49  ;;  %v650_v33 = vsub.f32 1.0, %v88_v1 }
 0x4d3   :  { %v973_v2 = vpop.permute.xlu1 %972 }
 0x4d4   :  { %v1008_v12 = vmul.f32 %v973_v2, %v852_v15 }
 0x4d6   :  { %v1164_v20 = vadd.f32 %v1129_v6, %v1008_v12  ;;  %v4788_v6 = vpop.f32.mrf.mxu3 }
 0x4d8   :  { %1191 = vst.msk [vmem:[%s5483_s16 + $0xb8] sm:$0xff] %vm1167_vm0, %v1164_v20  ;;  %3577 = vmatmul.msk.f32.gmra.mxu3 %vm1167_vm0, %v1164_v20 }
 0x4db   :  { %v978_v37 = vpop.permute.xlu1 %977 }
 0x4dc   :  { %v1009_v40 = vmul.f32 %v978_v37, %v853_v22 }
 0x4de   :  { %v1165_v4 = vadd.f32 %v1134_v52, %v1009_v40 }
 0x4e0   :  { %1192 = vst.msk [vmem:[%s5483_s16 + $0xc0] sm:$0xff] %vm1167_vm0, %v1165_v4  ;;  %3578 = vmatmul.msk.f32.gmra.mxu3 %vm1167_vm0, %v1165_v4 }
 0x4e3   :  { %v983_v11 = vpop.permute.xlu1 %982 }
 0x4e4   :  { %v1010_v44 = vmul.f32 %v983_v11, %v854_v41 }
 0x4e6   :  { %v1166_v47 = vadd.f32 %v1139_v42, %v1010_v44 }
 0x4e8   :  { %1193 = vst.msk [vmem:[%s5483_s16 + $0xc8] sm:$0xff] %vm1167_vm0, %v1166_v47  ;;  %3579 = vmatmul.msk.f32.gmra.mxu3 %vm1167_vm0, %v1166_v47 }
 0x4eb   :  { %v868_v53 = vpop.permute.xlu1 %867 }
 0x4ec   :  { %v987_v54 = vmul.f32 %v868_v53, %v831_v46 }
 0x4ee   :  { %v1143_v48 = vadd.f32 %v1024_v55, %v987_v54  ;;  %v140_v55 = vld [vmem:[%s5470_s3 + $0x18] sm:$0xff] }
 0x4f0   :  { %1170 = vst.msk [vmem:[%s5483_s16 + $0x10] sm:$0xff] %vm1167_vm0, %v1143_v48  ;;  %3556 = vmatmul.msk.f32.gmra.mxu0 %vm1167_vm0, %v1143_v48 }
 0x4f3   :  { %v1212_v16 = vpop.permute.xlu1 %1211 }
 0x4f4   :  { %v1334_v19 = vmul.f32 %v4407_v61, %v1212_v16 }
 0x53a   :  { %v1760_v25 = vpop.permute.xlu0 %1759 }
 0x53b   :  { %3584 = vmatmul.msk.f32.vlgmr.msrb.gmra.mxu3 %vm1167_vm0, %v1760_v25 }
 0x53c   :  { %2195 = vmatpush.msrb.mxu3 %v4754_v14 }
 0x53e   :  { %2196 = vmatpush.msrb.mxu3 %v4760_v5 }
 0x540   :  { %2197 = vmatpush.msrb.mxu3 %v4766_v7 }
 0x542   :  { %v4769_v17 = vpop.permute.xlu0 %184  ;;  %2198 = vmatpush.msrb.mxu3 %v4774_v8 }
 0x543   :  { %v303_v9 = vmul.f32 %v4642_v27, %v4769_v17  ;;  %v465_v48 = vmul.f32 %v4699_v56, %v4769_v17  ;;  %v115_v17 = vld [vmem:[%s5492_s1 + $0x20] sm:$0xff] }
 0x545   :  { %v332_v50 = vadd.f32 %v4649_v32, %v303_v9  ;;  %v494_v25 = vadd.f32 %v4706_v26, %v465_v48 }
 0x547   :  { %v358_v35 = vmax.f32 %v332_v50, 0.0 }
 0x549   :  { %v384_v51 = vsub.f32 0.0, %v358_v35 }
 0x54b   :  { %v413_v60 = vmul.f32 1.442695, %v384_v51 }
 0x54d   :  { %3747 = vpow2.f32 %v413_v60 }
 0x551   :  { %v4790_v43 = vpop.f32.mrf.mxu3 }
 0x553   :  { %v3748_v0 = vpop.eup %3747 }
 0x554   :  { %1590 = vst.msk [vmem:[#allocation3 + $0x18] sm:$0xff] %vm1167_vm0, %v3748_v0 }
 0x55b   :  { %v1821_v23 = vld [vmem:[#allocation3 + $0x18] sm:$0xff]  ;;  %v4792_v15 = vpop.f32.mrf.mxu3 }
 0x55c   :  { %1824 = vrot.lane.b32.xlu0 %v1821_v23, %s4057_s27 }
 0x563   :  { %v4794_v62 = vpop.f32.mrf.mxu3 }
 0x564   :  { %1028 = vperm.xlu0 %3656, %v624_v10  }
 0x56b   :  { %v4796_v2 = vpop.f32.mrf.mxu3 }
 0x56d   :  { %v1459_v12 = vpop.f32.mrf.mxu0 }
 0x56e   :  { %v1460_v20 = vadd.f32 %v1459_v12, %v1334_v19 }
 0x570   :  { %v1537_v63 = vadd.f32 %v4415_v3, %v1460_v20 }
 0x5be   :  { %v1780_v21 = vpop.f32.mrf.mxu3 }
 0x5bf   :  { %v1783_v52 = vadd.f32 %v1780_v21, %v1537_v63 }
 0x5c1   :  { %3749 = vtanh.f32 %v1783_v52  ;;  %v3585_v24 = vmul.f32 -1.442695, %v1783_v52 }
 0x5c3   :  { %3751 = vpow2.f32 %v3585_v24 }
 0x5c7   :  { %v3750_v22 = vpop.eup %3749 }
 0x5c8   :  { %1806 = vrot.lane.b32.xlu2 %v3750_v22, %s4058_s20 }
 0x5c9   :  { %v3752_v31 = vpop.eup %3751 }
 0x5ca   :  { %v1787_v37 = vadd.f32 1.0, %v3752_v31 }
 0x5cc   :  { %3753 = vrcp.f32 %v1787_v37  ;;  %v1799_v61 = vand.u32 2147483648, %v1787_v37  ;;  %vm1793_vm10 = vweird.f32 %v1787_v37  ;;  %v1797_v3 = vand.u32 2147483647, %v1787_v37 }
 0x5ce   :  { %v1800_v11 = vor.u32 1.1754944e-38, %v1799_v61  ;;  %vm1798_vm12 = vcmp.eq.f32.partialorder %v1797_v3, 8.507059e+37  ;;  %v1825_v35 = vpop.permute.xlu0 %1824 }
 0x5d2   :  { %v3754_v40 = vpop.eup %3753 }
 0x5d3   :  { %v1789_v38 = vmul.f32 %v3754_v40, %v1787_v37  ;;  %vm1794_vm9 = vweird.f32 %v3754_v40 }
 0x5d4   :  { %vm1795_vm11 = vmor %vm1793_vm10, %vm1794_vm9 }
 0x5d5   :  { %v1790_v4 = vsub.f32 1.0, %v1789_v38 }
 0x5d6   :  { %v1029_v19 = vpop.permute.xlu0 %1028 }
 0x5d7   :  { %v1791_v39 = vmul.f32 %v3754_v40, %v1790_v4  ;;  %v63_v4 = vld [vmem:[%s5494_s25 + $0x20] sm:$0xff] }
 0x5d9   :  { %v1792_v41 = vadd.f32 %v3754_v40, %v1791_v39  ;;  %v89_v39 = vld [vmem:[%s5493_s2 + $0x20] sm:$0xff] }
 0x5db   :  { %v1796_v42 = vsel %vm1795_vm11, %v3754_v40, %v1792_v41  ;;  %v625_v41 = vmul.f32 %v89_v39, %v63_v4 }
 0x5dc   :  { %v1801_v45 = vsel %vm1798_vm12, %v1800_v11, %v1796_v42  ;;  %v4840_v42 = vld [vmem:[%s5478_s11] ss:$0 sm:$0xff] }
 0x5dd   :  { %v1804_v49 = vmul.f32 %v1801_v45, %v4672_v13  ;;  %v520_v13 = vmax.f32 %v494_v25, 0.0 }
 0x5df   :  { %v546_v9 = vsub.f32 0.0, %v520_v13 }
 0x5e1   :  { %v575_v50 = vmul.f32 1.442695, %v546_v9 }
 0x622   :  { %v1807_v44 = vpop.permute.xlu2 %1806 }
 0x623   :  { %v1809_v47 = vmul.f32 %v1807_v44, %v1801_v45 }
 0x625   :  { %1811 = vrot.lane.b32.xlu1 %v1809_v47, %s4059_s21 }
 0x62d   :  { %716 = vperm.xlu1 %3657, %v650_v33  }
 0x697   :  { %v1812_v46 = vpop.permute.xlu1 %1811 }
 0x698   :  { %v4803_v53 = vadd.f32 %v1812_v46, %v1804_v49 }
 0x69a   :  { %3755 = vtanh.f32 %v4803_v53 }
 0x69b   :  { %3757 = vpow2.f32 %v575_v50 }
 0x69f   :  { %v717_v18 = vpop.permute.xlu1 %716 }
 0x6a0   :  { %v3756_v54 = vpop.eup %3755 }
 0x6a1   :  { %1817 = vrot.lane.b32.xlu2 %v3756_v54, %s4058_s20  ;;  %v3758_v0 = vpop.eup %3757 }
 0x6a2   :  { %v676_v10 = vsub.f32 1.0, %v3758_v0 }
 0x6a4   :  { %v832_v16 = vmul.f32 %v717_v18, %v676_v10 }
 0x6a9   :  { %872 = vperm.xlu2 %3658, %v140_v55  }
 0x6b1   :  { %1216 = vperm.xlu2 %3658, %v88_v1  }
 0x6fb   :  { %v1818_v51 = vpop.permute.xlu2 %1817 }
 0x6fc   :  { %v1820_v60 = vmul.f32 %v1818_v51, %v1801_v45  ;;  %v4846_v45 = vld [vmem:[%s5480_s13] ss:$0 sm:$0xff] }
 0x6fe   :  { %v1827_v23 = vmul.f32 %v1825_v35, %v1820_v60 }
 0x700   :  { %1829 = vrot.lane.b32.xlu1 %v1827_v23, %s4059_s21 }
 0x703   :  { %v873_v1 = vpop.permute.xlu2 %872 }
 0x704   :  { %v988_v12 = vmul.f32 %v873_v1, %v832_v16  ;;  %v651_v1 = vsub.f32 1.0, %v89_v39 }
 0x706   :  { %v1144_v20 = vadd.f32 %v1029_v19, %v988_v12 }
 0x708   :  { %1171 = vst.msk [vmem:[%s5483_s16 + $0x18] sm:$0xff] %vm1167_vm0, %v1144_v20  ;;  %189 = vperm.xlu1 %3657, %v115_v17   ;;  %3557 = vmatmul.msk.f32.gmra.mxu0 %vm1167_vm0, %v1144_v20 }
 0x70b   :  { %v1217_v61 = vpop.permute.xlu2 %1216 }
 0x70c   :  { %v1335_v11 = vmul.f32 %v4840_v42, %v1217_v61 }
 0x772   :  { %v1830_v63 = vpop.permute.xlu1 %1829 }
 0x773   :  { %3586 = vmatmul.msk.f32.vlgmr.msra.gmra.mxu1 %vm1167_vm0, %v1830_v63  ;;  %v141_v63 = vld [vmem:[%s5470_s3 + $0x20] sm:$0xff] }
 0x774   :  { %2265 = vmatpush.msra.mxu1 %v4754_v14 }
 0x776   :  { %2266 = vmatpush.msra.mxu1 %v4760_v5 }
 0x778   :  { %2267 = vmatpush.msra.mxu1 %v4766_v7 }
 0x77a   :  { %v190_v21 = vpop.permute.xlu1 %189  ;;  %2268 = vmatpush.msra.mxu1 %v4774_v8 }
 0x77b   :  { %v304_v52 = vmul.f32 %v4642_v27, %v190_v21 }
 0x77d   :  { %v333_v22 = vadd.f32 %v4649_v32, %v304_v52  ;;  %v466_v52 = vmul.f32 %v4699_v56, %v190_v21  ;;  %v116_v21 = vld [vmem:[%s5492_s1 + $0x28] sm:$0xff] }
 0x77f   :  { %v359_v24 = vmax.f32 %v333_v22, 0.0  ;;  %v495_v22 = vadd.f32 %v4706_v26, %v466_v52 }
 0x781   :  { %v385_v31 = vsub.f32 0.0, %v359_v24  ;;  %v521_v24 = vmax.f32 %v495_v22, 0.0 }
 0x783   :  { %v415_v37 = vmul.f32 1.442695, %v385_v31 }
 0x785   :  { %3759 = vpow2.f32 %v415_v37  ;;  %v1462_v3 = vpop.f32.mrf.mxu0 }
 0x786   :  { %v1463_v44 = vadd.f32 %v1462_v3, %v1335_v11 }
 0x788   :  { %v1538_v47 = vadd.f32 %v4846_v45, %v1463_v44 }
 0x78b   :  { %v3760_v40 = vpop.eup %3759 }
 0x78c   :  { %1591 = vst.msk [vmem:[#allocation3 + $0x20] sm:$0xff] %vm1167_vm0, %v3760_v40 }
 0x793   :  { %v1891_v38 = vld [vmem:[#allocation3 + $0x20] sm:$0xff] }
 0x794   :  { %1894 = vrot.lane.b32.xlu1 %v1891_v38, %s4057_s27 }
 0x79c   :  { %1033 = vperm.xlu1 %3657, %v625_v41  }
 0x7f0   :  { %v1850_v33 = vpop.f32.mrf.mxu1 }
 0x7f1   :  { %v1853_v49 = vadd.f32 %v1850_v33, %v1538_v47 }
 0x7f3   :  { %3761 = vtanh.f32 %v1853_v49  ;;  %v3587_v54 = vmul.f32 -1.442695, %v1853_v49 }
 0x7f5   :  { %3763 = vpow2.f32 %v3587_v54 }
 0x7f9   :  { %v3762_v46 = vpop.eup %3761 }
 0x7fa   :  { %1876 = vrot.lane.b32.xlu0 %v3762_v46, %s4058_s20 }
 0x7fb   :  { %v3764_v55 = vpop.eup %3763 }
 0x7fc   :  { %v1857_v48 = vadd.f32 1.0, %v3764_v55 }
 0x7fe   :  { %3765 = vrcp.f32 %v1857_v48  ;;  %v1869_v51 = vand.u32 2147483648, %v1857_v48  ;;  %vm1863_vm14 = vweird.f32 %v1857_v48  ;;  %v1867_v60 = vand.u32 2147483647, %v1857_v48 }
 0x800   :  { %v1870_v23 = vor.u32 1.1754944e-38, %v1869_v51  ;;  %vm1868_vm1 = vcmp.eq.f32.partialorder %v1867_v60, 8.507059e+37  ;;  %v90_v51 = vld [vmem:[%s5493_s2 + $0x28] sm:$0xff] }
 0x804   :  { %v3766_v25 = vpop.eup %3765 }
 0x805   :  { %v1859_v13 = vmul.f32 %v3766_v25, %v1857_v48  ;;  %vm1864_vm13 = vweird.f32 %v3766_v25 }
 0x806   :  { %vm1865_vm15 = vmor %vm1863_vm14, %vm1864_vm13  ;;  %v1895_v37 = vpop.permute.xlu1 %1894 }
 0x807   :  { %v1860_v9 = vsub.f32 1.0, %v1859_v13 }
 0x809   :  { %v1861_v50 = vmul.f32 %v3766_v25, %v1860_v9 }
 0x80b   :  { %v1862_v35 = vadd.f32 %v3766_v25, %v1861_v50 }
 0x80d   :  { %v1866_v0 = vsel %vm1865_vm15, %v3766_v25, %v1862_v35  ;;  %v64_v35 = vld [vmem:[%s5494_s25 + $0x28] sm:$0xff] }
 0x80e   :  { %v1871_v10 = vsel %vm1868_vm1, %v1870_v23, %v1866_v0  ;;  %v1034_v47 = vpop.permute.xlu1 %1033  ;;  %v626_v60 = vmul.f32 %v90_v51, %v64_v35 }
 0x80f   :  { %v1874_v12 = vmul.f32 %v1871_v10, %v4803_v53  ;;  %v547_v53 = vsub.f32 0.0, %v521_v24 }
 0x811   :  { %v577_v31 = vmul.f32 1.442695, %v547_v53 }
 0x86c   :  { %v1877_v18 = vpop.permute.xlu0 %1876 }
 0x86d   :  { %v1879_v16 = vmul.f32 %v1877_v18, %v1871_v10 }
 0x86f   :  { %1881 = vrot.lane.b32.xlu2 %v1879_v16, %s4059_s21 }
 0x877   :  { %721 = vperm.xlu2 %3658, %v651_v1  }
 0x8c9   :  { %v1882_v19 = vpop.permute.xlu2 %1881 }
 0x8ca   :  { %v4852_v17 = vadd.f32 %v1882_v19, %v1874_v12 }
 0x8cc   :  { %3767 = vtanh.f32 %v4852_v17 }
 0x8cd   :  { %3769 = vpow2.f32 %v577_v31 }
 0x8d1   :  { %v722_v61 = vpop.permute.xlu2 %721 }
 0x8d2   :  { %v3768_v20 = vpop.eup %3767 }
 0x8d3   :  { %1887 = vrot.lane.b32.xlu0 %v3768_v20, %s4058_s20  ;;  %v3770_v4 = vpop.eup %3769 }
 0x8d4   :  { %v677_v3 = vsub.f32 1.0, %v3770_v4 }
 0x8d6   :  { %v833_v11 = vmul.f32 %v722_v61, %v677_v3 }
 0x8db   :  { %877 = vperm.xlu0 %3656, %v141_v63  }
 0x8e3   :  { %1221 = vperm.xlu0 %3656, %v89_v39  }
 0x945   :  { %v1888_v40 = vpop.permute.xlu0 %1887 }
 0x946   :  { %v1890_v38 = vmul.f32 %v1888_v40, %v1871_v10 }
 0x948   :  { %v1897_v41 = vmul.f32 %v1895_v37, %v1890_v38 }
 0x94a   :  { %1899 = vrot.lane.b32.xlu2 %v1897_v41, %s4059_s21 }
 0x94d   :  { %v878_v44 = vpop.permute.xlu0 %877 }
 0x94e   :  { %v989_v39 = vmul.f32 %v878_v44, %v833_v11  ;;  %v652_v44 = vsub.f32 1.0, %v90_v51 }
 0x950   :  { %v1145_v33 = vadd.f32 %v1034_v47, %v989_v39 }
 0x952   :  { %1172 = vst.msk [vmem:[%s5483_s16 + $0x20] sm:$0xff] %vm1167_vm0, %v1145_v33  ;;  %194 = vperm.xlu2 %3658, %v116_v21   ;;  %3558 = vmatmul.msk.f32.gmra.mxu0 %vm1167_vm0, %v1145_v33 }
 0x955   :  { %v1222_v0 = vpop.permute.xlu0 %1221 }
 0x956   :  { %v1336_v18 = vmul.f32 %v4840_v42, %v1222_v0 }
 0x9a4   :  { %v1900_v49 = vpop.permute.xlu2 %1899 }
 0x9a5   :  { %3588 = vmatmul.msk.f32.vlgmr.msra.gmra.mxu2 %vm1167_vm0, %v1900_v49  ;;  %v142_v49 = vld [vmem:[%s5470_s3 + $0x28] sm:$0xff] }
 0x9a6   :  { %2335 = vmatpush.msra.mxu2 %v4754_v14 }
 0x9a8   :  { %2336 = vmatpush.msra.mxu2 %v4760_v5 }
 0x9aa   :  { %2337 = vmatpush.msra.mxu2 %v4766_v7 }
 0x9ac   :  { %v195_v46 = vpop.permute.xlu2 %194  ;;  %2338 = vmatpush.msra.mxu2 %v4774_v8 }
 0x9ad   :  { %v305_v54 = vmul.f32 %v4642_v27, %v195_v46 }
 0x9af   :  { %v334_v55 = vadd.f32 %v4649_v32, %v305_v54  ;;  %v467_v54 = vmul.f32 %v4699_v56, %v195_v46  ;;  %v117_v46 = vld [vmem:[%s5492_s1 + $0x30] sm:$0xff] }
 0x9b1   :  { %v360_v48 = vmax.f32 %v334_v55, 0.0  ;;  %v496_v55 = vadd.f32 %v4706_v26, %v467_v54 }
 0x9b3   :  { %v386_v25 = vsub.f32 0.0, %v360_v48  ;;  %v522_v48 = vmax.f32 %v496_v55, 0.0 }
 0x9b5   :  { %v417_v13 = vmul.f32 1.442695, %v386_v25 }
 0x9b7   :  { %3771 = vpow2.f32 %v417_v13 }
 0x9bd   :  { %v3772_v9 = vpop.eup %3771 }
 0x9be   :  { %1592 = vst.msk [vmem:[#allocation3 + $0x28] sm:$0xff] %vm1167_vm0, %v3772_v9 }
 0x9c5   :  { %v1961_v50 = vld [vmem:[#allocation3 + $0x28] sm:$0xff] }
 0x9c6   :  { %1964 = vrot.lane.b32.xlu2 %v1961_v50, %s4057_s27 }
 0x9ce   :  { %1038 = vperm.xlu2 %3658, %v626_v60  }
 0x9cf   :  { %v1465_v23 = vpop.f32.mrf.mxu0 }
 0x9d0   :  { %v1466_v10 = vadd.f32 %v1465_v23, %v1336_v18 }
 0x9d2   :  { %v1539_v16 = vadd.f32 %v4846_v45, %v1466_v10 }
 0xa20   :  { %v1965_v13 = vpop.permute.xlu2 %1964 }
 0xa28   :  { %v1920_v1 = vpop.f32.mrf.mxu2 }
 0xa29   :  { %v1923_v12 = vadd.f32 %v1920_v1, %v1539_v16  ;;  %v1039_v16 = vpop.permute.xlu2 %1038 }
 0xa2b   :  { %3773 = vtanh.f32 %v1923_v12  ;;  %v3589_v20 = vmul.f32 -1.442695, %v1923_v12 }
 0xa2d   :  { %3775 = vpow2.f32 %v3589_v20 }
 0xa31   :  { %v3774_v19 = vpop.eup %3773 }
 0xa32   :  { %1946 = vrot.lane.b32.xlu1 %v3774_v19, %s4058_s20 }
 0xa33   :  { %v3776_v63 = vpop.eup %3775 }
 0xa34   :  { %v1927_v52 = vadd.f32 1.0, %v3776_v63 }
 0xa36   :  { %3777 = vrcp.f32 %v1927_v52  ;;  %v1939_v40 = vand.u32 2147483648, %v1927_v52  ;;  %vm1933_vm3 = vweird.f32 %v1927_v52  ;;  %v1937_v38 = vand.u32 2147483647, %v1927_v52 }
 0xa38   :  { %v1940_v41 = vor.u32 1.1754944e-38, %v1939_v40  ;;  %vm1938_vm5 = vcmp.eq.f32.partialorder %v1937_v38, 8.507059e+37 }
 0xa3c   :  { %v3778_v22 = vpop.eup %3777 }
 0xa3d   :  { %v1929_v24 = vmul.f32 %v3778_v22, %v1927_v52  ;;  %vm1934_vm2 = vweird.f32 %v3778_v22 }
 0xa3e   :  { %vm1935_vm4 = vmor %vm1933_vm3, %vm1934_vm2 }
 0xa3f   :  { %v1930_v53 = vsub.f32 1.0, %v1929_v24 }
 0xa41   :  { %v1931_v31 = vmul.f32 %v3778_v22, %v1930_v53 }
 0xa43   :  { %v1932_v37 = vadd.f32 %v3778_v22, %v1931_v31 }
 0xa45   :  { %v1936_v4 = vsel %vm1935_vm4, %v3778_v22, %v1932_v37  ;;  %v65_v37 = vld [vmem:[%s5494_s25 + $0x30] sm:$0xff] }
 0xa46   :  { %v1941_v3 = vsel %vm1938_vm5, %v1940_v41, %v1936_v4 }
 0xa47   :  { %v1944_v39 = vmul.f32 %v1941_v3, %v4852_v17  ;;  %v548_v17 = vsub.f32 0.0, %v522_v48 }
 0xa49   :  { %v579_v25 = vmul.f32 1.442695, %v548_v17 }
 0xaa4   :  { %v1947_v61 = vpop.permute.xlu1 %1946 }
 0xaa5   :  { %v1949_v11 = vmul.f32 %v1947_v61, %v1941_v3 }
 0xaa7   :  { %1951 = vrot.lane.b32.xlu0 %v1949_v11, %s4059_s21 }
 0xaaf   :  { %726 = vperm.xlu0 %3656, %v652_v44  }
 0xb19   :  { %v1952_v47 = vpop.permute.xlu0 %1951 }
 0xb1a   :  { %v4890_v21 = vadd.f32 %v1952_v47, %v1944_v39 }
 0xb1c   :  { %3779 = vtanh.f32 %v4890_v21 }
 0xb1d   :  { %3781 = vpow2.f32 %v579_v25 }
 0xb21   :  { %v727_v0 = vpop.permute.xlu0 %726 }
 0xb22   :  { %v3780_v33 = vpop.eup %3779 }
 0xb23   :  { %1957 = vrot.lane.b32.xlu1 %v3780_v33, %s4058_s20  ;;  %v3782_v35 = vpop.eup %3781 }
 0xb24   :  { %v678_v23 = vsub.f32 1.0, %v3782_v35 }
 0xb26   :  { %v834_v18 = vmul.f32 %v727_v0, %v678_v23 }
 0xb2b   :  { %882 = vperm.xlu1 %3657, %v142_v49  }
 0xb33   :  { %1226 = vperm.xlu1 %3657, %v90_v51  }
 0xb95   :  { %v1958_v9 = vpop.permute.xlu1 %1957 }
 0xb96   :  { %v1960_v50 = vmul.f32 %v1958_v9, %v1941_v3 }
 0xb98   :  { %v1967_v60 = vmul.f32 %v1965_v13, %v1960_v50 }
 0xb9a   :  { %1969 = vrot.lane.b32.xlu0 %v1967_v60, %s4059_s21 }
 0xb9d   :  { %v883_v10 = vpop.permute.xlu1 %882 }
 0xb9e   :  { %v990_v51 = vmul.f32 %v883_v10, %v834_v18 }
 0xba0   :  { %v1146_v1 = vadd.f32 %v1039_v16, %v990_v51 }
 0xba2   :  { %1173 = vst.msk [vmem:[%s5483_s16 + $0x28] sm:$0xff] %vm1167_vm0, %v1146_v1  ;;  %199 = vperm.xlu0 %3656, %v117_v46   ;;  %3559 = vmatmul.msk.f32.gmra.mxu0 %vm1167_vm0, %v1146_v1  ;;  %v143_v46 = vld [vmem:[%s5470_s3 + $0x30] sm:$0xff] }
 0xc0c   :  { %v1970_v12 = vpop.permute.xlu0 %1969 }
 0xc0d   :  { %3590 = vmatmul.msk.f32.vlgmr.msra.gmra.mxu3 %vm1167_vm0, %v1970_v12 }
 0xc0e   :  { %2405 = vmatpush.msra.mxu3 %v4754_v14 }
 0xc10   :  { %2406 = vmatpush.msra.mxu3 %v4760_v5 }
 0xc12   :  { %2407 = vmatpush.msra.mxu3 %v4766_v7 }
 0xc14   :  { %v200_v19 = vpop.permute.xlu0 %199  ;;  %2408 = vmatpush.msra.mxu3 %v4774_v8 }
 0xc15   :  { %v306_v20 = vmul.f32 %v4642_v27, %v200_v19  ;;  %v91_v27 = vld [vmem:[%s5493_s2 + $0x30] sm:$0xff]  ;;  %v468_v1 = vmul.f32 %v4699_v56, %v200_v19  ;;  %v118_v19 = vld [vmem:[%s5492_s1 + $0x38] sm:$0xff] }
 0xc16   :  { %v627_v40 = vmul.f32 %v91_v27, %v65_v37  ;;  %v653_v23 = vsub.f32 1.0, %v91_v27 }
 0xc17   :  { %v335_v63 = vadd.f32 %v4649_v32, %v306_v20  ;;  %v1227_v32 = vpop.permute.xlu1 %1226  ;;  %v497_v12 = vadd.f32 %v4706_v26, %v468_v1 }
 0xc18   :  { %v1337_v4 = vmul.f32 %v4840_v42, %v1227_v32 }
 0xc19   :  { %v361_v52 = vmax.f32 %v335_v63, 0.0  ;;  %v523_v20 = vmax.f32 %v497_v12, 0.0 }
 0xc1b   :  { %v387_v22 = vsub.f32 0.0, %v361_v52 }
 0xc1d   :  { %v419_v24 = vmul.f32 1.442695, %v387_v22 }
 0xc1f   :  { %3783 = vpow2.f32 %v419_v24  ;;  %v1468_v38 = vpop.f32.mrf.mxu0 }
 0xc20   :  { %v1469_v41 = vadd.f32 %v1468_v38, %v1337_v4 }
 0xc22   :  { %v1540_v61 = vadd.f32 %v4846_v45, %v1469_v41 }
 0xc25   :  { %v3784_v53 = vpop.eup %3783 }
 0xc26   :  { %1593 = vst.msk [vmem:[#allocation3 + $0x30] sm:$0xff] %vm1167_vm0, %v3784_v53 }
 0xc2d   :  { %v2031_v31 = vld [vmem:[#allocation3 + $0x30] sm:$0xff] }
 0xc2e   :  { %2034 = vrot.lane.b32.xlu0 %v2031_v31, %s4057_s27 }
 0xc36   :  { %1043 = vperm.xlu0 %3656, %v627_v40  }
 0xc90   :  { %v1990_v3 = vpop.f32.mrf.mxu3 }
 0xc91   :  { %v1993_v11 = vadd.f32 %v1990_v3, %v1540_v61 }
 0xc93   :  { %3785 = vtanh.f32 %v1993_v11  ;;  %v3591_v39 = vmul.f32 -1.442695, %v1993_v11  ;;  %v4954_v11 = vld [vmem:[%s5473_s6] ss:$0 sm:$0xff]  ;;  %s3541_s6 = sshll.u32 %s5485_s18, 4  ;;  %s3542_s6 = int_to_ptr.hbm [resolvable:$true] %s3541_s6 }
 0xc95   :  { %3787 = vpow2.f32 %v3591_v39  ;;  %v4960_v39 = vld [vmem:[%s5474_s7] ss:$0 sm:$0xff] }
 0xc99   :  { %v3786_v44 = vpop.eup %3785 }
 0xc9a   :  { %2016 = vrot.lane.b32.xlu2 %v3786_v44, %s4058_s20 }
 0xc9b   :  { %v3788_v47 = vpop.eup %3787 }
 0xc9c   :  { %v1997_v33 = vadd.f32 1.0, %v3788_v47 }
 0xc9e   :  { %3789 = vrcp.f32 %v1997_v33  ;;  %v2009_v25 = vand.u32 2147483648, %v1997_v33  ;;  %vm2003_vm7 = vweird.f32 %v1997_v33  ;;  %v2007_v13 = vand.u32 2147483647, %v1997_v33 }
 0xca0   :  { %v2010_v50 = vor.u32 1.1754944e-38, %v2009_v25  ;;  %vm2008_vm9 = vcmp.eq.f32.partialorder %v2007_v13, 8.507059e+37  ;;  %v2035_v52 = vpop.permute.xlu0 %2034  ;;  %v92_v25 = vld [vmem:[%s5493_s2 + $0x38] sm:$0xff] }
 0xca4   :  { %v3790_v49 = vpop.eup %3789 }
 0xca5   :  { %v1999_v54 = vmul.f32 %v3790_v49, %v1997_v33  ;;  %vm2004_vm6 = vweird.f32 %v3790_v49 }
 0xca6   :  { %vm2005_vm8 = vmor %vm2003_vm7, %vm2004_vm6 }
 0xca7   :  { %v2000_v55 = vsub.f32 1.0, %v1999_v54 }
 0xca8   :  { %v1044_v4 = vpop.permute.xlu0 %1043 }
 0xca9   :  { %v2001_v48 = vmul.f32 %v3790_v49, %v2000_v55 }
 0xcab   :  { %v2002_v17 = vadd.f32 %v3790_v49, %v2001_v48 }
 0xcad   :  { %v2006_v9 = vsel %vm2005_vm8, %v3790_v49, %v2002_v17  ;;  %v66_v17 = vld [vmem:[%s5494_s25 + $0x38] sm:$0xff] }
 0xcae   :  { %v2011_v60 = vsel %vm2008_vm9, %v2010_v50, %v2006_v9  ;;  %v628_v13 = vmul.f32 %v92_v25, %v66_v17 }
 0xcaf   :  { %v2014_v18 = vmul.f32 %v2011_v60, %v4890_v21  ;;  %v549_v21 = vsub.f32 0.0, %v523_v20 }
 0xcb1   :  { %v581_v63 = vmul.f32 1.442695, %v549_v21 }
 0xcf4   :  { %v2017_v35 = vpop.permute.xlu2 %2016 }
 0xcf5   :  { %v2019_v0 = vmul.f32 %v2017_v35, %v2011_v60 }
 0xcf7   :  { %2021 = vrot.lane.b32.xlu1 %v2019_v0, %s4059_s21 }
 0xcff   :  { %731 = vperm.xlu1 %3657, %v653_v23  }
 0xd69   :  { %v2022_v10 = vpop.permute.xlu1 %2021 }
 0xd6a   :  { %v4928_v51 = vadd.f32 %v2022_v10, %v2014_v18 }
 0xd6c   :  { %3791 = vtanh.f32 %v4928_v51 }
 0xd6d   :  { %3793 = vpow2.f32 %v581_v63 }
 0xd71   :  { %v732_v37 = vpop.permute.xlu1 %731 }
 0xd72   :  { %v3792_v16 = vpop.eup %3791 }
 0xd73   :  { %2027 = vrot.lane.b32.xlu2 %v3792_v16, %s4058_s20  ;;  %v3794_v53 = vpop.eup %3793 }
 0xd74   :  { %v679_v40 = vsub.f32 1.0, %v3794_v53 }
 0xd76   :  { %v835_v32 = vmul.f32 %v732_v37, %v679_v40 }
 0xd7b   :  { %887 = vperm.xlu2 %3658, %v143_v46  }
 0xd83   :  { %1231 = vperm.xlu2 %3658, %v91_v27  }
 0xdcd   :  { %v2028_v22 = vpop.permute.xlu2 %2027 }
 0xdce   :  { %v2030_v24 = vmul.f32 %v2028_v22, %v2011_v60 }
 0xdd0   :  { %v2037_v31 = vmul.f32 %v2035_v52, %v2030_v24 }
 0xdd2   :  { %2039 = vrot.lane.b32.xlu1 %v2037_v31, %s4059_s21 }
 0xdd5   :  { %v888_v38 = vpop.permute.xlu2 %887 }
 0xdd6   :  { %v991_v27 = vmul.f32 %v888_v38, %v835_v32  ;;  %v654_v38 = vsub.f32 1.0, %v92_v25 }
 0xdd8   :  { %v1147_v41 = vadd.f32 %v1044_v4, %v991_v27 }
 0xdda   :  { %1174 = vst.msk [vmem:[%s5483_s16 + $0x30] sm:$0xff] %vm1167_vm0, %v1147_v41  ;;  %204 = vperm.xlu1 %3657, %v118_v19   ;;  %3560 = vmatmul.msk.f32.gmra.mxu0 %vm1167_vm0, %v1147_v41 }
 0xddd   :  { %v1232_v9 = vpop.permute.xlu2 %1231 }
 0xdde   :  { %v1338_v35 = vmul.f32 %v4840_v42, %v1232_v9 }
 0xe44   :  { %v2040_v61 = vpop.permute.xlu1 %2039 }
 0xe45   :  { %3592 = vmatmul.msk.f32.vlgmr.msrb.gmra.mxu1 %vm1167_vm0, %v2040_v61  ;;  %v144_v61 = vld [vmem:[%s5470_s3 + $0x38] sm:$0xff] }
 0xe46   :  { %2475 = vmatpush.msrb.mxu1 %v4754_v14 }
 0xe48   :  { %2476 = vmatpush.msrb.mxu1 %v4760_v5 }
 0xe4a   :  { %2477 = vmatpush.msrb.mxu1 %v4766_v7 }
 0xe4c   :  { %v205_v3 = vpop.permute.xlu1 %204  ;;  %2478 = vmatpush.msrb.mxu1 %v4774_v8 }
 0xe4d   :  { %v307_v44 = vmul.f32 %v4954_v11, %v205_v3 }
 0xe4f   :  { %v336_v47 = vadd.f32 %v4960_v39, %v307_v44  ;;  %v469_v44 = vmul.f32 %v4699_v56, %v205_v3  ;;  %v119_v56 = vld [vmem:[%s5492_s1 + $0x40] sm:$0xff] }
 0xe51   :  { %v362_v33 = vmax.f32 %v336_v47, 0.0  ;;  %v498_v47 = vadd.f32 %v4706_v26, %v469_v44 }
 0xe53   :  { %v388_v49 = vsub.f32 0.0, %v362_v33  ;;  %v524_v33 = vmax.f32 %v498_v47, 0.0 }
 0xe55   :  { %v421_v54 = vmul.f32 1.442695, %v388_v49 }
 0xe57   :  { %3795 = vpow2.f32 %v421_v54  ;;  %v1471_v50 = vpop.f32.mrf.mxu0 }
 0xe58   :  { %v1472_v60 = vadd.f32 %v1471_v50, %v1338_v35 }
 0xe5a   :  { %v1541_v0 = vadd.f32 %v4846_v45, %v1472_v60 }
 0xe5d   :  { %v3796_v55 = vpop.eup %3795 }
 0xe5e   :  { %1594 = vst.msk [vmem:[#allocation3 + $0x38] sm:$0xff] %vm1167_vm0, %v3796_v55 }
 0xe65   :  { %v2101_v48 = vld [vmem:[#allocation3 + $0x38] sm:$0xff] }
 0xe66   :  { %2104 = vrot.lane.b32.xlu1 %v2101_v48, %s4057_s27 }
 0xe6e   :  { %1048 = vperm.xlu1 %3657, %v628_v13  }
 0xec2   :  { %v2060_v23 = vpop.f32.mrf.mxu1 }
 0xec3   :  { %v2063_v18 = vadd.f32 %v2060_v23, %v1541_v0 }
 0xec5   :  { %3797 = vtanh.f32 %v2063_v18  ;;  %v3593_v16 = vmul.f32 -1.442695, %v2063_v18 }
 0xec7   :  { %3799 = vpow2.f32 %v3593_v16 }
 0xecb   :  { %v3798_v10 = vpop.eup %3797 }
 0xecc   :  { %2086 = vrot.lane.b32.xlu0 %v3798_v10, %s4058_s20 }
 0xecd   :  { %v3800_v46 = vpop.eup %3799 }
 0xece   :  { %v2067_v1 = vadd.f32 1.0, %v3800_v46 }
 0xed0   :  { %3801 = vrcp.f32 %v2067_v1  ;;  %v2079_v22 = vand.u32 2147483648, %v2067_v1  ;;  %vm2073_vm11 = vweird.f32 %v2067_v1  ;;  %v2077_v24 = vand.u32 2147483647, %v2067_v1 }
 0xed2   :  { %v2080_v31 = vor.u32 1.1754944e-38, %v2079_v22  ;;  %vm2078_vm13 = vcmp.eq.f32.partialorder %v2077_v24, 8.507059e+37 }
 0xed6   :  { %v3802_v12 = vpop.eup %3801 }
 0xed7   :  { %v2069_v20 = vmul.f32 %v3802_v12, %v2067_v1  ;;  %vm2074_vm10 = vweird.f32 %v3802_v12 }
 0xed8   :  { %vm2075_vm12 = vmor %vm2073_vm11, %vm2074_vm10  ;;  %v2105_v54 = vpop.permute.xlu1 %2104 }
 0xed9   :  { %v2070_v21 = vsub.f32 1.0, %v2069_v20 }
 0xedb   :  { %v2071_v63 = vmul.f32 %v3802_v12, %v2070_v21 }
 0xedd   :  { %v2072_v52 = vadd.f32 %v3802_v12, %v2071_v63 }
 0xedf   :  { %v2076_v53 = vsel %vm2075_vm12, %v3802_v12, %v2072_v52 }
 0xee0   :  { %v2081_v40 = vsel %vm2078_vm13, %v2080_v31, %v2076_v53  ;;  %v1049_v0 = vpop.permute.xlu1 %1048 }
 0xee1   :  { %v2084_v27 = vmul.f32 %v2081_v40, %v4928_v51  ;;  %v550_v51 = vsub.f32 0.0, %v524_v33 }
 0xee3   :  { %v583_v49 = vmul.f32 1.442695, %v550_v51 }
 0xf3e   :  { %v2087_v37 = vpop.permute.xlu0 %2086 }
 0xf3f   :  { %v2089_v32 = vmul.f32 %v2087_v37, %v2081_v40 }
 0xf41   :  { %2091 = vrot.lane.b32.xlu2 %v2089_v32, %s4059_s21 }
 0xf49   :  { %736 = vperm.xlu2 %3658, %v654_v38  }
 0xf9b   :  { %v2092_v4 = vpop.permute.xlu2 %2091 }
 0xf9c   :  { %v4976_v19 = vadd.f32 %v2092_v4, %v2084_v27 }
 0xf9e   :  { %3803 = vtanh.f32 %v4976_v19 }
 0xf9f   :  { %3805 = vpow2.f32 %v583_v49 }
 0xfa3   :  { %v737_v9 = vpop.permute.xlu2 %736 }
 0xfa4   :  { %v3804_v41 = vpop.eup %3803 }
 0xfa5   :  { %2097 = vrot.lane.b32.xlu0 %v3804_v41, %s4058_s20  ;;  %v3806_v17 = vpop.eup %3805 }
 0xfa6   :  { %v680_v50 = vsub.f32 1.0, %v3806_v17 }
 0xfa8   :  { %v836_v35 = vmul.f32 %v737_v9, %v680_v50 }
 0xfad   :  { %892 = vperm.xlu0 %3656, %v144_v61  }
 0xfb5   :  { %1236 = vperm.xlu0 %3656, %v92_v25  }
0x1017   :  { %v2098_v55 = vpop.permute.xlu0 %2097 }
0x1018   :  { %v2100_v48 = vmul.f32 %v2098_v55, %v2081_v40 }
0x101a   :  { %v2107_v13 = vmul.f32 %v2105_v54, %v2100_v48 }
0x101c   :  { %2109 = vrot.lane.b32.xlu2 %v2107_v13, %s4059_s21 }
0x101f   :  { %v893_v60 = vpop.permute.xlu0 %892 }
0x1020   :  { %v992_v25 = vmul.f32 %v893_v60, %v836_v35  ;;  %v145_v35 = vld [vmem:[%s5470_s3 + $0x40] sm:$0xff] }
0x1021   :  { %v5024_v60 = vld [vmem:[%s5475_s8] ss:$0 sm:$0xff] }
0x1022   :  { %v1148_v26 = vadd.f32 %v1049_v0, %v992_v25  ;;  %v5030_v25 = vld [vmem:[%s5476_s9] ss:$0 sm:$0xff] }
0x1024   :  { %1175 = vst.msk [vmem:[%s5483_s16 + $0x38] sm:$0xff] %vm1167_vm0, %v1148_v26  ;;  %209 = vperm.xlu2 %3658, %v119_v56   ;;  %3561 = vmatmul.msk.f32.gmra.mxu0 %vm1167_vm0, %v1148_v26 }
0x1076   :  { %v2110_v3 = vpop.permute.xlu2 %2109 }
0x1077   :  { %3594 = vmatmul.msk.f32.vlgmr.msrb.gmra.mxu2 %vm1167_vm0, %v2110_v3 }
0x1078   :  { %2545 = vmatpush.msrb.mxu2 %v4754_v14  ;;  %v67_v14 = vld [vmem:[%s5494_s25 + $0x40] sm:$0xff] }
0x107a   :  { %2546 = vmatpush.msrb.mxu2 %v4760_v5  ;;  %v93_v5 = vld [vmem:[%s5493_s2 + $0x40] sm:$0xff] }
0x107b   :  { %v655_v48 = vsub.f32 1.0, %v93_v5 }
0x107c   :  { %2547 = vmatpush.msrb.mxu2 %v4766_v7  ;;  %v629_v7 = vmul.f32 %v93_v5, %v67_v14 }
0x107e   :  { %v210_v23 = vpop.permute.xlu2 %209  ;;  %2548 = vmatpush.msrb.mxu2 %v4774_v8  ;;  %v1237_v8 = vpop.permute.xlu0 %1236 }
0x107f   :  { %v308_v18 = vmul.f32 %v4954_v11, %v210_v23  ;;  %v1339_v63 = vmul.f32 %v4840_v42, %v1237_v8  ;;  %v120_v8 = vld [vmem:[%s5492_s1 + $0x48] sm:$0xff] }
0x1081   :  { %v337_v10 = vadd.f32 %v4960_v39, %v308_v18 }
0x1083   :  { %v363_v16 = vmax.f32 %v337_v10, 0.0 }
0x1085   :  { %v389_v46 = vsub.f32 0.0, %v363_v16 }
0x1087   :  { %v423_v1 = vmul.f32 1.442695, %v389_v46 }
0x1089   :  { %3807 = vpow2.f32 %v423_v1 }
0x108f   :  { %v3808_v12 = vpop.eup %3807 }
0x1090   :  { %1595 = vst.msk [vmem:[#allocation3 + $0x40] sm:$0xff] %vm1167_vm0, %v3808_v12 }
0x1097   :  { %v2171_v20 = vld [vmem:[#allocation3 + $0x40] sm:$0xff] }
0x1098   :  { %2174 = vrot.lane.b32.xlu2 %v2171_v20, %s4057_s27 }
0x10a0   :  { %1053 = vperm.xlu2 %3658, %v629_v7  }
0x10a1   :  { %v1474_v21 = vpop.f32.mrf.mxu0 }
0x10a2   :  { %v1475_v52 = vadd.f32 %v1474_v21, %v1339_v63 }
0x10a4   :  { %v1542_v22 = vadd.f32 %v4846_v45, %v1475_v52  ;;  %v5046_v52 = vld [vmem:[%s5479_s12 + $0x18] sm:$0xff] }
0x10f2   :  { %v2175_v18 = vpop.permute.xlu2 %2174 }
0x10fa   :  { %v2130_v24 = vpop.f32.mrf.mxu2  ;;  %v1054_v7 = vpop.permute.xlu2 %1053 }
0x10fb   :  { %v2133_v53 = vadd.f32 %v2130_v24, %v1542_v22  ;;  %v5052_v22 = vld [vmem:[%s5479_s12 + $0x10] sm:$0xff]  ;;  %v5058_v24 = vld [vmem:[%s5479_s12 + $0x8] sm:$0xff] }
0x10fd   :  { %3809 = vtanh.f32 %v2133_v53  ;;  %v3595_v37 = vmul.f32 -1.442695, %v2133_v53 }
0x10ff   :  { %3811 = vpow2.f32 %v3595_v37 }
0x1103   :  { %v3810_v31 = vpop.eup %3809 }
0x1104   :  { %2156 = vrot.lane.b32.xlu1 %v3810_v31, %s4058_s20  ;;  %v5064_v31 = vld [vmem:[%s5479_s12] sm:$0xff] }
0x1105   :  { %v3812_v40 = vpop.eup %3811 }
0x1106   :  { %v2137_v32 = vadd.f32 1.0, %v3812_v40 }
0x1108   :  { %3813 = vrcp.f32 %v2137_v32  ;;  %v2149_v44 = vand.u32 2147483648, %v2137_v32  ;;  %vm2143_vm15 = vweird.f32 %v2137_v32  ;;  %v2147_v47 = vand.u32 2147483647, %v2137_v32 }
0x110a   :  { %v2150_v51 = vor.u32 1.1754944e-38, %v2149_v44  ;;  %vm2148_vm2 = vcmp.eq.f32.partialorder %v2147_v47, 8.507059e+37  ;;  %v94_v44 = vld [vmem:[%s5493_s2 + $0x48] sm:$0xff] }
0x110e   :  { %v3814_v38 = vpop.eup %3813 }
0x110f   :  { %v2139_v27 = vmul.f32 %v3814_v38, %v2137_v32  ;;  %vm2144_vm14 = vweird.f32 %v3814_v38 }
0x1110   :  { %vm2145_vm1 = vmor %vm2143_vm15, %vm2144_vm14 }
0x1111   :  { %v2140_v4 = vsub.f32 1.0, %v2139_v27 }
0x1113   :  { %v2141_v41 = vmul.f32 %v3814_v38, %v2140_v4 }
0x1115   :  { %v2142_v61 = vadd.f32 %v3814_v38, %v2141_v41 }
0x1117   :  { %v2146_v33 = vsel %vm2145_vm1, %v3814_v38, %v2142_v61  ;;  %v68_v61 = vld [vmem:[%s5494_s25 + $0x48] sm:$0xff] }
0x1118   :  { %v2151_v54 = vsel %vm2148_vm2, %v2150_v51, %v2146_v33  ;;  %v630_v47 = vmul.f32 %v94_v44, %v68_v61 }
0x1119   :  { %v2154_v17 = vmul.f32 %v2151_v54, %v4976_v19  ;;  %v470_v19 = vmul.f32 %v5024_v60, %v210_v23 }
0x111b   :  { %v499_v0 = vadd.f32 %v5030_v25, %v470_v19 }
0x111d   :  { %v525_v56 = vmax.f32 %v499_v0, 0.0 }
0x111f   :  { %v551_v26 = vsub.f32 0.0, %v525_v56 }
0x1121   :  { %v585_v3 = vmul.f32 1.442695, %v551_v26 }
0x1176   :  { %v2157_v49 = vpop.permute.xlu1 %2156 }
0x1177   :  { %v2159_v55 = vmul.f32 %v2157_v49, %v2151_v54 }
0x1179   :  { %2161 = vrot.lane.b32.xlu0 %v2159_v55, %s4059_s21 }
0x1181   :  { %741 = vperm.xlu0 %3656, %v655_v48  }
0x11eb   :  { %v2162_v13 = vpop.permute.xlu0 %2161 }
0x11ec   :  { %v5014_v9 = vadd.f32 %v2162_v13, %v2154_v17 }
0x11ee   :  { %3815 = vtanh.f32 %v5014_v9 }
0x11ef   :  { %3817 = vpow2.f32 %v585_v3 }
0x11f3   :  { %v742_v12 = vpop.permute.xlu0 %741 }
0x11f4   :  { %v3816_v50 = vpop.eup %3815 }
0x11f5   :  { %2167 = vrot.lane.b32.xlu1 %v3816_v50, %s4058_s20  ;;  %v3818_v46 = vpop.eup %3817 }
0x11f6   :  { %v681_v20 = vsub.f32 1.0, %v3818_v46 }
0x11f8   :  { %v837_v23 = vmul.f32 %v742_v12, %v681_v20  ;;  %v656_v20 = vsub.f32 1.0, %v94_v44 }
0x11fd   :  { %897 = vperm.xlu1 %3657, %v145_v35  }
0x1205   :  { %1241 = vperm.xlu1 %3657, %v93_v5  }
0x1267   :  { %v2168_v10 = vpop.permute.xlu1 %2167 }
0x1268   :  { %v2170_v16 = vmul.f32 %v2168_v10, %v2151_v54 }
0x126a   :  { %v2177_v1 = vmul.f32 %v2175_v18, %v2170_v16 }
0x126c   :  { %2179 = vrot.lane.b32.xlu0 %v2177_v1, %s4059_s21 }
0x126f   :  { %v898_v14 = vpop.permute.xlu1 %897 }
0x1270   :  { %v993_v5 = vmul.f32 %v898_v14, %v837_v23 }
0x1272   :  { %v1149_v21 = vadd.f32 %v1054_v7, %v993_v5 }
0x1274   :  { %1176 = vst.msk [vmem:[%s5483_s16 + $0x40] sm:$0xff] %vm1167_vm0, %v1149_v21  ;;  %214 = vperm.xlu0 %3656, %v120_v8   ;;  %3562 = vmatmul.msk.f32.gmra.mxu0 %vm1167_vm0, %v1149_v21  ;;  %v146_v8 = vld [vmem:[%s5470_s3 + $0x48] sm:$0xff] }
0x1277   :  { %v1242_v33 = vpop.permute.xlu1 %1241 }
0x1278   :  { %v1340_v49 = vmul.f32 %v4840_v42, %v1242_v33 }
0x12de   :  { %v2180_v63 = vpop.permute.xlu0 %2179 }
0x12df   :  { %3596 = vmatmul.msk.f32.vlgmr.msrb.gmra.mxu3 %vm1167_vm0, %v2180_v63 }
0x12e0   :  { %2615 = vmatpush.msrb.mxu3 %v5046_v52 }
0x12e2   :  { %2616 = vmatpush.msrb.mxu3 %v5052_v22 }
0x12e4   :  { %2617 = vmatpush.msrb.mxu3 %v5058_v24 }
0x12e6   :  { %v215_v53 = vpop.permute.xlu0 %214  ;;  %2618 = vmatpush.msrb.mxu3 %v5064_v31 }
0x12e7   :  { %v309_v37 = vmul.f32 %v4954_v11, %v215_v53  ;;  %v471_v21 = vmul.f32 %v5024_v60, %v215_v53  ;;  %v121_v53 = vld [vmem:[%s5492_s1 + $0x50] sm:$0xff] }
0x12e9   :  { %v338_v40 = vadd.f32 %v4960_v39, %v309_v37  ;;  %v500_v63 = vadd.f32 %v5030_v25, %v471_v21 }
0x12eb   :  { %v364_v32 = vmax.f32 %v338_v40, 0.0  ;;  %v526_v37 = vmax.f32 %v500_v63, 0.0 }
0x12ed   :  { %v390_v38 = vsub.f32 0.0, %v364_v32 }
0x12ef   :  { %v425_v27 = vmul.f32 1.442695, %v390_v38 }
0x12f1   :  { %3819 = vpow2.f32 %v425_v27  ;;  %v1477_v51 = vpop.f32.mrf.mxu0 }
0x12f2   :  { %v1478_v54 = vadd.f32 %v1477_v51, %v1340_v49 }
0x12f4   :  { %v1543_v55 = vadd.f32 %v4846_v45, %v1478_v54 }
0x12f7   :  { %v3820_v4 = vpop.eup %3819 }
0x12f8   :  { %1596 = vst.msk [vmem:[#allocation3 + $0x48] sm:$0xff] %vm1167_vm0, %v3820_v4 }
0x12ff   :  { %v2241_v41 = vld [vmem:[#allocation3 + $0x48] sm:$0xff] }
0x1300   :  { %2244 = vrot.lane.b32.xlu0 %v2241_v41, %s4057_s27 }
0x1308   :  { %1058 = vperm.xlu0 %3656, %v630_v47  }
0x1362   :  { %v2200_v48 = vpop.f32.mrf.mxu3 }
0x1363   :  { %v2203_v17 = vadd.f32 %v2200_v48, %v1543_v55 }
0x1365   :  { %3821 = vtanh.f32 %v2203_v17  ;;  %v3597_v50 = vmul.f32 -1.442695, %v2203_v17 }
0x1367   :  { %3823 = vpow2.f32 %v3597_v50 }
0x136b   :  { %v3822_v13 = vpop.eup %3821 }
0x136c   :  { %2226 = vrot.lane.b32.xlu2 %v3822_v13, %s4058_s20 }
0x136d   :  { %v3824_v35 = vpop.eup %3823 }
0x136e   :  { %v2207_v19 = vadd.f32 1.0, %v3824_v35 }
0x1370   :  { %3825 = vrcp.f32 %v2207_v19  ;;  %v2219_v42 = vand.u32 2147483648, %v2207_v19  ;;  %vm2213_vm4 = vweird.f32 %v2207_v19  ;;  %v2217_v45 = vand.u32 2147483647, %v2207_v19 }
0x1372   :  { %v2220_v16 = vor.u32 1.1754944e-38, %v2219_v42  ;;  %vm2218_vm6 = vcmp.eq.f32.partialorder %v2217_v45, 8.507059e+37  ;;  %v2245_v32 = vpop.permute.xlu0 %2244 }
0x1376   :  { %v3826_v0 = vpop.eup %3825 }
0x1377   :  { %v2209_v56 = vmul.f32 %v3826_v0, %v2207_v19  ;;  %vm2214_vm3 = vweird.f32 %v3826_v0 }
0x1378   :  { %vm2215_vm5 = vmor %vm2213_vm4, %vm2214_vm3 }
0x1379   :  { %v2210_v26 = vsub.f32 1.0, %v2209_v56 }
0x137a   :  { %v1059_v49 = vpop.permute.xlu0 %1058 }
0x137b   :  { %v2211_v3 = vmul.f32 %v3826_v0, %v2210_v26  ;;  %v69_v26 = vld [vmem:[%s5494_s25 + $0x50] sm:$0xff] }
0x137d   :  { %v2212_v18 = vadd.f32 %v3826_v0, %v2211_v3  ;;  %v95_v3 = vld [vmem:[%s5493_s2 + $0x50] sm:$0xff] }
0x137f   :  { %v2216_v10 = vsel %vm2215_vm5, %v3826_v0, %v2212_v18  ;;  %v631_v18 = vmul.f32 %v95_v3, %v69_v26 }
0x1380   :  { %v2221_v1 = vsel %vm2218_vm6, %v2220_v16, %v2216_v10  ;;  %v5118_v10 = vld [vmem:[%s5478_s11] ss:$0 sm:$0xff] }
0x1381   :  { %v2224_v23 = vmul.f32 %v2221_v1, %v5014_v9  ;;  %v552_v9 = vsub.f32 0.0, %v526_v37 }
0x1383   :  { %v587_v40 = vmul.f32 1.442695, %v552_v9 }
0x13c6   :  { %v2227_v46 = vpop.permute.xlu2 %2226 }
0x13c7   :  { %v2229_v12 = vmul.f32 %v2227_v46, %v2221_v1 }
0x13c9   :  { %2231 = vrot.lane.b32.xlu1 %v2229_v12, %s4059_s21 }
0x13d1   :  { %746 = vperm.xlu1 %3657, %v656_v20  }
0x143b   :  { %v2232_v14 = vpop.permute.xlu1 %2231 }
0x143c   :  { %v5082_v5 = vadd.f32 %v2232_v14, %v2224_v23 }
0x143e   :  { %3827 = vtanh.f32 %v5082_v5 }
0x143f   :  { %3829 = vpow2.f32 %v587_v40 }
0x1443   :  { %v747_v61 = vpop.permute.xlu1 %746 }
0x1444   :  { %v3828_v7 = vpop.eup %3827 }
0x1445   :  { %2237 = vrot.lane.b32.xlu2 %v3828_v7, %s4058_s20  ;;  %v3830_v4 = vpop.eup %3829 }
0x1446   :  { %v682_v47 = vsub.f32 1.0, %v3830_v4 }
0x1448   :  { %v838_v33 = vmul.f32 %v747_v61, %v682_v47 }
0x144d   :  { %902 = vperm.xlu2 %3658, %v146_v8  }
0x1455   :  { %1246 = vperm.xlu2 %3658, %v94_v44  }
0x149f   :  { %v2238_v38 = vpop.permute.xlu2 %2237 }
0x14a0   :  { %v2240_v27 = vmul.f32 %v2238_v38, %v2221_v1  ;;  %v5124_v1 = vld [vmem:[%s5480_s13] ss:$0 sm:$0xff] }
0x14a2   :  { %v2247_v41 = vmul.f32 %v2245_v32, %v2240_v27 }
0x14a4   :  { %2249 = vrot.lane.b32.xlu1 %v2247_v41, %s4059_s21 }
0x14a7   :  { %v903_v51 = vpop.permute.xlu2 %902 }
0x14a8   :  { %v994_v44 = vmul.f32 %v903_v51, %v838_v33  ;;  %v657_v51 = vsub.f32 1.0, %v95_v3 }
0x14aa   :  { %v1150_v54 = vadd.f32 %v1059_v49, %v994_v44 }
0x14ac   :  { %1177 = vst.msk [vmem:[%s5483_s16 + $0x48] sm:$0xff] %vm1167_vm0, %v1150_v54  ;;  %219 = vperm.xlu1 %3657, %v121_v53   ;;  %3563 = vmatmul.msk.f32.gmra.mxu0 %vm1167_vm0, %v1150_v54 }
0x14af   :  { %v1247_v42 = vpop.permute.xlu2 %1246 }
0x14b0   :  { %v1341_v16 = vmul.f32 %v5118_v10, %v1247_v42 }
0x1516   :  { %v2250_v55 = vpop.permute.xlu1 %2249 }
0x1517   :  { %3598 = vmatmul.msk.f32.vlgmr.msra.gmra.mxu1 %vm1167_vm0, %v2250_v55  ;;  %v147_v55 = vld [vmem:[%s5470_s3 + $0x50] sm:$0xff] }
0x1518   :  { %2685 = vmatpush.msra.mxu1 %v5046_v52 }
0x151a   :  { %2686 = vmatpush.msra.mxu1 %v5052_v22 }
0x151c   :  { %2687 = vmatpush.msra.mxu1 %v5058_v24 }
0x151e   :  { %v220_v48 = vpop.permute.xlu1 %219  ;;  %2688 = vmatpush.msra.mxu1 %v5064_v31 }
0x151f   :  { %v310_v17 = vmul.f32 %v4954_v11, %v220_v48 }
0x1521   :  { %v339_v13 = vadd.f32 %v4960_v39, %v310_v17  ;;  %v472_v17 = vmul.f32 %v5024_v60, %v220_v48  ;;  %v122_v48 = vld [vmem:[%s5492_s1 + $0x58] sm:$0xff] }
0x1523   :  { %v365_v50 = vmax.f32 %v339_v13, 0.0  ;;  %v501_v13 = vadd.f32 %v5030_v25, %v472_v17 }
0x1525   :  { %v391_v35 = vsub.f32 0.0, %v365_v50  ;;  %v527_v50 = vmax.f32 %v501_v13, 0.0 }
0x1527   :  { %v427_v19 = vmul.f32 1.442695, %v391_v35 }
0x1529   :  { %3831 = vpow2.f32 %v427_v19  ;;  %v1480_v45 = vpop.f32.mrf.mxu0 }
0x152a   :  { %v1481_v46 = vadd.f32 %v1480_v45, %v1341_v16 }
0x152c   :  { %v1544_v12 = vadd.f32 %v5124_v1, %v1481_v46 }
0x152f   :  { %v3832_v0 = vpop.eup %3831 }
0x1530   :  { %1597 = vst.msk [vmem:[#allocation3 + $0x50] sm:$0xff] %vm1167_vm0, %v3832_v0 }
0x1537   :  { %v2311_v56 = vld [vmem:[#allocation3 + $0x50] sm:$0xff] }
0x1538   :  { %2314 = vrot.lane.b32.xlu1 %v2311_v56, %s4057_s27 }
0x1540   :  { %1063 = vperm.xlu1 %3657, %v631_v18  }
0x1594   :  { %v2270_v20 = vpop.f32.mrf.mxu1 }
0x1595   :  { %v2273_v23 = vadd.f32 %v2270_v20, %v1544_v12 }
0x1597   :  { %3833 = vtanh.f32 %v2273_v23  ;;  %v3599_v7 = vmul.f32 -1.442695, %v2273_v23 }
0x1599   :  { %3835 = vpow2.f32 %v3599_v7 }
0x159d   :  { %v3834_v14 = vpop.eup %3833 }
0x159e   :  { %2296 = vrot.lane.b32.xlu0 %v3834_v14, %s4058_s20 }
0x159f   :  { %v3836_v8 = vpop.eup %3835 }
0x15a0   :  { %v2277_v21 = vadd.f32 1.0, %v3836_v8 }
0x15a2   :  { %3837 = vrcp.f32 %v2277_v21  ;;  %v2289_v38 = vand.u32 2147483648, %v2277_v21  ;;  %vm2283_vm8 = vweird.f32 %v2277_v21  ;;  %v2287_v27 = vand.u32 2147483647, %v2277_v21 }
0x15a4   :  { %v2290_v41 = vor.u32 1.1754944e-38, %v2289_v38  ;;  %vm2288_vm10 = vcmp.eq.f32.partialorder %v2287_v27, 8.507059e+37  ;;  %v96_v38 = vld [vmem:[%s5493_s2 + $0x58] sm:$0xff] }
0x15a8   :  { %v3838_v63 = vpop.eup %3837 }
0x15a9   :  { %v2279_v37 = vmul.f32 %v3838_v63, %v2277_v21  ;;  %vm2284_vm7 = vweird.f32 %v3838_v63 }
0x15aa   :  { %vm2285_vm9 = vmor %vm2283_vm8, %vm2284_vm7  ;;  %v2315_v19 = vpop.permute.xlu1 %2314 }
0x15ab   :  { %v2280_v9 = vsub.f32 1.0, %v2279_v37 }
0x15ad   :  { %v2281_v40 = vmul.f32 %v3838_v63, %v2280_v9 }
0x15af   :  { %v2282_v32 = vadd.f32 %v3838_v63, %v2281_v40 }
0x15b1   :  { %v2286_v4 = vsel %vm2285_vm9, %v3838_v63, %v2282_v32  ;;  %v70_v32 = vld [vmem:[%s5494_s25 + $0x58] sm:$0xff] }
0x15b2   :  { %v2291_v47 = vsel %vm2288_vm10, %v2290_v41, %v2286_v4  ;;  %v1064_v12 = vpop.permute.xlu1 %1063  ;;  %v632_v27 = vmul.f32 %v96_v38, %v70_v32 }
0x15b3   :  { %v2294_v44 = vmul.f32 %v2291_v47, %v5082_v5  ;;  %v553_v5 = vsub.f32 0.0, %v527_v50 }
0x15b5   :  { %v589_v35 = vmul.f32 1.442695, %v553_v5 }
0x1610   :  { %v2297_v61 = vpop.permute.xlu0 %2296 }
0x1611   :  { %v2299_v33 = vmul.f32 %v2297_v61, %v2291_v47 }
0x1613   :  { %2301 = vrot.lane.b32.xlu2 %v2299_v33, %s4059_s21 }
0x161b   :  { %751 = vperm.xlu2 %3658, %v657_v51  }
0x166d   :  { %v2302_v49 = vpop.permute.xlu2 %2301 }
0x166e   :  { %v5130_v53 = vadd.f32 %v2302_v49, %v2294_v44 }
0x1670   :  { %3839 = vtanh.f32 %v5130_v53 }
0x1671   :  { %3841 = vpow2.f32 %v589_v35 }
0x1675   :  { %v752_v42 = vpop.permute.xlu2 %751 }
0x1676   :  { %v3840_v54 = vpop.eup %3839 }
0x1677   :  { %2307 = vrot.lane.b32.xlu0 %v3840_v54, %s4058_s20  ;;  %v3842_v26 = vpop.eup %3841 }
0x1678   :  { %v683_v45 = vsub.f32 1.0, %v3842_v26 }
0x167a   :  { %v839_v16 = vmul.f32 %v752_v42, %v683_v45 }
0x167f   :  { %907 = vperm.xlu0 %3656, %v147_v55  }
0x1687   :  { %1251 = vperm.xlu0 %3656, %v95_v3  }
0x16e9   :  { %v2308_v0 = vpop.permute.xlu0 %2307 }
0x16ea   :  { %v2310_v56 = vmul.f32 %v2308_v0, %v2291_v47 }
0x16ec   :  { %v2317_v18 = vmul.f32 %v2315_v19, %v2310_v56 }
0x16ee   :  { %2319 = vrot.lane.b32.xlu2 %v2317_v18, %s4059_s21 }
0x16f1   :  { %v908_v46 = vpop.permute.xlu0 %907 }
0x16f2   :  { %v995_v3 = vmul.f32 %v908_v46, %v839_v16  ;;  %v658_v46 = vsub.f32 1.0, %v96_v38 }
0x16f4   :  { %v1151_v20 = vadd.f32 %v1064_v12, %v995_v3 }
0x16f6   :  { %1178 = vst.msk [vmem:[%s5483_s16 + $0x50] sm:$0xff] %vm1167_vm0, %v1151_v20  ;;  %224 = vperm.xlu2 %3658, %v122_v48   ;;  %3564 = vmatmul.msk.f32.gmra.mxu0 %vm1167_vm0, %v1151_v20 }
0x16f9   :  { %v1252_v4 = vpop.permute.xlu0 %1251 }
0x16fa   :  { %v1342_v61 = vmul.f32 %v5118_v10, %v1252_v4 }
0x1748   :  { %v2320_v23 = vpop.permute.xlu2 %2319 }
0x1749   :  { %3600 = vmatmul.msk.f32.vlgmr.msra.gmra.mxu2 %vm1167_vm0, %v2320_v23  ;;  %v148_v23 = vld [vmem:[%s5470_s3 + $0x58] sm:$0xff] }
0x174a   :  { %2755 = vmatpush.msra.mxu2 %v5046_v52 }
0x174c   :  { %2756 = vmatpush.msra.mxu2 %v5052_v22 }
0x174e   :  { %2757 = vmatpush.msra.mxu2 %v5058_v24 }
0x1750   :  { %v225_v14 = vpop.permute.xlu2 %224  ;;  %2758 = vmatpush.msra.mxu2 %v5064_v31 }
0x1751   :  { %v311_v7 = vmul.f32 %v4954_v11, %v225_v14 }
0x1753   :  { %v340_v8 = vadd.f32 %v4960_v39, %v311_v7  ;;  %v473_v7 = vmul.f32 %v5024_v60, %v225_v14  ;;  %v123_v14 = vld [vmem:[%s5492_s1 + $0x60] sm:$0xff] }
0x1755   :  { %v366_v21 = vmax.f32 %v340_v8, 0.0  ;;  %v502_v8 = vadd.f32 %v5030_v25, %v473_v7 }
0x1757   :  { %v392_v63 = vsub.f32 0.0, %v366_v21  ;;  %v528_v21 = vmax.f32 %v502_v8, 0.0 }
0x1759   :  { %v429_v37 = vmul.f32 1.442695, %v392_v63 }
0x175b   :  { %3843 = vpow2.f32 %v429_v37 }
0x1761   :  { %v3844_v9 = vpop.eup %3843 }
0x1762   :  { %1598 = vst.msk [vmem:[#allocation3 + $0x58] sm:$0xff] %vm1167_vm0, %v3844_v9 }
0x1769   :  { %v2381_v40 = vld [vmem:[#allocation3 + $0x58] sm:$0xff] }
0x176a   :  { %2384 = vrot.lane.b32.xlu2 %v2381_v40, %s4057_s27 }
0x1772   :  { %1068 = vperm.xlu2 %3658, %v632_v27  }
0x1773   :  { %v1483_v41 = vpop.f32.mrf.mxu0 }
0x1774   :  { %v1484_v47 = vadd.f32 %v1483_v41, %v1342_v61 }
0x1776   :  { %v1545_v33 = vadd.f32 %v5124_v1, %v1484_v47 }
0x17c4   :  { %v2385_v37 = vpop.permute.xlu2 %2384 }
0x17cc   :  { %v2340_v51 = vpop.f32.mrf.mxu2 }
0x17cd   :  { %v2343_v44 = vadd.f32 %v2340_v51, %v1545_v33  ;;  %v1069_v33 = vpop.permute.xlu2 %1068 }
0x17cf   :  { %3845 = vtanh.f32 %v2343_v44  ;;  %v3601_v54 = vmul.f32 -1.442695, %v2343_v44 }
0x17d1   :  { %3847 = vpow2.f32 %v3601_v54 }
0x17d5   :  { %v3846_v49 = vpop.eup %3845 }
0x17d6   :  { %2366 = vrot.lane.b32.xlu1 %v3846_v49, %s4058_s20 }
0x17d7   :  { %v3848_v55 = vpop.eup %3847 }
0x17d8   :  { %v2347_v17 = vadd.f32 1.0, %v3848_v55 }
0x17da   :  { %3849 = vrcp.f32 %v2347_v17  ;;  %v2359_v0 = vand.u32 2147483648, %v2347_v17  ;;  %vm2353_vm12 = vweird.f32 %v2347_v17  ;;  %v2357_v56 = vand.u32 2147483647, %v2347_v17 }
0x17dc   :  { %v2360_v18 = vor.u32 1.1754944e-38, %v2359_v0  ;;  %vm2358_vm14 = vcmp.eq.f32.partialorder %v2357_v56, 8.507059e+37 }
0x17e0   :  { %v3850_v13 = vpop.eup %3849 }
0x17e1   :  { %v2349_v50 = vmul.f32 %v3850_v13, %v2347_v17  ;;  %vm2354_vm11 = vweird.f32 %v3850_v13 }
0x17e2   :  { %vm2355_vm13 = vmor %vm2353_vm12, %vm2354_vm11 }
0x17e3   :  { %v2350_v5 = vsub.f32 1.0, %v2349_v50 }
0x17e5   :  { %v2351_v35 = vmul.f32 %v3850_v13, %v2350_v5 }
0x17e7   :  { %v2352_v19 = vadd.f32 %v3850_v13, %v2351_v35 }
0x17e9   :  { %v2356_v26 = vsel %vm2355_vm13, %v3850_v13, %v2352_v19  ;;  %v71_v19 = vld [vmem:[%s5494_s25 + $0x60] sm:$0xff] }
0x17ea   :  { %v2361_v45 = vsel %vm2358_vm14, %v2360_v18, %v2356_v26 }
0x17eb   :  { %v2364_v3 = vmul.f32 %v2361_v45, %v5130_v53  ;;  %v554_v53 = vsub.f32 0.0, %v528_v21 }
0x17ed   :  { %v591_v63 = vmul.f32 1.442695, %v554_v53 }
0x1848   :  { %v2367_v42 = vpop.permute.xlu1 %2366 }
0x1849   :  { %v2369_v16 = vmul.f32 %v2367_v42, %v2361_v45 }
0x184b   :  { %2371 = vrot.lane.b32.xlu0 %v2369_v16, %s4059_s21 }
0x1853   :  { %756 = vperm.xlu0 %3656, %v658_v46  }
0x18bd   :  { %v2372_v12 = vpop.permute.xlu0 %2371 }
0x18be   :  { %v5168_v48 = vadd.f32 %v2372_v12, %v2364_v3 }
0x18c0   :  { %3851 = vtanh.f32 %v5168_v48 }
0x18c1   :  { %3853 = vpow2.f32 %v591_v63 }
0x18c5   :  { %v757_v4 = vpop.permute.xlu0 %756 }
0x18c6   :  { %v3852_v20 = vpop.eup %3851 }
0x18c7   :  { %2377 = vrot.lane.b32.xlu1 %v3852_v20, %s4058_s20  ;;  %v3854_v32 = vpop.eup %3853 }
0x18c8   :  { %v684_v41 = vsub.f32 1.0, %v3854_v32 }
0x18ca   :  { %v840_v61 = vmul.f32 %v757_v4, %v684_v41 }
0x18cf   :  { %912 = vperm.xlu1 %3657, %v148_v23  }
0x18d7   :  { %1256 = vperm.xlu1 %3657, %v96_v38  }
0x1939   :  { %v2378_v9 = vpop.permute.xlu1 %2377 }
0x193a   :  { %v2380_v40 = vmul.f32 %v2378_v9, %v2361_v45 }
0x193c   :  { %v2387_v27 = vmul.f32 %v2385_v37, %v2380_v40 }
0x193e   :  { %2389 = vrot.lane.b32.xlu0 %v2387_v27, %s4059_s21 }
0x1941   :  { %v913_v47 = vpop.permute.xlu1 %912 }
0x1942   :  { %v996_v38 = vmul.f32 %v913_v47, %v840_v61 }
0x1944   :  { %v1152_v51 = vadd.f32 %v1069_v33, %v996_v38 }
0x1946   :  { %1179 = vst.msk [vmem:[%s5483_s16 + $0x58] sm:$0xff] %vm1167_vm0, %v1152_v51  ;;  %229 = vperm.xlu0 %3656, %v123_v14   ;;  %3565 = vmatmul.msk.f32.gmra.mxu0 %vm1167_vm0, %v1152_v51  ;;  %v149_v14 = vld [vmem:[%s5470_s3 + $0x60] sm:$0xff] }
0x19b0   :  { %v2390_v44 = vpop.permute.xlu0 %2389 }
0x19b1   :  { %3602 = vmatmul.msk.f32.vlgmr.msra.gmra.mxu3 %vm1167_vm0, %v2390_v44 }
0x19b2   :  { %2825 = vmatpush.msra.mxu3 %v5046_v52 }
0x19b4   :  { %2826 = vmatpush.msra.mxu3 %v5052_v22 }
0x19b6   :  { %2827 = vmatpush.msra.mxu3 %v5058_v24 }
0x19b8   :  { %v230_v49 = vpop.permute.xlu0 %229  ;;  %2828 = vmatpush.msra.mxu3 %v5064_v31 }
0x19b9   :  { %v312_v54 = vmul.f32 %v4954_v11, %v230_v49  ;;  %v97_v11 = vld [vmem:[%s5493_s2 + $0x60] sm:$0xff]  ;;  %v474_v51 = vmul.f32 %v5024_v60, %v230_v49 }
0x19ba   :  { %v633_v0 = vmul.f32 %v97_v11, %v71_v19  ;;  %v659_v41 = vsub.f32 1.0, %v97_v11 }
0x19bb   :  { %v341_v55 = vadd.f32 %v4960_v39, %v312_v54  ;;  %v1257_v39 = vpop.permute.xlu1 %1256  ;;  %v503_v44 = vadd.f32 %v5030_v25, %v474_v51 }
0x19bc   :  { %v1343_v26 = vmul.f32 %v5118_v10, %v1257_v39 }
0x19bd   :  { %v367_v17 = vmax.f32 %v341_v55, 0.0  ;;  %v529_v54 = vmax.f32 %v503_v44, 0.0 }
0x19bf   :  { %v393_v13 = vsub.f32 0.0, %v367_v17 }
0x19c1   :  { %v431_v50 = vmul.f32 1.442695, %v393_v13 }
0x19c3   :  { %3855 = vpow2.f32 %v431_v50  ;;  %v1486_v56 = vpop.f32.mrf.mxu0 }
0x19c4   :  { %v1487_v18 = vadd.f32 %v1486_v56, %v1343_v26 }
0x19c6   :  { %v1546_v42 = vadd.f32 %v5124_v1, %v1487_v18 }
0x19c9   :  { %v3856_v5 = vpop.eup %3855 }
0x19ca   :  { %1599 = vst.msk [vmem:[#allocation3 + $0x60] sm:$0xff] %vm1167_vm0, %v3856_v5 }
0x19d1   :  { %v2451_v35 = vld [vmem:[#allocation3 + $0x60] sm:$0xff] }
0x19d2   :  { %2454 = vrot.lane.b32.xlu0 %v2451_v35, %s4057_s27 }
0x19da   :  { %1073 = vperm.xlu0 %3656, %v633_v0  }
0x1a34   :  { %v2410_v45 = vpop.f32.mrf.mxu3 }
0x1a35   :  { %v2413_v16 = vadd.f32 %v2410_v45, %v1546_v42 }
0x1a37   :  { %3857 = vtanh.f32 %v2413_v16  ;;  %v3603_v3 = vmul.f32 -1.442695, %v2413_v16 }
0x1a39   :  { %3859 = vpow2.f32 %v3603_v3 }
0x1a3d   :  { %v3858_v46 = vpop.eup %3857 }
0x1a3e   :  { %2436 = vrot.lane.b32.xlu2 %v3858_v46, %s4058_s20 }
0x1a3f   :  { %v3860_v12 = vpop.eup %3859 }
0x1a40   :  { %v2417_v20 = vadd.f32 1.0, %v3860_v12 }
0x1a42   :  { %3861 = vrcp.f32 %v2417_v20  ;;  %v2429_v63 = vand.u32 2147483648, %v2417_v20  ;;  %vm2423_vm1 = vweird.f32 %v2417_v20  ;;  %v2427_v37 = vand.u32 2147483647, %v2417_v20 }
0x1a44   :  { %v2430_v40 = vor.u32 1.1754944e-38, %v2429_v63  ;;  %vm2428_vm3 = vcmp.eq.f32.partialorder %v2427_v37, 8.507059e+37  ;;  %v2455_v17 = vpop.permute.xlu0 %2454 }
0x1a48   :  { %v3862_v23 = vpop.eup %3861 }
0x1a49   :  { %v2419_v7 = vmul.f32 %v3862_v23, %v2417_v20  ;;  %vm2424_vm15 = vweird.f32 %v3862_v23  ;;  %v2521_v20 = vld [vmem:[#allocation3 + $0x68] sm:$0xff] }
0x1a4a   :  { %vm2425_vm2 = vmor %vm2423_vm1, %vm2424_vm15 }
0x1a4b   :  { %v2420_v8 = vsub.f32 1.0, %v2419_v7 }
0x1a4c   :  { %v1074_v26 = vpop.permute.xlu0 %1073 }
0x1a4d   :  { %v2421_v21 = vmul.f32 %v3862_v23, %v2420_v8 }
0x1a4f   :  { %v2422_v53 = vadd.f32 %v3862_v23, %v2421_v21 }
0x1a51   :  { %v2426_v9 = vsel %vm2425_vm2, %v3862_v23, %v2422_v53 }
0x1a52   :  { %v2431_v27 = vsel %vm2428_vm3, %v2430_v40, %v2426_v9 }
0x1a53   :  { %v2434_v61 = vmul.f32 %v2431_v27, %v5168_v48  ;;  %v555_v48 = vsub.f32 0.0, %v529_v54  ;;  %v4011_v54 = vld [vmem:[%s5493_s2 + $0x68] sm:$0xff] }
0x1a55   :  { %v593_v55 = vmul.f32 1.442695, %v555_v48 }
0x1a98   :  { %v2437_v32 = vpop.permute.xlu2 %2436 }
0x1a99   :  { %v2439_v4 = vmul.f32 %v2437_v32, %v2431_v27 }
0x1a9b   :  { %2441 = vrot.lane.b32.xlu1 %v2439_v4, %s4059_s21 }
0x1aa3   :  { %761 = vperm.xlu1 %3657, %v659_v41  }
0x1b0d   :  { %v2442_v47 = vpop.permute.xlu1 %2441 }
0x1b0e   :  { %v5206_v38 = vadd.f32 %v2442_v47, %v2434_v61 }
0x1b10   :  { %3863 = vtanh.f32 %v5206_v38 }
0x1b11   :  { %3865 = vpow2.f32 %v593_v55 }
0x1b15   :  { %v762_v19 = vpop.permute.xlu1 %761 }
0x1b16   :  { %v3864_v33 = vpop.eup %3863 }
0x1b17   :  { %2447 = vrot.lane.b32.xlu2 %v3864_v33, %s4058_s20  ;;  %v3866_v5 = vpop.eup %3865 }
0x1b18   :  { %v685_v0 = vsub.f32 1.0, %v3866_v5 }
0x1b1a   :  { %v841_v39 = vmul.f32 %v762_v19, %v685_v0 }
0x1b1f   :  { %917 = vperm.xlu2 %3658, %v149_v14  }
0x1b27   :  { %1261 = vperm.xlu2 %3658, %v97_v11  }
0x1b71   :  { %v2448_v13 = vpop.permute.xlu2 %2447 }
0x1b72   :  { %v2450_v50 = vmul.f32 %v2448_v13, %v2431_v27 }
0x1b74   :  { %v2457_v35 = vmul.f32 %v2455_v17, %v2450_v50 }
0x1b76   :  { %2459 = vrot.lane.b32.xlu1 %v2457_v35, %s4059_s21 }
0x1b79   :  { %v918_v56 = vpop.permute.xlu2 %917 }
0x1b7a   :  { %v997_v11 = vmul.f32 %v918_v56, %v841_v39 }
0x1b7c   :  { %v1153_v60 = vadd.f32 %v1074_v26, %v997_v11  ;;  %v2591_v11 = vld [vmem:[#allocation3 + $0x70] sm:$0xff] }
0x1b7e   :  { %1180 = vst.msk [vmem:[%s5483_s16 + $0x60] sm:$0xff] %vm1167_vm0, %v1153_v60  ;;  %3566 = vmatmul.msk.f32.gmra.mxu0 %vm1167_vm0, %v1153_v60  ;;  %s3539_s16 = sshll.u32 %s4060_s22, 4  ;;  %s3540_s16 = int_to_ptr.vmem [resolvable:$true] %s3539_s16 }
0x1b81   :  { %v1262_v49 = vpop.permute.xlu2 %1261 }
0x1b82   :  { %v1344_v42 = vmul.f32 %v5118_v10, %v1262_v49 }
0x1be8   :  { %v2460_v25 = vpop.permute.xlu1 %2459 }
0x1be9   :  { %3604 = vmatmul.msk.f32.vlgmr.msrb.gmra.mxu1 %vm1167_vm0, %v2460_v25 }
0x1bea   :  { %2895 = vmatpush.msrb.mxu1 %v5046_v52 }
0x1bec   :  { %2896 = vmatpush.msrb.mxu1 %v5052_v22 }
0x1bee   :  { %2897 = vmatpush.msrb.mxu1 %v5058_v24 }
0x1bf0   :  { %2898 = vmatpush.msrb.mxu1 %v5064_v31 }
0x1bfb   :  { %v1489_v18 = vpop.f32.mrf.mxu0 }
0x1bfc   :  { %v1490_v45 = vadd.f32 %v1489_v18, %v1344_v42 }
0x1bfe   :  { %v1547_v16 = vadd.f32 %v5124_v1, %v1490_v45 }
0x1c66   :  { %v2480_v46 = vpop.f32.mrf.mxu1 }
0x1c67   :  { %v2483_v3 = vadd.f32 %v2480_v46, %v1547_v16 }
0x1c69   :  { %3867 = vtanh.f32 %v2483_v3  ;;  %v3605_v23 = vmul.f32 -1.442695, %v2483_v3 }
0x1c6b   :  { %3869 = vpow2.f32 %v3605_v23 }
0x1c6f   :  { %v3868_v12 = vpop.eup %3867 }
0x1c70   :  { %2506 = vrot.lane.b32.xlu0 %v3868_v12, %s4058_s20 }
0x1c71   :  { %v3870_v7 = vpop.eup %3869 }
0x1c72   :  { %v2487_v8 = vadd.f32 1.0, %v3870_v7 }
0x1c74   :  { %3871 = vrcp.f32 %v2487_v8  ;;  %v2499_v40 = vand.u32 2147483648, %v2487_v8  ;;  %vm2493_vm5 = vweird.f32 %v2487_v8  ;;  %v2497_v32 = vand.u32 2147483647, %v2487_v8 }
0x1c76   :  { %v2500_v4 = vor.u32 1.1754944e-38, %v2499_v40  ;;  %vm2498_vm7 = vcmp.eq.f32.partialorder %v2497_v32, 8.507059e+37 }
0x1c78   :  { %2524 = vrot.lane.b32.xlu0 %v2521_v20, %s4057_s27 }
0x1c7a   :  { %v3872_v21 = vpop.eup %3871 }
0x1c7b   :  { %v2489_v53 = vmul.f32 %v3872_v21, %v2487_v8  ;;  %vm2494_vm4 = vweird.f32 %v3872_v21 }
0x1c7c   :  { %vm2495_vm6 = vmor %vm2493_vm5, %vm2494_vm4 }
0x1c7d   :  { %v2490_v63 = vsub.f32 1.0, %v2489_v53 }
0x1c7f   :  { %v2491_v37 = vmul.f32 %v3872_v21, %v2490_v63 }
0x1c81   :  { %v2492_v9 = vadd.f32 %v3872_v21, %v2491_v37  ;;  %v4012_v37 = vld [vmem:[%s5493_s2 + $0x70] sm:$0xff] }
0x1c83   :  { %v2496_v27 = vsel %vm2495_vm6, %v3872_v21, %v2492_v9 }
0x1c84   :  { %v2501_v61 = vsel %vm2498_vm7, %v2500_v4, %v2496_v27 }
0x1c85   :  { %v2504_v33 = vmul.f32 %v2501_v61, %v5206_v38 }
0x1ce2   :  { %v2507_v41 = vpop.permute.xlu0 %2506 }
0x1ce3   :  { %v2509_v47 = vmul.f32 %v2507_v41, %v2501_v61 }
0x1ce5   :  { %2511 = vrot.lane.b32.xlu1 %v2509_v47, %s4059_s21 }
0x1cea   :  { %v2525_v17 = vpop.permute.xlu0 %2524 }
0x1d57   :  { %v2512_v14 = vpop.permute.xlu1 %2511 }
0x1d58   :  { %v2514_v51 = vadd.f32 %v2512_v14, %v2504_v33 }
0x1d5a   :  { %3873 = vtanh.f32 %v2514_v51 }
0x1d60   :  { %v3874_v44 = vpop.eup %3873 }
0x1d61   :  { %2517 = vrot.lane.b32.xlu2 %v3874_v44, %s4058_s20 }
0x1d69   :  { %1266 = vperm.xlu2 %3658, %v4011_v54   ;;  %v2661_v54 = vld [vmem:[#allocation3 + $0x78] sm:$0xff] }
0x1dbb   :  { %v2518_v48 = vpop.permute.xlu2 %2517 }
0x1dbc   :  { %v2520_v55 = vmul.f32 %v2518_v48, %v2501_v61 }
0x1dbe   :  { %v2527_v13 = vmul.f32 %v2525_v17, %v2520_v55 }
0x1dc0   :  { %2529 = vrot.lane.b32.xlu1 %v2527_v13, %s4059_s21 }
0x1dc3   :  { %v1267_v38 = vpop.permute.xlu2 %1266 }
0x1dc4   :  { %v1345_v5 = vmul.f32 %v5118_v10, %v1267_v38 }
0x1dc6   :  { %v1493_v35 = vadd.f32 %v4398_v57, %v1345_v5 }
0x1dc8   :  { %v1548_v19 = vadd.f32 %v5124_v1, %v1493_v35 }
0x1e32   :  { %v2530_v50 = vpop.permute.xlu1 %2529 }
0x1e33   :  { %3606 = vmatmul.msk.f32.vlgmr.msrb.gmra.mxu2 %vm1167_vm0, %v2530_v50 }
0x1e34   :  { %2965 = vmatpush.msrb.mxu2 %v5046_v52 }
0x1e36   :  { %2966 = vmatpush.msrb.mxu2 %v5052_v22 }
0x1e38   :  { %2967 = vmatpush.msrb.mxu2 %v5058_v24 }
0x1e3a   :  { %2968 = vmatpush.msrb.mxu2 %v5064_v31 }
0x1eb6   :  { %v2550_v0 = vpop.f32.mrf.mxu2 }
0x1eb7   :  { %v2553_v39 = vadd.f32 %v2550_v0, %v1548_v19 }
0x1eb9   :  { %3875 = vtanh.f32 %v2553_v39  ;;  %v3607_v26 = vmul.f32 -1.442695, %v2553_v39 }
0x1ebb   :  { %3877 = vpow2.f32 %v3607_v26 }
0x1ebf   :  { %v3876_v56 = vpop.eup %3875 }
0x1ec0   :  { %2576 = vrot.lane.b32.xlu0 %v3876_v56, %s4058_s20 }
0x1ec1   :  { %v3878_v60 = vpop.eup %3877 }
0x1ec2   :  { %v2557_v25 = vadd.f32 1.0, %v3878_v60 }
0x1ec4   :  { %3879 = vrcp.f32 %v2557_v25  ;;  %v2569_v16 = vand.u32 2147483648, %v2557_v25  ;;  %vm2563_vm9 = vweird.f32 %v2557_v25  ;;  %v2567_v46 = vand.u32 2147483647, %v2557_v25 }
0x1ec6   :  { %v2570_v12 = vor.u32 1.1754944e-38, %v2569_v16  ;;  %vm2568_vm11 = vcmp.eq.f32.partialorder %v2567_v46, 8.507059e+37 }
0x1ec8   :  { %2594 = vrot.lane.b32.xlu0 %v2591_v11, %s4057_s27 }
0x1eca   :  { %v3880_v49 = vpop.eup %3879 }
0x1ecb   :  { %v2559_v18 = vmul.f32 %v3880_v49, %v2557_v25  ;;  %vm2564_vm8 = vweird.f32 %v3880_v49 }
0x1ecc   :  { %vm2565_vm10 = vmor %vm2563_vm9, %vm2564_vm8 }
0x1ecd   :  { %v2560_v42 = vsub.f32 1.0, %v2559_v18 }
0x1ecf   :  { %v2561_v57 = vmul.f32 %v3880_v49, %v2560_v42  ;;  %v4013_v42 = vld [vmem:[%s5493_s2 + $0x78] sm:$0xff] }
0x1ed1   :  { %v2562_v45 = vadd.f32 %v3880_v49, %v2561_v57 }
0x1ed3   :  { %v2566_v3 = vsel %vm2565_vm10, %v3880_v49, %v2562_v45 }
0x1ed4   :  { %v2571_v23 = vsel %vm2568_vm11, %v2570_v12, %v2566_v3 }
0x1ed5   :  { %v2574_v8 = vmul.f32 %v2571_v23, %v2514_v51 }
0x1f32   :  { %v2577_v20 = vpop.permute.xlu0 %2576 }
0x1f33   :  { %v2579_v7 = vmul.f32 %v2577_v20, %v2571_v23 }
0x1f35   :  { %2581 = vrot.lane.b32.xlu1 %v2579_v7, %s4059_s21 }
0x1f3a   :  { %v2595_v32 = vpop.permute.xlu0 %2594 }
0x1fa7   :  { %v2582_v21 = vpop.permute.xlu1 %2581 }
0x1fa8   :  { %v2584_v53 = vadd.f32 %v2582_v21, %v2574_v8 }
0x1faa   :  { %3881 = vtanh.f32 %v2584_v53 }
0x1fb0   :  { %v3882_v63 = vpop.eup %3881 }
0x1fb1   :  { %2587 = vrot.lane.b32.xlu2 %v3882_v63, %s4058_s20 }
0x1fb9   :  { %1271 = vperm.xlu2 %3658, %v4012_v37  }
0x200b   :  { %v2588_v9 = vpop.permute.xlu2 %2587 }
0x200c   :  { %v2590_v40 = vmul.f32 %v2588_v9, %v2571_v23 }
0x200e   :  { %v2597_v27 = vmul.f32 %v2595_v32, %v2590_v40 }
0x2010   :  { %2599 = vrot.lane.b32.xlu1 %v2597_v27, %s4059_s21 }
0x2013   :  { %v1272_v41 = vpop.permute.xlu2 %1271 }
0x2014   :  { %v1346_v61 = vmul.f32 %v5118_v10, %v1272_v41 }
0x2016   :  { %v1496_v47 = vadd.f32 %v4400_v58, %v1346_v61 }
0x2018   :  { %v1549_v33 = vadd.f32 %v5124_v1, %v1496_v47 }
0x2082   :  { %v2600_v4 = vpop.permute.xlu1 %2599 }
0x2083   :  { %3608 = vmatmul.msk.f32.vlgmr.msrb.gmra.mxu3 %vm1167_vm0, %v2600_v4 }
0x2084   :  { %3035 = vmatpush.msrb.mxu3 %v5046_v52 }
0x2086   :  { %3036 = vmatpush.msrb.mxu3 %v5052_v22 }
0x2088   :  { %3037 = vmatpush.msrb.mxu3 %v5058_v24 }
0x208a   :  { %3038 = vmatpush.msrb.mxu3 %v5064_v31 }
0x2106   :  { %v2620_v14 = vpop.f32.mrf.mxu3 }
0x2107   :  { %v2623_v51 = vadd.f32 %v2620_v14, %v1549_v33 }
0x2109   :  { %3883 = vtanh.f32 %v2623_v51  ;;  %v3609_v48 = vmul.f32 -1.442695, %v2623_v51 }
0x210b   :  { %3885 = vpow2.f32 %v3609_v48  ;;  %v4014_v48 = vld [vmem:[%s5493_s2 + $0x80] sm:$0xff] }
0x210f   :  { %v3884_v44 = vpop.eup %3883 }
0x2110   :  { %2646 = vrot.lane.b32.xlu0 %v3884_v44, %s4058_s20 }
0x2111   :  { %v3886_v55 = vpop.eup %3885 }
0x2112   :  { %v2627_v17 = vadd.f32 1.0, %v3886_v55 }
0x2114   :  { %3887 = vrcp.f32 %v2627_v17  ;;  %v2639_v35 = vand.u32 2147483648, %v2627_v17  ;;  %vm2633_vm13 = vweird.f32 %v2627_v17  ;;  %v2637_v19 = vand.u32 2147483647, %v2627_v17 }
0x2116   :  { %v2640_v39 = vor.u32 1.1754944e-38, %v2639_v35  ;;  %vm2638_vm15 = vcmp.eq.f32.partialorder %v2637_v19, 8.507059e+37  ;;  %v5301_v35 = vld [vmem:[%s5479_s12 + $0x8] sm:$0xff]  ;;  %v5307_v19 = vld [vmem:[%s5479_s12] sm:$0xff] }
0x2118   :  { %2664 = vrot.lane.b32.xlu0 %v2661_v54, %s4057_s27 }
0x211a   :  { %v3888_v13 = vpop.eup %3887 }
0x211b   :  { %v2629_v50 = vmul.f32 %v3888_v13, %v2627_v17  ;;  %vm2634_vm12 = vweird.f32 %v3888_v13 }
0x211c   :  { %vm2635_vm14 = vmor %vm2633_vm13, %vm2634_vm12 }
0x211d   :  { %v2630_v38 = vsub.f32 1.0, %v2629_v50 }
0x211f   :  { %v2631_v58 = vmul.f32 %v3888_v13, %v2630_v38 }
0x2121   :  { %v2632_v5 = vadd.f32 %v3888_v13, %v2631_v58  ;;  %v5289_v58 = vld [vmem:[%s5479_s12 + $0x18] sm:$0xff] }
0x2123   :  { %v2636_v0 = vsel %vm2635_vm14, %v3888_v13, %v2632_v5  ;;  %v5295_v5 = vld [vmem:[%s5479_s12 + $0x10] sm:$0xff] }
0x2124   :  { %v2641_v11 = vsel %vm2638_vm15, %v2640_v39, %v2636_v0 }
0x2125   :  { %v2644_v60 = vmul.f32 %v2641_v11, %v2584_v53 }
0x2182   :  { %v2647_v56 = vpop.permute.xlu0 %2646 }
0x2183   :  { %v2649_v26 = vmul.f32 %v2647_v56, %v2641_v11 }
0x2185   :  { %2651 = vrot.lane.b32.xlu1 %v2649_v26, %s4059_s21 }
0x218a   :  { %v2665_v16 = vpop.permute.xlu0 %2664 }
0x21f7   :  { %v2652_v25 = vpop.permute.xlu1 %2651 }
0x21f8   :  { %v2654_v49 = vadd.f32 %v2652_v25, %v2644_v60 }
0x21fa   :  { %3889 = vtanh.f32 %v2654_v49 }
0x2200   :  { %v3890_v18 = vpop.eup %3889 }
0x2201   :  { %2657 = vrot.lane.b32.xlu2 %v3890_v18, %s4058_s20 }
0x2209   :  { %1276 = vperm.xlu2 %3658, %v4013_v42  }
0x225b   :  { %v2658_v57 = vpop.permute.xlu2 %2657 }
0x225c   :  { %v2660_v45 = vmul.f32 %v2658_v57, %v2641_v11 }
0x225e   :  { %v2667_v46 = vmul.f32 %v2665_v16, %v2660_v45 }
0x2260   :  { %2669 = vrot.lane.b32.xlu1 %v2667_v46, %s4059_s21 }
0x2263   :  { %v1277_v12 = vpop.permute.xlu2 %1276 }
0x2264   :  { %v1347_v20 = vmul.f32 %v5118_v10, %v1277_v12 }
0x2266   :  { %v1499_v23 = vadd.f32 %v4402_v59, %v1347_v20 }
0x2268   :  { %v1550_v7 = vadd.f32 %v5124_v1, %v1499_v23 }
0x22d2   :  { %v2670_v3 = vpop.permute.xlu1 %2669 }
0x22d3   :  { %3610 = vmatmul.msk.f32.vlgmr.msra.gmra.mxu1 %vm1167_vm0, %v2670_v3 }
0x22d4   :  { %3105 = vmatpush.msra.mxu1 %v5046_v52  ;;  %v2731_v52 = vld [vmem:[#allocation3 + $0x80] sm:$0xff] }
0x22d6   :  { %3106 = vmatpush.msra.mxu1 %v5052_v22 }
0x22d8   :  { %3107 = vmatpush.msra.mxu1 %v5058_v24 }
0x22da   :  { %3108 = vmatpush.msra.mxu1 %v5064_v31 }
0x2350   :  { %v2690_v8 = vpop.f32.mrf.mxu1 }
0x2351   :  { %v2693_v21 = vadd.f32 %v2690_v8, %v1550_v7 }
0x2353   :  { %3891 = vtanh.f32 %v2693_v21  ;;  %v3611_v22 = vmul.f32 -1.442695, %v2693_v21 }
0x2355   :  { %3893 = vpow2.f32 %v3611_v22 }
0x2359   :  { %v3892_v53 = vpop.eup %3891 }
0x235a   :  { %2716 = vrot.lane.b32.xlu0 %v3892_v53, %s4058_s20 }
0x235b   :  { %v3894_v24 = vpop.eup %3893 }
0x235c   :  { %v2697_v31 = vadd.f32 1.0, %v3894_v24 }
0x235e   :  { %3895 = vrcp.f32 %v2697_v31  ;;  %v2709_v32 = vand.u32 2147483648, %v2697_v31  ;;  %vm2703_vm2 = vweird.f32 %v2697_v31  ;;  %v2707_v27 = vand.u32 2147483647, %v2697_v31 }
0x2360   :  { %v2710_v41 = vor.u32 1.1754944e-38, %v2709_v32  ;;  %vm2708_vm4 = vcmp.eq.f32.partialorder %v2707_v27, 8.507059e+37 }
0x2362   :  { %2734 = vrot.lane.b32.xlu0 %v2731_v52, %s4057_s27 }
0x2364   :  { %v3896_v63 = vpop.eup %3895 }
0x2365   :  { %v2699_v37 = vmul.f32 %v3896_v63, %v2697_v31  ;;  %vm2704_vm1 = vweird.f32 %v3896_v63 }
0x2366   :  { %vm2705_vm3 = vmor %vm2703_vm2, %vm2704_vm1 }
0x2367   :  { %v2700_v9 = vsub.f32 1.0, %v2699_v37 }
0x2369   :  { %v2701_v59 = vmul.f32 %v3896_v63, %v2700_v9 }
0x236b   :  { %v2702_v40 = vadd.f32 %v3896_v63, %v2701_v59 }
0x236d   :  { %v2706_v4 = vsel %vm2705_vm3, %v3896_v63, %v2702_v40  ;;  %v4019_v63 = vld [vmem:[%s5493_s2 + $0x88] sm:$0xff] }
0x236e   :  { %v2711_v47 = vsel %vm2708_vm4, %v2710_v41, %v2706_v4 }
0x236f   :  { %v2714_v14 = vmul.f32 %v2711_v47, %v2654_v49  ;;  %v2801_v49 = vld [vmem:[#allocation3 + $0x88] sm:$0xff] }
0x23cc   :  { %v2717_v61 = vpop.permute.xlu0 %2716 }
0x23cd   :  { %v2719_v33 = vmul.f32 %v2717_v61, %v2711_v47 }
0x23cf   :  { %2721 = vrot.lane.b32.xlu1 %v2719_v33, %s4059_s21 }
0x23d4   :  { %v2735_v13 = vpop.permute.xlu0 %2734 }
0x2441   :  { %v2722_v51 = vpop.permute.xlu1 %2721 }
0x2442   :  { %v2724_v44 = vadd.f32 %v2722_v51, %v2714_v14  ;;  %v2871_v51 = vld [vmem:[#allocation3 + $0x90] sm:$0xff] }
0x2444   :  { %3897 = vtanh.f32 %v2724_v44 }
0x244a   :  { %v3898_v54 = vpop.eup %3897 }
0x244b   :  { %2727 = vrot.lane.b32.xlu2 %v3898_v54, %s4058_s20 }
0x2453   :  { %1281 = vperm.xlu2 %3658, %v4014_v48  }
0x24a5   :  { %v2728_v55 = vpop.permute.xlu2 %2727 }
0x24a6   :  { %v2730_v17 = vmul.f32 %v2728_v55, %v2711_v47 }
0x24a8   :  { %v2737_v50 = vmul.f32 %v2735_v13, %v2730_v17 }
0x24aa   :  { %2739 = vrot.lane.b32.xlu1 %v2737_v50, %s4059_s21 }
0x24ad   :  { %v1282_v0 = vpop.permute.xlu2 %1281 }
0x24ae   :  { %v1348_v39 = vmul.f32 %v5118_v10, %v1282_v0 }
0x24b0   :  { %v1502_v56 = vadd.f32 %v4410_v34, %v1348_v39 }
0x24b2   :  { %v1551_v11 = vadd.f32 %v5124_v1, %v1502_v56 }
0x251c   :  { %v2740_v38 = vpop.permute.xlu1 %2739 }
0x251d   :  { %3612 = vmatmul.msk.f32.vlgmr.msra.gmra.mxu2 %vm1167_vm0, %v2740_v38 }
0x251e   :  { %3175 = vmatpush.msra.mxu2 %v5289_v58 }
0x2520   :  { %3176 = vmatpush.msra.mxu2 %v5295_v5 }
0x2522   :  { %3177 = vmatpush.msra.mxu2 %v5301_v35 }
0x2524   :  { %3178 = vmatpush.msra.mxu2 %v5307_v19 }
0x25a0   :  { %v2760_v26 = vpop.f32.mrf.mxu2 }
0x25a1   :  { %v2763_v60 = vadd.f32 %v2760_v26, %v1551_v11 }
0x25a3   :  { %3899 = vtanh.f32 %v2763_v60  ;;  %v3613_v18 = vmul.f32 -1.442695, %v2763_v60 }
0x25a5   :  { %3901 = vpow2.f32 %v3613_v18  ;;  %v4020_v18 = vld [vmem:[%s5493_s2 + $0x90] sm:$0xff] }
0x25a9   :  { %v3900_v25 = vpop.eup %3899 }
0x25aa   :  { %2786 = vrot.lane.b32.xlu0 %v3900_v25, %s4058_s20 }
0x25ab   :  { %v3902_v42 = vpop.eup %3901 }
0x25ac   :  { %v2767_v57 = vadd.f32 1.0, %v3902_v42 }
0x25ae   :  { %3903 = vrcp.f32 %v2767_v57  ;;  %v2779_v12 = vand.u32 2147483648, %v2767_v57  ;;  %vm2773_vm6 = vweird.f32 %v2767_v57  ;;  %v2777_v20 = vand.u32 2147483647, %v2767_v57 }
0x25b0   :  { %v2780_v7 = vor.u32 1.1754944e-38, %v2779_v12  ;;  %vm2778_vm8 = vcmp.eq.f32.partialorder %v2777_v20, 8.507059e+37 }
0x25b2   :  { %2804 = vrot.lane.b32.xlu0 %v2801_v49, %s4057_s27 }
0x25b4   :  { %v3904_v45 = vpop.eup %3903 }
0x25b5   :  { %v2769_v16 = vmul.f32 %v3904_v45, %v2767_v57  ;;  %vm2774_vm5 = vweird.f32 %v3904_v45 }
0x25b6   :  { %vm2775_vm7 = vmor %vm2773_vm6, %vm2774_vm5 }
0x25b7   :  { %v2770_v46 = vsub.f32 1.0, %v2769_v16 }
0x25b9   :  { %v2771_v34 = vmul.f32 %v3904_v45, %v2770_v46 }
0x25bb   :  { %v2772_v3 = vadd.f32 %v3904_v45, %v2771_v34 }
0x25bd   :  { %v2776_v23 = vsel %vm2775_vm7, %v3904_v45, %v2772_v3  ;;  %v5345_v3 = vld [vmem:[%s5478_s11] ss:$0 sm:$0xff] }
0x25be   :  { %v2781_v21 = vsel %vm2778_vm8, %v2780_v7, %v2776_v23  ;;  %v5352_v23 = vld [vmem:[%s5480_s13] ss:$0 sm:$0xff] }
0x25bf   :  { %v2784_v52 = vmul.f32 %v2781_v21, %v2724_v44 }
0x261c   :  { %v2787_v8 = vpop.permute.xlu0 %2786 }
0x261d   :  { %v2789_v53 = vmul.f32 %v2787_v8, %v2781_v21 }
0x261f   :  { %2791 = vrot.lane.b32.xlu1 %v2789_v53, %s4059_s21 }
0x2624   :  { %v2805_v59 = vpop.permute.xlu0 %2804 }
0x2691   :  { %v2792_v22 = vpop.permute.xlu1 %2791 }
0x2692   :  { %v2794_v24 = vadd.f32 %v2792_v22, %v2784_v52  ;;  %v2941_v52 = vld [vmem:[#allocation3 + $0x98] sm:$0xff] }
0x2694   :  { %3905 = vtanh.f32 %v2794_v24 }
0x269a   :  { %v3906_v31 = vpop.eup %3905 }
0x269b   :  { %2797 = vrot.lane.b32.xlu2 %v3906_v31, %s4058_s20 }
0x26a3   :  { %1286 = vperm.xlu2 %3658, %v4019_v63  }
0x26f5   :  { %v2798_v37 = vpop.permute.xlu2 %2797 }
0x26f6   :  { %v2800_v9 = vmul.f32 %v2798_v37, %v2781_v21 }
0x26f8   :  { %v2807_v40 = vmul.f32 %v2805_v59, %v2800_v9 }
0x26fa   :  { %2809 = vrot.lane.b32.xlu1 %v2807_v40, %s4059_s21 }
0x26fd   :  { %v1287_v27 = vpop.permute.xlu2 %1286 }
0x26fe   :  { %v1349_v4 = vmul.f32 %v5118_v10, %v1287_v27 }
0x2700   :  { %v1505_v41 = vadd.f32 %v4587_v28, %v1349_v4 }
0x2702   :  { %v1552_v61 = vadd.f32 %v5124_v1, %v1505_v41 }
0x276c   :  { %v2810_v32 = vpop.permute.xlu1 %2809 }
0x276d   :  { %3614 = vmatmul.msk.f32.vlgmr.msra.gmra.mxu3 %vm1167_vm0, %v2810_v32 }
0x276e   :  { %3245 = vmatpush.msra.mxu3 %v5289_v58 }
0x2770   :  { %3246 = vmatpush.msra.mxu3 %v5295_v5 }
0x2772   :  { %3247 = vmatpush.msra.mxu3 %v5301_v35 }
0x2774   :  { %3248 = vmatpush.msra.mxu3 %v5307_v19 }
0x27f0   :  { %v2830_v47 = vpop.f32.mrf.mxu3 }
0x27f1   :  { %v2833_v33 = vadd.f32 %v2830_v47, %v1552_v61 }
0x27f3   :  { %3907 = vtanh.f32 %v2833_v33  ;;  %v3615_v44 = vmul.f32 -1.442695, %v2833_v33 }
0x27f5   :  { %3909 = vpow2.f32 %v3615_v44 }
0x27f9   :  { %v3908_v14 = vpop.eup %3907 }
0x27fa   :  { %2856 = vrot.lane.b32.xlu0 %v3908_v14, %s4058_s20 }
0x27fb   :  { %v3910_v54 = vpop.eup %3909 }
0x27fc   :  { %v2837_v48 = vadd.f32 1.0, %v3910_v54  ;;  %v4023_v54 = vld [vmem:[%s5493_s2 + $0x98] sm:$0xff] }
0x27fe   :  { %3911 = vrcp.f32 %v2837_v48  ;;  %v2849_v1 = vand.u32 2147483648, %v2837_v48  ;;  %vm2843_vm10 = vweird.f32 %v2837_v48  ;;  %v2847_v50 = vand.u32 2147483647, %v2837_v48 }
0x2800   :  { %v2850_v0 = vor.u32 1.1754944e-38, %v2849_v1  ;;  %vm2848_vm12 = vcmp.eq.f32.partialorder %v2847_v50, 8.507059e+37 }
0x2802   :  { %2874 = vrot.lane.b32.xlu0 %v2871_v51, %s4057_s27 }
0x2804   :  { %v3912_v55 = vpop.eup %3911 }
0x2805   :  { %v2839_v10 = vmul.f32 %v3912_v55, %v2837_v48  ;;  %vm2844_vm9 = vweird.f32 %v3912_v55 }
0x2806   :  { %vm2845_vm11 = vmor %vm2843_vm10, %vm2844_vm9 }
0x2807   :  { %v2840_v17 = vsub.f32 1.0, %v2839_v10 }
0x2809   :  { %v2841_v28 = vmul.f32 %v3912_v55, %v2840_v17 }
0x280b   :  { %v2842_v13 = vadd.f32 %v3912_v55, %v2841_v28 }
0x280d   :  { %v2846_v38 = vsel %vm2845_vm11, %v3912_v55, %v2842_v13 }
0x280e   :  { %v2851_v56 = vsel %vm2848_vm12, %v2850_v0, %v2846_v38 }
0x280f   :  { %v2854_v26 = vmul.f32 %v2851_v56, %v2794_v24 }
0x286c   :  { %v2857_v39 = vpop.permute.xlu0 %2856 }
0x286d   :  { %v2859_v11 = vmul.f32 %v2857_v39, %v2851_v56 }
0x286f   :  { %2861 = vrot.lane.b32.xlu1 %v2859_v11, %s4059_s21 }
0x2874   :  { %v2875_v45 = vpop.permute.xlu0 %2874 }
0x28e1   :  { %v2862_v60 = vpop.permute.xlu1 %2861 }
0x28e2   :  { %v2864_v25 = vadd.f32 %v2862_v60, %v2854_v26 }
0x28e4   :  { %3913 = vtanh.f32 %v2864_v25 }
0x28ea   :  { %v3914_v49 = vpop.eup %3913 }
0x28eb   :  { %2867 = vrot.lane.b32.xlu2 %v3914_v49, %s4058_s20 }
0x28f3   :  { %1291 = vperm.xlu2 %3658, %v4020_v18  }
0x2945   :  { %v2868_v42 = vpop.permute.xlu2 %2867 }
0x2946   :  { %v2870_v57 = vmul.f32 %v2868_v42, %v2851_v56 }
0x2948   :  { %v2877_v16 = vmul.f32 %v2875_v45, %v2870_v57 }
0x294a   :  { %2879 = vrot.lane.b32.xlu1 %v2877_v16, %s4059_s21 }
0x294d   :  { %v1292_v34 = vpop.permute.xlu2 %1291 }
0x294e   :  { %v1350_v12 = vmul.f32 %v5345_v3, %v1292_v34 }
0x2950   :  { %v1508_v20 = vadd.f32 %v4589_v29, %v1350_v12 }
0x2952   :  { %v1553_v7 = vadd.f32 %v5352_v23, %v1508_v20 }
0x29bc   :  { %v2880_v46 = vpop.permute.xlu1 %2879 }
0x29bd   :  { %3616 = vmatmul.msk.f32.vlgmr.msrb.gmra.mxu1 %vm1167_vm0, %v2880_v46 }
0x29be   :  { %3315 = vmatpush.msrb.mxu1 %v5289_v58 }
0x29c0   :  { %3316 = vmatpush.msrb.mxu1 %v5295_v5 }
0x29c2   :  { %3317 = vmatpush.msrb.mxu1 %v5301_v35 }
0x29c4   :  { %3318 = vmatpush.msrb.mxu1 %v5307_v19 }
0x2a3a   :  { %v2900_v8 = vpop.f32.mrf.mxu1 }
0x2a3b   :  { %v2903_v21 = vadd.f32 %v2900_v8, %v1553_v7  ;;  %v4024_v8 = vld [vmem:[%s5493_s2 + $0xa0] sm:$0xff] }
0x2a3d   :  { %3915 = vtanh.f32 %v2903_v21  ;;  %v3617_v22 = vmul.f32 -1.442695, %v2903_v21 }
0x2a3f   :  { %3917 = vpow2.f32 %v3617_v22 }
0x2a43   :  { %v3916_v53 = vpop.eup %3915 }
0x2a44   :  { %2926 = vrot.lane.b32.xlu0 %v3916_v53, %s4058_s20 }
0x2a45   :  { %v3918_v24 = vpop.eup %3917 }
0x2a46   :  { %v2907_v29 = vadd.f32 1.0, %v3918_v24 }
0x2a48   :  { %3919 = vrcp.f32 %v2907_v29  ;;  %v2919_v40 = vand.u32 2147483648, %v2907_v29  ;;  %vm2913_vm14 = vweird.f32 %v2907_v29  ;;  %v2917_v32 = vand.u32 2147483647, %v2907_v29 }
0x2a4a   :  { %v2920_v4 = vor.u32 1.1754944e-38, %v2919_v40  ;;  %vm2918_vm1 = vcmp.eq.f32.partialorder %v2917_v32, 8.507059e+37  ;;  %v3081_v32 = vld [vmem:[#allocation3 + $0xa8] sm:$0xff] }
0x2a4c   :  { %2944 = vrot.lane.b32.xlu0 %v2941_v52, %s4057_s27 }
0x2a4e   :  { %v3920_v31 = vpop.eup %3919 }
0x2a4f   :  { %v2909_v63 = vmul.f32 %v3920_v31, %v2907_v29  ;;  %vm2914_vm13 = vweird.f32 %v3920_v31 }
0x2a50   :  { %vm2915_vm15 = vmor %vm2913_vm14, %vm2914_vm13 }
0x2a51   :  { %v2910_v37 = vsub.f32 1.0, %v2909_v63 }
0x2a53   :  { %v2911_v9 = vmul.f32 %v3920_v31, %v2910_v37 }
0x2a55   :  { %v2912_v59 = vadd.f32 %v3920_v31, %v2911_v9 }
0x2a57   :  { %v2916_v27 = vsel %vm2915_vm15, %v3920_v31, %v2912_v59 }
0x2a58   :  { %v2921_v61 = vsel %vm2918_vm1, %v2920_v4, %v2916_v27 }
0x2a59   :  { %v2924_v33 = vmul.f32 %v2921_v61, %v2864_v25 }
0x2ab6   :  { %v2927_v41 = vpop.permute.xlu0 %2926 }
0x2ab7   :  { %v2929_v47 = vmul.f32 %v2927_v41, %v2921_v61 }
0x2ab9   :  { %2931 = vrot.lane.b32.xlu1 %v2929_v47, %s4059_s21 }
0x2abe   :  { %v2945_v10 = vpop.permute.xlu0 %2944 }
0x2b2b   :  { %v2932_v14 = vpop.permute.xlu1 %2931 }
0x2b2c   :  { %v2934_v51 = vadd.f32 %v2932_v14, %v2924_v33 }
0x2b2e   :  { %3921 = vtanh.f32 %v2934_v51 }
0x2b34   :  { %v3922_v44 = vpop.eup %3921 }
0x2b35   :  { %2937 = vrot.lane.b32.xlu2 %v3922_v44, %s4058_s20 }
0x2b3d   :  { %1296 = vperm.xlu2 %3658, %v4023_v54  }
0x2b8f   :  { %v2938_v48 = vpop.permute.xlu2 %2937 }
0x2b90   :  { %v2940_v55 = vmul.f32 %v2938_v48, %v2921_v61 }
0x2b92   :  { %v2947_v17 = vmul.f32 %v2945_v10, %v2940_v55 }
0x2b94   :  { %2949 = vrot.lane.b32.xlu1 %v2947_v17, %s4059_s21 }
0x2b97   :  { %v1297_v13 = vpop.permute.xlu2 %1296 }
0x2b98   :  { %v1351_v1 = vmul.f32 %v5345_v3, %v1297_v13 }
0x2b9a   :  { %v1511_v50 = vadd.f32 %v4591_v30, %v1351_v1 }
0x2b9c   :  { %v1554_v38 = vadd.f32 %v5352_v23, %v1511_v50 }
0x2c06   :  { %v2950_v28 = vpop.permute.xlu1 %2949 }
0x2c07   :  { %3618 = vmatmul.msk.f32.vlgmr.msrb.gmra.mxu2 %vm1167_vm0, %v2950_v28 }
0x2c08   :  { %3385 = vmatpush.msrb.mxu2 %v5289_v58  ;;  %v3011_v58 = vld [vmem:[#allocation3 + $0xa0] sm:$0xff] }
0x2c0a   :  { %3386 = vmatpush.msrb.mxu2 %v5295_v5 }
0x2c0c   :  { %3387 = vmatpush.msrb.mxu2 %v5301_v35 }
0x2c0e   :  { %3388 = vmatpush.msrb.mxu2 %v5307_v19 }
0x2c8a   :  { %v2970_v0 = vpop.f32.mrf.mxu2 }
0x2c8b   :  { %v2973_v39 = vadd.f32 %v2970_v0, %v1554_v38  ;;  %v4025_v38 = vld [vmem:[%s5493_s2 + $0xa8] sm:$0xff] }
0x2c8d   :  { %3923 = vtanh.f32 %v2973_v39  ;;  %v3619_v5 = vmul.f32 -1.442695, %v2973_v39 }
0x2c8f   :  { %3925 = vpow2.f32 %v3619_v5 }
0x2c93   :  { %v3924_v56 = vpop.eup %3923 }
0x2c94   :  { %2996 = vrot.lane.b32.xlu0 %v3924_v56, %s4058_s20 }
0x2c95   :  { %v3926_v35 = vpop.eup %3925 }
0x2c96   :  { %v2977_v19 = vadd.f32 1.0, %v3926_v35 }
0x2c98   :  { %3927 = vrcp.f32 %v2977_v19  ;;  %v2989_v49 = vand.u32 2147483648, %v2977_v19  ;;  %vm2983_vm3 = vweird.f32 %v2977_v19  ;;  %v2987_v18 = vand.u32 2147483647, %v2977_v19 }
0x2c9a   :  { %v2990_v57 = vor.u32 1.1754944e-38, %v2989_v49  ;;  %vm2988_vm5 = vcmp.eq.f32.partialorder %v2987_v18, 8.507059e+37  ;;  %v3151_v49 = vld [vmem:[#allocation3 + $0xb0] sm:$0xff] }
0x2c9c   :  { %3014 = vrot.lane.b32.xlu0 %v3011_v58, %s4057_s27 }
0x2c9e   :  { %v3928_v11 = vpop.eup %3927 }
0x2c9f   :  { %v2979_v26 = vmul.f32 %v3928_v11, %v2977_v19  ;;  %vm2984_vm2 = vweird.f32 %v3928_v11 }
0x2ca0   :  { %vm2985_vm4 = vmor %vm2983_vm3, %vm2984_vm2 }
0x2ca1   :  { %v2980_v60 = vsub.f32 1.0, %v2979_v26 }
0x2ca3   :  { %v2981_v30 = vmul.f32 %v3928_v11, %v2980_v60 }
0x2ca5   :  { %v2982_v25 = vadd.f32 %v3928_v11, %v2981_v30 }
0x2ca7   :  { %v2986_v42 = vsel %vm2985_vm4, %v3928_v11, %v2982_v25 }
0x2ca8   :  { %v2991_v16 = vsel %vm2988_vm5, %v2990_v57, %v2986_v42 }
0x2ca9   :  { %v2994_v34 = vmul.f32 %v2991_v16, %v2934_v51 }
0x2d06   :  { %v2997_v45 = vpop.permute.xlu0 %2996 }
0x2d07   :  { %v2999_v46 = vmul.f32 %v2997_v45, %v2991_v16 }
0x2d09   :  { %3001 = vrot.lane.b32.xlu1 %v2999_v46, %s4059_s21 }
0x2d0e   :  { %v3015_v52 = vpop.permute.xlu0 %3014 }
0x2d7b   :  { %v3002_v12 = vpop.permute.xlu1 %3001 }
0x2d7c   :  { %v3004_v20 = vadd.f32 %v3002_v12, %v2994_v34 }
0x2d7e   :  { %3929 = vtanh.f32 %v3004_v20 }
0x2d84   :  { %v3930_v7 = vpop.eup %3929 }
0x2d85   :  { %3007 = vrot.lane.b32.xlu2 %v3930_v7, %s4058_s20 }
0x2d8d   :  { %1301 = vperm.xlu2 %3658, %v4024_v8  }
0x2ddf   :  { %v3008_v21 = vpop.permute.xlu2 %3007 }
0x2de0   :  { %v3010_v53 = vmul.f32 %v3008_v21, %v2991_v16 }
0x2de2   :  { %v3017_v22 = vmul.f32 %v3015_v52, %v3010_v53 }
0x2de4   :  { %3019 = vrot.lane.b32.xlu1 %v3017_v22, %s4059_s21 }
0x2de7   :  { %v1302_v29 = vpop.permute.xlu2 %1301 }
0x2de8   :  { %v1352_v31 = vmul.f32 %v5345_v3, %v1302_v29 }
0x2dea   :  { %v1514_v63 = vadd.f32 %v4593_v36, %v1352_v31 }
0x2dec   :  { %v1555_v37 = vadd.f32 %v5352_v23, %v1514_v63  ;;  %v4026_v63 = vld [vmem:[%s5493_s2 + $0xb0] sm:$0xff] }
0x2e56   :  { %v3020_v24 = vpop.permute.xlu1 %3019 }
0x2e57   :  { %3620 = vmatmul.msk.f32.vlgmr.msrb.gmra.mxu3 %vm1167_vm0, %v3020_v24 }
0x2eda   :  { %v3040_v9 = vpop.f32.mrf.mxu3 }
0x2edb   :  { %v3043_v59 = vadd.f32 %v3040_v9, %v1555_v37 }
0x2edd   :  { %3931 = vtanh.f32 %v3043_v59  ;;  %v3621_v27 = vmul.f32 -1.442695, %v3043_v59 }
0x2edf   :  { %3933 = vpow2.f32 %v3621_v27 }
0x2ee3   :  { %v3932_v40 = vpop.eup %3931 }
0x2ee4   :  { %3066 = vrot.lane.b32.xlu0 %v3932_v40, %s4058_s20 }
0x2ee5   :  { %v3934_v4 = vpop.eup %3933 }
0x2ee6   :  { %v3047_v41 = vadd.f32 1.0, %v3934_v4 }
0x2ee8   :  { %3935 = vrcp.f32 %v3047_v41  ;;  %v3059_v51 = vand.u32 2147483648, %v3047_v41  ;;  %vm3053_vm7 = vweird.f32 %v3047_v41  ;;  %v3057_v44 = vand.u32 2147483647, %v3047_v41 }
0x2eea   :  { %v3060_v48 = vor.u32 1.1754944e-38, %v3059_v51  ;;  %vm3058_vm9 = vcmp.eq.f32.partialorder %v3057_v44, 8.507059e+37 }
0x2eec   :  { %3084 = vrot.lane.b32.xlu0 %v3081_v32, %s4057_s27 }
0x2eee   :  { %v3936_v61 = vpop.eup %3935 }
0x2eef   :  { %v3049_v47 = vmul.f32 %v3936_v61, %v3047_v41  ;;  %vm3054_vm6 = vweird.f32 %v3936_v61 }
0x2ef0   :  { %vm3055_vm8 = vmor %vm3053_vm7, %vm3054_vm6 }
0x2ef1   :  { %v3050_v33 = vsub.f32 1.0, %v3049_v47 }
0x2ef3   :  { %v3051_v36 = vmul.f32 %v3936_v61, %v3050_v33 }
0x2ef5   :  { %v3052_v14 = vadd.f32 %v3936_v61, %v3051_v36 }
0x2ef7   :  { %v3056_v54 = vsel %vm3055_vm8, %v3936_v61, %v3052_v14  ;;  %v3221_v14 = vld [vmem:[#allocation3 + $0xb8] sm:$0xff] }
0x2ef8   :  { %v3061_v10 = vsel %vm3058_vm9, %v3060_v48, %v3056_v54 }
0x2ef9   :  { %v3064_v28 = vmul.f32 %v3061_v10, %v3004_v20 }
0x2f56   :  { %v3067_v55 = vpop.permute.xlu0 %3066 }
0x2f57   :  { %v3069_v17 = vmul.f32 %v3067_v55, %v3061_v10 }
0x2f59   :  { %3071 = vrot.lane.b32.xlu1 %v3069_v17, %s4059_s21 }
0x2f5e   :  { %v3085_v56 = vpop.permute.xlu0 %3084 }
0x2fcb   :  { %v3072_v13 = vpop.permute.xlu1 %3071 }
0x2fcc   :  { %v3074_v1 = vadd.f32 %v3072_v13, %v3064_v28 }
0x2fce   :  { %3937 = vtanh.f32 %v3074_v1 }
0x2fd4   :  { %v3938_v50 = vpop.eup %3937 }
0x2fd5   :  { %3077 = vrot.lane.b32.xlu2 %v3938_v50, %s4058_s20 }
0x2fdd   :  { %1306 = vperm.xlu2 %3658, %v4025_v38  }
0x302f   :  { %v3078_v0 = vpop.permute.xlu2 %3077 }
0x3030   :  { %v3080_v39 = vmul.f32 %v3078_v0, %v3061_v10 }
0x3032   :  { %v3087_v58 = vmul.f32 %v3085_v56, %v3080_v39 }
0x3034   :  { %3089 = vrot.lane.b32.xlu1 %v3087_v58, %s4059_s21 }
0x3037   :  { %v1307_v35 = vpop.permute.xlu2 %1306 }
0x3038   :  { %v1353_v19 = vmul.f32 %v5345_v3, %v1307_v35 }
0x303a   :  { %v1517_v11 = vadd.f32 %v4788_v6, %v1353_v19  ;;  %v4027_v19 = vld [vmem:[%s5493_s2 + $0xb8] sm:$0xff] }
0x303c   :  { %v1556_v26 = vadd.f32 %v5352_v23, %v1517_v11 }
0x30a6   :  { %v3090_v5 = vpop.permute.xlu1 %3089 }
0x30a7   :  { %3622 = vmatmul.msk.f32.vlgmr.msra.gmra.mxu1 %vm1167_vm0, %v3090_v5 }
0x3124   :  { %v3110_v60 = vpop.f32.mrf.mxu1 }
0x3125   :  { %v3113_v30 = vadd.f32 %v3110_v60, %v1556_v26 }
0x3127   :  { %3939 = vtanh.f32 %v3113_v30  ;;  %v3623_v18 = vmul.f32 -1.442695, %v3113_v30 }
0x3129   :  { %3941 = vpow2.f32 %v3623_v18 }
0x312d   :  { %v3940_v25 = vpop.eup %3939 }
0x312e   :  { %3136 = vrot.lane.b32.xlu0 %v3940_v25, %s4058_s20 }
0x312f   :  { %v3942_v42 = vpop.eup %3941 }
0x3130   :  { %v3117_v57 = vadd.f32 1.0, %v3942_v42 }
0x3132   :  { %3943 = vrcp.f32 %v3117_v57  ;;  %v3129_v12 = vand.u32 2147483648, %v3117_v57  ;;  %vm3123_vm11 = vweird.f32 %v3117_v57  ;;  %v3127_v20 = vand.u32 2147483647, %v3117_v57 }
0x3134   :  { %v3130_v8 = vor.u32 1.1754944e-38, %v3129_v12  ;;  %vm3128_vm13 = vcmp.eq.f32.partialorder %v3127_v20, 8.507059e+37 }
0x3136   :  { %3154 = vrot.lane.b32.xlu0 %v3151_v49, %s4057_s27 }
0x3138   :  { %v3944_v45 = vpop.eup %3943 }
0x3139   :  { %v3119_v16 = vmul.f32 %v3944_v45, %v3117_v57  ;;  %vm3124_vm10 = vweird.f32 %v3944_v45 }
0x313a   :  { %vm3125_vm12 = vmor %vm3123_vm11, %vm3124_vm10 }
0x313b   :  { %v3120_v46 = vsub.f32 1.0, %v3119_v16 }
0x313d   :  { %v3121_v6 = vmul.f32 %v3944_v45, %v3120_v46 }
0x313f   :  { %v3122_v34 = vadd.f32 %v3944_v45, %v3121_v6  ;;  %v3291_v6 = vld [vmem:[#allocation3 + $0xc0] sm:$0xff] }
0x3141   :  { %v3126_v7 = vsel %vm3125_vm12, %v3944_v45, %v3122_v34 }
0x3142   :  { %v3131_v53 = vsel %vm3128_vm13, %v3130_v8, %v3126_v7 }
0x3143   :  { %v3134_v22 = vmul.f32 %v3131_v53, %v3074_v1 }
0x31a0   :  { %v3137_v21 = vpop.permute.xlu0 %3136 }
0x31a1   :  { %v3139_v52 = vmul.f32 %v3137_v21, %v3131_v53 }
0x31a3   :  { %3141 = vrot.lane.b32.xlu1 %v3139_v52, %s4059_s21 }
0x31a8   :  { %v3155_v59 = vpop.permute.xlu0 %3154 }
0x3215   :  { %v3142_v24 = vpop.permute.xlu1 %3141 }
0x3216   :  { %v3144_v29 = vadd.f32 %v3142_v24, %v3134_v22 }
0x3218   :  { %3945 = vtanh.f32 %v3144_v29 }
0x321e   :  { %v3946_v31 = vpop.eup %3945 }
0x321f   :  { %3147 = vrot.lane.b32.xlu2 %v3946_v31, %s4058_s20 }
0x3227   :  { %1311 = vperm.xlu2 %3658, %v4026_v63  }
0x3279   :  { %v3148_v37 = vpop.permute.xlu2 %3147 }
0x327a   :  { %v3150_v9 = vmul.f32 %v3148_v37, %v3131_v53 }
0x327c   :  { %v3157_v40 = vmul.f32 %v3155_v59, %v3150_v9 }
0x327e   :  { %3159 = vrot.lane.b32.xlu1 %v3157_v40, %s4059_s21 }
0x3281   :  { %v1312_v27 = vpop.permute.xlu2 %1311 }
0x3282   :  { %v1354_v4 = vmul.f32 %v5345_v3, %v1312_v27  ;;  %v4028_v27 = vld [vmem:[%s5493_s2 + $0xc0] sm:$0xff] }
0x3284   :  { %v1520_v41 = vadd.f32 %v4790_v43, %v1354_v4 }
0x3286   :  { %v1557_v61 = vadd.f32 %v5352_v23, %v1520_v41 }
0x32f0   :  { %v3160_v32 = vpop.permute.xlu1 %3159 }
0x32f1   :  { %3624 = vmatmul.msk.f32.vlgmr.msra.gmra.mxu2 %vm1167_vm0, %v3160_v32 }
0x3374   :  { %v3180_v47 = vpop.f32.mrf.mxu2 }
0x3375   :  { %v3183_v33 = vadd.f32 %v3180_v47, %v1557_v61 }
0x3377   :  { %3947 = vtanh.f32 %v3183_v33  ;;  %v3625_v51 = vmul.f32 -1.442695, %v3183_v33 }
0x3379   :  { %3949 = vpow2.f32 %v3625_v51 }
0x337d   :  { %v3948_v36 = vpop.eup %3947 }
0x337e   :  { %3206 = vrot.lane.b32.xlu0 %v3948_v36, %s4058_s20 }
0x337f   :  { %v3950_v44 = vpop.eup %3949 }
0x3380   :  { %v3187_v54 = vadd.f32 1.0, %v3950_v44 }
0x3382   :  { %3951 = vrcp.f32 %v3187_v54  ;;  %v3199_v28 = vand.u32 2147483648, %v3187_v54  ;;  %vm3193_vm15 = vweird.f32 %v3187_v54  ;;  %v3197_v13 = vand.u32 2147483647, %v3187_v54 }
0x3384   :  { %v3200_v50 = vor.u32 1.1754944e-38, %v3199_v28  ;;  %vm3198_vm2 = vcmp.eq.f32.partialorder %v3197_v13, 8.507059e+37 }
0x3386   :  { %3224 = vrot.lane.b32.xlu0 %v3221_v14, %s4057_s27 }
0x3388   :  { %v3952_v48 = vpop.eup %3951 }
0x3389   :  { %v3189_v55 = vmul.f32 %v3952_v48, %v3187_v54  ;;  %vm3194_vm14 = vweird.f32 %v3952_v48 }
0x338a   :  { %vm3195_vm1 = vmor %vm3193_vm15, %vm3194_vm14  ;;  %vm3468_vm15 = vcmask 7168  }
0x338b   :  { %v3190_v10 = vsub.f32 1.0, %v3189_v55 }
0x338d   :  { %v3191_v43 = vmul.f32 %v3952_v48, %v3190_v10  ;;  %v3361_v10 = vld [vmem:[#allocation3 + $0xc8] sm:$0xff] }
0x338f   :  { %v3192_v17 = vadd.f32 %v3952_v48, %v3191_v43 }
0x3391   :  { %v3196_v1 = vsel %vm3195_vm1, %v3952_v48, %v3192_v17 }
0x3392   :  { %v3201_v0 = vsel %vm3198_vm2, %v3200_v50, %v3196_v1 }
0x3393   :  { %v3204_v56 = vmul.f32 %v3201_v0, %v3144_v29 }
0x33f0   :  { %v3207_v38 = vpop.permute.xlu0 %3206 }
0x33f1   :  { %v3209_v39 = vmul.f32 %v3207_v38, %v3201_v0 }
0x33f3   :  { %3211 = vrot.lane.b32.xlu1 %v3209_v39, %s4059_s21 }
0x33f8   :  { %v3225_v60 = vpop.permute.xlu0 %3224 }
0x3465   :  { %v3212_v58 = vpop.permute.xlu1 %3211 }
0x3466   :  { %v3214_v5 = vadd.f32 %v3212_v58, %v3204_v56 }
0x3468   :  { %3953 = vtanh.f32 %v3214_v5 }
0x346e   :  { %v3954_v35 = vpop.eup %3953 }
0x346f   :  { %3217 = vrot.lane.b32.xlu2 %v3954_v35, %s4058_s20 }
0x3477   :  { %1316 = vperm.xlu2 %3658, %v4027_v19  }
0x34c9   :  { %v3218_v11 = vpop.permute.xlu2 %3217 }
0x34ca   :  { %v3220_v26 = vmul.f32 %v3218_v11, %v3201_v0 }
0x34cc   :  { %v3227_v30 = vmul.f32 %v3225_v60, %v3220_v26 }
0x34ce   :  { %3229 = vrot.lane.b32.xlu1 %v3227_v30, %s4059_s21 }
0x34d1   :  { %v1317_v49 = vpop.permute.xlu2 %1316 }
0x34d2   :  { %v1355_v18 = vmul.f32 %v5345_v3, %v1317_v49 }
0x34d4   :  { %v1523_v42 = vadd.f32 %v4792_v15, %v1355_v18 }
0x34d6   :  { %v1558_v57 = vadd.f32 %v5352_v23, %v1523_v42 }
0x3540   :  { %v3230_v25 = vpop.permute.xlu1 %3229 }
0x3541   :  { %3626 = vmatmul.msk.f32.vlgmr.msra.gmra.mxu3 %vm1167_vm0, %v3230_v25  ;;  %v4029_v25 = vld [vmem:[%s5493_s2 + $0xc8] sm:$0xff] }
0x35c4   :  { %v3250_v45 = vpop.f32.mrf.mxu3 }
0x35c5   :  { %v3253_v16 = vadd.f32 %v3250_v45, %v1558_v57 }
0x35c7   :  { %3955 = vtanh.f32 %v3253_v16  ;;  %v3627_v34 = vmul.f32 -1.442695, %v3253_v16 }
0x35c9   :  { %3957 = vpow2.f32 %v3627_v34 }
0x35cd   :  { %v3956_v46 = vpop.eup %3955 }
0x35ce   :  { %3276 = vrot.lane.b32.xlu0 %v3956_v46, %s4058_s20 }
0x35cf   :  { %v3958_v12 = vpop.eup %3957 }
0x35d0   :  { %v3257_v20 = vadd.f32 1.0, %v3958_v12 }
0x35d2   :  { %3959 = vrcp.f32 %v3257_v20  ;;  %v3269_v52 = vand.u32 2147483648, %v3257_v20  ;;  %vm3263_vm4 = vweird.f32 %v3257_v20  ;;  %v3267_v22 = vand.u32 2147483647, %v3257_v20 }
0x35d4   :  { %v3270_v29 = vor.u32 1.1754944e-38, %v3269_v52  ;;  %vm3268_vm6 = vcmp.eq.f32.partialorder %v3267_v22, 8.507059e+37 }
0x35d6   :  { %3294 = vrot.lane.b32.xlu0 %v3291_v6, %s4057_s27 }
0x35d8   :  { %v3960_v7 = vpop.eup %3959 }
0x35d9   :  { %v3259_v8 = vmul.f32 %v3960_v7, %v3257_v20  ;;  %vm3264_vm3 = vweird.f32 %v3960_v7 }
0x35da   :  { %vm3265_vm5 = vmor %vm3263_vm4, %vm3264_vm3 }
0x35db   :  { %v3260_v21 = vsub.f32 1.0, %v3259_v8 }
0x35dd   :  { %v3261_v15 = vmul.f32 %v3960_v7, %v3260_v21 }
0x35df   :  { %v3262_v53 = vadd.f32 %v3960_v7, %v3261_v15 }
0x35e1   :  { %v3266_v24 = vsel %vm3265_vm5, %v3960_v7, %v3262_v53  ;;  %v3665_v53 = vld [vmem:[%s5481_s14] ss:$0 sm:$0xff] }
0x35e2   :  { %v3271_v63 = vsel %vm3268_vm6, %v3270_v29, %v3266_v24 }
0x35e3   :  { %v3274_v9 = vmul.f32 %v3271_v63, %v3214_v5 }
0x3640   :  { %v3277_v31 = vpop.permute.xlu0 %3276 }
0x3641   :  { %v3279_v37 = vmul.f32 %v3277_v31, %v3271_v63 }
0x3643   :  { %3281 = vrot.lane.b32.xlu1 %v3279_v37, %s4059_s21 }
0x3648   :  { %v3295_v61 = vpop.permute.xlu0 %3294 }
0x36b5   :  { %v3282_v59 = vpop.permute.xlu1 %3281 }
0x36b6   :  { %v3284_v40 = vadd.f32 %v3282_v59, %v3274_v9 }
0x36b8   :  { %3961 = vtanh.f32 %v3284_v40 }
0x36be   :  { %v3962_v32 = vpop.eup %3961 }
0x36bf   :  { %3287 = vrot.lane.b32.xlu2 %v3962_v32, %s4058_s20 }
0x36c7   :  { %1321 = vperm.xlu2 %3658, %v4028_v27  }
0x3719   :  { %v3288_v4 = vpop.permute.xlu2 %3287 }
0x371a   :  { %v3290_v41 = vmul.f32 %v3288_v4, %v3271_v63 }
0x371c   :  { %v3297_v47 = vmul.f32 %v3295_v61, %v3290_v41 }
0x371e   :  { %3299 = vrot.lane.b32.xlu1 %v3297_v47, %s4059_s21 }
0x3721   :  { %v1322_v36 = vpop.permute.xlu2 %1321 }
0x3722   :  { %v1356_v14 = vmul.f32 %v5345_v3, %v1322_v36 }
0x3724   :  { %v1526_v51 = vadd.f32 %v4794_v62, %v1356_v14 }
0x3726   :  { %v1559_v44 = vadd.f32 %v5352_v23, %v1526_v51  ;;  %v3451_v51 = vld [vmem:[%s5472_s5] sm:$0xff] }
0x3790   :  { %v3300_v33 = vpop.permute.xlu1 %3299 }
0x3791   :  { %3628 = vmatmul.msk.f32.vlgmr.msrb.gmra.mxu1 %vm1167_vm0, %v3300_v33 }
0x380e   :  { %v3320_v54 = vpop.f32.mrf.mxu1 }
0x380f   :  { %v3323_v48 = vadd.f32 %v3320_v54, %v1559_v44  ;;  %v3479_v44 = vsel %vm3468_vm15, %v3451_v51, 0.0  ;;  %v3666_v54 = vld [vmem:[#allocation4] ss:$0 sm:$0xff] }
0x3811   :  { %3963 = vtanh.f32 %v3323_v48  ;;  %v3629_v43 = vmul.f32 -1.442695, %v3323_v48 }
0x3813   :  { %3965 = vpow2.f32 %v3629_v43 }
0x3817   :  { %v3964_v55 = vpop.eup %3963 }
0x3818   :  { %3346 = vrot.lane.b32.xlu0 %v3964_v55, %s4058_s20 }
0x3819   :  { %v3966_v17 = vpop.eup %3965 }
0x381a   :  { %v3327_v28 = vadd.f32 1.0, %v3966_v17 }
0x381c   :  { %3967 = vrcp.f32 %v3327_v28  ;;  %v3339_v0 = vand.u32 2147483648, %v3327_v28  ;;  %vm3333_vm8 = vweird.f32 %v3327_v28  ;;  %v3337_v39 = vand.u32 2147483647, %v3327_v28 }
0x381e   :  { %v3340_v58 = vor.u32 1.1754944e-38, %v3339_v0  ;;  %vm3338_vm10 = vcmp.eq.f32.partialorder %v3337_v39, 8.507059e+37  ;;  %v3450_v39 = vld [vmem:[%s5471_s4] sm:$0xff] }
0x3820   :  { %3364 = vrot.lane.b32.xlu0 %v3361_v10, %s4057_s27 }
0x3822   :  { %v3968_v13 = vpop.eup %3967 }
0x3823   :  { %v3329_v1 = vmul.f32 %v3968_v13, %v3327_v28  ;;  %vm3334_vm7 = vweird.f32 %v3968_v13 }
0x3824   :  { %vm3335_vm9 = vmor %vm3333_vm8, %vm3334_vm7  ;;  %vm3508_vm8 = vcmask 0  }
0x3825   :  { %v3330_v50 = vsub.f32 1.0, %v3329_v1 }
0x3827   :  { %v3331_v62 = vmul.f32 %v3968_v13, %v3330_v50 }
0x3829   :  { %v3332_v38 = vadd.f32 %v3968_v13, %v3331_v62 }
0x382b   :  { %v3336_v56 = vsel %vm3335_vm9, %v3968_v13, %v3332_v38 }
0x382c   :  { %v3341_v35 = vsel %vm3338_vm10, %v3340_v58, %v3336_v56 }
0x382d   :  { %v3344_v11 = vmul.f32 %v3341_v35, %v3284_v40 }
0x388a   :  { %v3347_v5 = vpop.permute.xlu0 %3346 }
0x388b   :  { %v3349_v19 = vmul.f32 %v3347_v5, %v3341_v35 }
0x388d   :  { %3351 = vrot.lane.b32.xlu1 %v3349_v19, %s4059_s21 }
0x3892   :  { %v3365_v42 = vpop.permute.xlu0 %3364 }
0x38ff   :  { %v3352_v26 = vpop.permute.xlu1 %3351 }
0x3900   :  { %v3354_v60 = vadd.f32 %v3352_v26, %v3344_v11 }
0x3902   :  { %3969 = vtanh.f32 %v3354_v60 }
0x3908   :  { %v3970_v30 = vpop.eup %3969 }
0x3909   :  { %3357 = vrot.lane.b32.xlu2 %v3970_v30, %s4058_s20 }
0x3911   :  { %1326 = vperm.xlu2 %3658, %v4029_v25  }
0x3963   :  { %v3358_v49 = vpop.permute.xlu2 %3357 }
0x3964   :  { %v3360_v18 = vmul.f32 %v3358_v49, %v3341_v35 }
0x3966   :  { %v3367_v57 = vmul.f32 %v3365_v42, %v3360_v18 }
0x3968   :  { %3369 = vrot.lane.b32.xlu1 %v3367_v57, %s4059_s21 }
0x396b   :  { %v1327_v16 = vpop.permute.xlu2 %1326 }
0x396c   :  { %v1357_v46 = vmul.f32 %v5345_v3, %v1327_v16 }
0x396e   :  { %v1529_v6 = vadd.f32 %v4796_v2, %v1357_v46 }
0x3970   :  { %v1560_v34 = vadd.f32 %v5352_v23, %v1529_v6 }
0x39da   :  { %v3370_v45 = vpop.permute.xlu1 %3369 }
0x39db   :  { %3630 = vmatmul.msk.f32.vlgmr.msrb.gmra.mxu2 %vm1167_vm0, %v3370_v45 }
0x3a5e   :  { %v3390_v12 = vpop.f32.mrf.mxu2 }
0x3a5f   :  { %v3393_v20 = vadd.f32 %v3390_v12, %v1560_v34 }
0x3a61   :  { %3971 = vtanh.f32 %v3393_v20  ;;  %v3631_v8 = vmul.f32 -1.442695, %v3393_v20 }
0x3a63   :  { %3973 = vpow2.f32 %v3631_v8 }
0x3a67   :  { %v3972_v7 = vpop.eup %3971 }
0x3a68   :  { %3416 = vrot.lane.b32.xlu0 %v3972_v7, %s4058_s20 }
0x3a69   :  { %v3974_v21 = vpop.eup %3973 }
0x3a6a   :  { %v3397_v15 = vadd.f32 1.0, %v3974_v21 }
0x3a6c   :  { %3975 = vrcp.f32 %v3397_v15  ;;  %v3409_v24 = vand.u32 2147483648, %v3397_v15  ;;  %vm3403_vm12 = vweird.f32 %v3397_v15  ;;  %v3407_v29 = vand.u32 2147483647, %v3397_v15 }
0x3a6e   :  { %v3410_v63 = vor.u32 1.1754944e-38, %v3409_v24  ;;  %vm3408_vm14 = vcmp.eq.f32.partialorder %v3407_v29, 8.507059e+37 }
0x3a70   :  { %3434 = vrot.lane.b32.xlu0 %v3665_v53, %s4057_s27 }
0x3a72   :  { %v3976_v2 = vpop.eup %3975 }
0x3a73   :  { %v3399_v3 = vmul.f32 %v3976_v2, %v3397_v15  ;;  %vm3404_vm11 = vweird.f32 %v3976_v2 }
0x3a74   :  { %vm3405_vm13 = vmor %vm3403_vm12, %vm3404_vm11 }
0x3a75   :  { %v3400_v23 = vsub.f32 1.0, %v3399_v3 }
0x3a77   :  { %v3401_v52 = vmul.f32 %v3976_v2, %v3400_v23 }
0x3a79   :  { %v3402_v22 = vadd.f32 %v3976_v2, %v3401_v52 }
0x3a7b   :  { %v3406_v31 = vsel %vm3405_vm13, %v3976_v2, %v3402_v22 }
0x3a7c   :  { %v3411_v9 = vsel %vm3408_vm14, %v3410_v63, %v3406_v31 }
0x3a7d   :  { %v3414_v40 = vmul.f32 %v3411_v9, %v3354_v60 }
0x3ada   :  { %v3417_v37 = vpop.permute.xlu0 %3416 }
0x3adb   :  { %v3419_v59 = vmul.f32 %v3417_v37, %v3411_v9 }
0x3add   :  { %3421 = vrot.lane.b32.xlu1 %v3419_v59, %s4059_s21 }
0x3ae2   :  { %v3435_v61 = vpop.permute.xlu0 %3434 }
0x3b4f   :  { %v3422_v32 = vpop.permute.xlu1 %3421 }
0x3b50   :  { %v3424_v27 = vadd.f32 %v3422_v32, %v3414_v40 }
0x3b52   :  { %3977 = vtanh.f32 %v3424_v27 }
0x3b58   :  { %v3978_v4 = vpop.eup %3977 }
0x3b59   :  { %3427 = vrot.lane.b32.xlu2 %v3978_v4, %s4058_s20 }
0x3bb3   :  { %v3428_v41 = vpop.permute.xlu2 %3427 }
0x3bb4   :  { %v3430_v47 = vmul.f32 %v3428_v41, %v3411_v9 }
0x3bb6   :  { %v3437_v33 = vmul.f32 %v3435_v61, %v3430_v47 }
0x3bb8   :  { %3439 = vrot.lane.b32.xlu1 %v3437_v33, %s4059_s21 }
0x3be2   :  { %3480 = vadd.xlane.f32.xlu1 %v3479_v44 }
0x3c2a   :  { %v3440_v36 = vpop.permute.xlu1 %3439 }
0x3c2b   :  { %v3442_v14 = vsel %vm1167_vm0, %v3440_v36, 0.0 }
0x3c2c   :  { %3443 = vadd.xlane.f32.xlu2 %v3442_v14 }
0x3c55   :  { %v3481_v20 = vpop.xlane.xlu1 %3480 }
0x3c56   :  { %v3482_v7 = vrot.slane %v3481_v20, 4 }
0x3c58   :  { %v3483_v8 = vadd.f32 %v3482_v7, %v3481_v20 }
0x3c5a   :  { %v3484_v21 = vrot.slane %v3483_v8, 2 }
0x3c5c   :  { %v3485_v3 = vadd.f32 %v3484_v21, %v3483_v8 }
0x3c5e   :  { %v3486_v22 = vrot.slane %v3485_v3, 1 }
0x3c60   :  { %v3487_v31 = vadd.f32 %v3486_v22, %v3485_v3 }
0x3c9f   :  { %v3444_v48 = vpop.xlane.xlu2 %3443 }
0x3ca0   :  { %v3449_v55 = vadd.f32 %v3666_v54, %v3444_v48 }
0x3ca2   :  { %v3452_v10 = vsub.f32 0.0, %v3449_v55  ;;  %v3632_v43 = vmul.f32 -1.442695, %v3449_v55  ;;  %v3454_v35 = vmul.f32 %v3450_v39, %v3449_v55 }
0x3ca4   :  { %v3453_v17 = vmax.f32 %v3452_v10, 0.0  ;;  %3979 = vpow2.f32 %v3632_v43  ;;  %v3455_v26 = vsub.f32 %v3449_v55, %v3454_v35 }
0x3ca6   :  { %v3457_v28 = vsub.f32 0.0, %v3453_v17  ;;  %v3460_v13 = vsub.f32 %v3452_v10, %v3453_v17  ;;  %v3456_v57 = vadd.f32 %v3455_v26, %v3453_v17 }
0x3ca8   :  { %v3458_v1 = vmul.f32 1.442695, %v3457_v28  ;;  %v3461_v50 = vmul.f32 1.442695, %v3460_v13 }
0x3caa   :  { %v3980_v62 = vpop.eup %3979  ;;  %3981 = vpow2.f32 %v3458_v1 }
0x3cab   :  { %3983 = vpow2.f32 %v3461_v50  ;;  %v3513_v38 = vadd.f32 1.0, %v3980_v62 }
0x3cad   :  { %3985 = vrcp.f32 %v3513_v38  ;;  %v3525_v60 = vand.u32 2147483648, %v3513_v38  ;;  %v3523_v25 = vand.u32 2147483647, %v3513_v38  ;;  %vm3519_vm1 = vweird.f32 %v3513_v38 }
0x3caf   :  { %v3526_v42 = vor.u32 1.1754944e-38, %v3525_v60  ;;  %vm3524_vm3 = vcmp.eq.f32.partialorder %v3523_v25, 8.507059e+37 }
0x3cb0   :  { %v3982_v0 = vpop.eup %3981 }
0x3cb1   :  { %v3984_v56 = vpop.eup %3983 }
0x3cb2   :  { %v3463_v58 = vadd.f32 %v3984_v56, %v3982_v0 }
0x3cb3   :  { %v3986_v5 = vpop.eup %3985 }
0x3cb4   :  { %v3515_v19 = vmul.f32 %v3986_v5, %v3513_v38  ;;  %3987 = vlog2.f32 %v3463_v58  ;;  %vm3520_vm0 = vweird.f32 %v3986_v5 }
0x3cb5   :  { %vm3521_vm2 = vmor %vm3519_vm1, %vm3520_vm0 }
0x3cb6   :  { %v3516_v11 = vsub.f32 1.0, %v3515_v19 }
0x3cb8   :  { %v3517_v30 = vmul.f32 %v3986_v5, %v3516_v11 }
0x3cba   :  { %v3988_v49 = vpop.eup %3987  ;;  %v3518_v18 = vadd.f32 %v3986_v5, %v3517_v30 }
0x3cbb   :  { %v3465_v45 = vmul.f32 0.6931472, %v3988_v49 }
0x3cbc   :  { %v3522_v16 = vsel %vm3521_vm2, %v3986_v5, %v3518_v18 }
0x3cbd   :  { %v3527_v46 = vsel %vm3524_vm3, %v3526_v42, %v3522_v16  ;;  %v3466_v6 = vadd.f32 %v3465_v45, %v3456_v57 }
0x3cbe   :  { %3529 = vst.msk [vmem:[%s5484_s17] sm:$0xff] %vm3468_vm15, %v3527_v46 }
0x3cbf   :  { %v3467_v34 = vmul.f32 %v3466_v6, %v3451_v51 }
0x3cc1   :  { %v3469_v12 = vsel %vm3468_vm15, %v3467_v34, 0.0 }
0x3cc2   :  { %3470 = vadd.xlane.f32.xlu0 %v3469_v12 }
0x3d35   :  { %v3471_v15 = vpop.xlane.xlu0 %3470 }
0x3d36   :  { %v3472_v53 = vrot.slane %v3471_v15, 4 }
0x3d38   :  { %v3473_v2 = vadd.f32 %v3472_v53, %v3471_v15 }
0x3d3a   :  { %v3474_v23 = vrot.slane %v3473_v2, 2 }
0x3d3c   :  { %v3475_v52 = vadd.f32 %v3474_v23, %v3473_v2 }
0x3d3e   :  { %v3476_v24 = vrot.slane %v3475_v52, 1 }
0x3d40   :  { %v3477_v29 = vadd.f32 %v3476_v24, %v3475_v52 }
0x3d42   :  { %3645 = vpush %v3477_v29 }
0x3d43   :  { %3647 = vpush %v3487_v31 }
0x3d73   :  { %s3646_s17 = spop %3645 }
0x3d74   :  { %s3648_s19 = spop %3647 }
0x3d75   :  { %s3489_s3 = sadd.f32 1e-05, %s3648_s19 }
0x3d77   :  { %v3490_v63 = vstv %s3489_s3 }
0x3d78   :  { %3989 = vrcp.f32 %v3490_v63  ;;  %v3502_v40 = vand.u32 2147483648, %v3490_v63  ;;  %v3500_v27 = vand.u32 2147483647, %v3490_v63  ;;  %vm3496_vm5 = vweird.f32 %v3490_v63 }
0x3d7a   :  { %v3503_v41 = vor.u32 1.1754944e-38, %v3502_v40  ;;  %vm3501_vm7 = vcmp.eq.f32.partialorder %v3500_v27, 8.507059e+37 }
0x3d7e   :  { %v3990_v37 = vpop.eup %3989 }
0x3d7f   :  { %v3492_v9 = vmul.f32 %v3990_v37, %v3490_v63  ;;  %vm3497_vm4 = vweird.f32 %v3990_v37 }
0x3d80   :  { %vm3498_vm6 = vmor %vm3496_vm5, %vm3497_vm4 }
0x3d81   :  { %v3493_v59 = vsub.f32 1.0, %v3492_v9 }
0x3d83   :  { %v3494_v32 = vmul.f32 %v3990_v37, %v3493_v59 }
0x3d85   :  { %v3495_v4 = vadd.f32 %v3990_v37, %v3494_v32 }
0x3d87   :  { %v3499_v61 = vsel %vm3498_vm6, %v3990_v37, %v3495_v4 }
0x3d88   :  { %v3504_v47 = vsel %vm3501_vm7, %v3503_v41, %v3499_v61 }
0x3d89   :  { %3649 = vpush %v3504_v47 }
0x3dba   :  { %s3650_s11 = spop %3649 }
0x3dbb   :  { %s3506_s13 = smul.f32 %s3650_s11, %s3646_s17 }
0x3dbd   :  { %v3507_v33 = vstv %s3506_s13 }
0x3dbe   :  { %3509 = vst.msk [vmem:[#allocation5] sm:$0x1] %vm3508_vm8, %v3507_v33 }
0x3dbf   :  { %3544 = dma.vmem_to_hbm [thread:$0]  %s3540_s16, 16, %s3542_s6, [#allocation6]  }
0x3dc0   :  { %4054 = dma.done.wait [#allocation6], 16  }
0x3dc1   :  { %4055 = vsyncadd [#allocation6], 4294967280 }
0x3dc2   :  { %3553 = vsyncpa [#allocation6], 1 }

</bundles_post_ra>
